<compile_context>
chip_gen: v5e
topology: v5e:2x2
jax: 0.10.0
libtpu: 0.0.40
codegen_flags: <defaults>
</compile_context>

<pallas_src>
import jax
import jax.numpy as jnp
import numpy as np
from jax.experimental import pallas as pl
from jax.experimental.pallas import tpu as pltpu


# -----------------------------------------------------------------------------
# Fused Pallas kernel: SA shared-MLP + running-max pool + proposal head
# -----------------------------------------------------------------------------
def _fused_proposal_kernel(gx_ref, gf_ref, w1f_ref, wpk_ref, hw3_ref, tbl_ref,
                           feat_ref, net_ref, acc_ref):
    """Per (batch, proposal-chunk, sample-chunk) fused forward.

    gx_ref:  (1, TS, TP, 3)  f32  normalized grouped xyz
    gf_ref:  (1, TS, TP, C)  bf16 gathered seed features
    w1f_ref: (C, H) bf16  layer-1 feature weights (BN scale folded)
    wpk_ref: (4, H, H) bf16 packed [w2, w3, hw1, hw2] (BN scales folded)
    hw3_ref: (H, Dp) bf16 final head conv (Dp = Dout padded to 128 lanes)
    tbl_ref: (16, H) f32 rows [w1x0,w1x1,w1x2, b1,b2,b3, hb1,hb2, bias3pad, 0..]
    feat_ref: (1, TP, H)  f32 pooled proposal features (block of (B,P,H))
    net_ref:  (1, TP, Dp) f32 proposal-head output      (block of (B,P,Dp))
    acc_ref:  (TP, H) f32 VMEM scratch, running max over sample chunks
    """
    si = pl.program_id(2)
    n_s = pl.num_programs(2)
    ts, tp = gx_ref.shape[1], gx_ref.shape[2]
    C = gf_ref.shape[3]
    Dp = net_ref.shape[2]

    gx = gx_ref[0].reshape(ts * tp, 3)            # (R, 3) f32
    gf = gf_ref[0].reshape(ts * tp, C)            # (R, C) bf16

    # ---- SA layer 1: K=C bf16 MXU matmul + split-K xyz term as 3 VPU FMAs.
    # BN scale already folded into w1f / tbl rows 0..2; epilogue = bias + ReLU.
    h = jnp.dot(gf, w1f_ref[...], preferred_element_type=jnp.float32)
    h = h + (gx[:, 0:1] * tbl_ref[0:1, :]
             + gx[:, 1:2] * tbl_ref[1:2, :]
             + gx[:, 2:3] * tbl_ref[2:3, :])
    h = jnp.maximum(h + tbl_ref[3:4, :], 0.0)

    # ---- SA layer 2 (bf16 MXU, f32 accumulate; bias + ReLU epilogue).
    h = jnp.dot(h.astype(jnp.bfloat16), wpk_ref[0],
                preferred_element_type=jnp.float32)
    h = jnp.maximum(h + tbl_ref[4:5, :], 0.0)

    # ---- SA layer 3 matmul only; bias/ReLU deferred until after the pool
    # (valid: scale folded into w3, and max commutes with +bias / ReLU).
    h = jnp.dot(h.astype(jnp.bfloat16), wpk_ref[1],
                preferred_element_type=jnp.float32)

    # ---- partial max over this chunk's TS samples: (TS*TP, H) -> (TP, H).
    hm = h[0:tp, :]
    for t in range(1, ts):
        hm = jnp.maximum(hm, h[t * tp:(t + 1) * tp, :])

    # ---- running-max accumulator across sample chunks (reduction grid axis).
    @pl.when(si == 0)
    def _():
        acc_ref[...] = jnp.full_like(acc_ref, -jnp.inf)

    acc_ref[...] = jnp.maximum(acc_ref[...], hm)

    # ---- finalize on the last sample chunk: layer-3 epilogue on the pooled
    # block only, then the 3-layer proposal head straight out of VMEM.
    @pl.when(si == n_s - 1)
    def _():
        pooled = jnp.maximum(acc_ref[...] + tbl_ref[5:6, :], 0.0)   # (TP, H)
        feat_ref[0] = pooled
        f = jnp.dot(pooled.astype(jnp.bfloat16), wpk_ref[2],
                    preferred_element_type=jnp.float32)
        f = jnp.maximum(f + tbl_ref[6:7, :], 0.0)
        f = jnp.dot(f.astype(jnp.bfloat16), wpk_ref[3],
                    preferred_element_type=jnp.float32)
        f = jnp.maximum(f + tbl_ref[7:8, :], 0.0)
        net = jnp.dot(f.astype(jnp.bfloat16), hw3_ref[...],
                      preferred_element_type=jnp.float32)
        net_ref[0] = net + tbl_ref[8:9, 0:Dp]


def _pick_tp(P, cap=128):
    """Largest divisor of P that is <= cap and a multiple of 16 (then 8)."""
    for mult in (16, 8):
        for d in range(min(P, cap), 0, -1):
            if P % d == 0 and d % mult == 0:
                return d
    return P


def _pick_ts(S, cap=8):
    for d in range(min(S, cap), 0, -1):
        if S % d == 0:
            return d
    return S


def fused_proposal_pallas(g_xyz, g_feat, kp, dout, *, tp=None, ts=None):
    """g_xyz: (B,S,P,3) f32, g_feat: (B,S,P,C) bf16 -> ((B,P,H), (B,P,dout))."""
    B, S, P, C = g_feat.shape
    H = kp["w1f"].shape[1]
    Dp = kp["hw3"].shape[1]
    assert dout <= Dp

    tp = _pick_tp(P) if tp is None else tp
    ts = _pick_ts(S) if ts is None else ts
    assert P % tp == 0 and (tp % 8 == 0 or tp == P), (P, tp)
    assert S % ts == 0, (S, ts)

    grid = (B, P // tp, S // ts)
    data_map = lambda b, pi, si: (b, si, pi, 0)
    out_map = lambda b, pi, si: (b, pi, 0)
    full2 = lambda b, pi, si: (0, 0)
    full3 = lambda b, pi, si: (0, 0, 0)

    feats, net = pl.pallas_call(
        _fused_proposal_kernel,
        out_shape=(jax.ShapeDtypeStruct((B, P, H), jnp.float32),
                   jax.ShapeDtypeStruct((B, P, Dp), jnp.float32)),
        grid=grid,
        in_specs=[
            pl.BlockSpec((1, ts, tp, 3), data_map),
            pl.BlockSpec((1, ts, tp, C), data_map),
            pl.BlockSpec((C, H), full2),
            pl.BlockSpec((4, H, H), full3),
            pl.BlockSpec((H, Dp), full2),
            pl.BlockSpec((16, H), full2),
        ],
        out_specs=(pl.BlockSpec((1, tp, H), out_map),
                   pl.BlockSpec((1, tp, Dp), out_map)),
        scratch_shapes=[pltpu.VMEM((tp, H), jnp.float32)],
        compiler_params=pltpu.CompilerParams(
            dimension_semantics=("parallel", "parallel", "arbitrary"),
            # ~25% headroom below v7x's 64 MiB/TC; plenty for chunked blocks.
            vmem_limit_bytes=48 * 1024 * 1024),
    )(g_xyz, g_feat, kp["w1f"], kp["wpk"], kp["hw3"], kp["tbl"])
    return feats, net[:, :, :dout]


# -----------------------------------------------------------------------------
# Pure-JAX reference of the fused kernel (same bf16 casts), for sanity checks
# -----------------------------------------------------------------------------
def fused_proposal_reference(g_xyz, g_feat, kp, dout):
    w1f = kp["w1f"].astype(jnp.float32)
    wpk = kp["wpk"].astype(jnp.float32)
    hw3 = kp["hw3"].astype(jnp.float32)
    tbl = kp["tbl"]
    bf = lambda x: x.astype(jnp.bfloat16).astype(jnp.float32)

    h = jnp.einsum("bspc,ch->bsph", g_feat.astype(jnp.float32), w1f)
    h = h + jnp.einsum("bspk,kh->bsph", g_xyz, tbl[0:3])
    h = jnp.maximum(h + tbl[3], 0.0)
    h = jnp.einsum("bsph,hg->bspg", bf(h), wpk[0])
    h = jnp.maximum(h + tbl[4], 0.0)
    h = jnp.einsum("bsph,hg->bspg", bf(h), wpk[1])
    pooled = jnp.maximum(h.max(axis=1) + tbl[5], 0.0)          # (B, P, H)
    f = jnp.einsum("bph,hg->bpg", bf(pooled), wpk[2])
    f = jnp.maximum(f + tbl[6], 0.0)
    f = jnp.einsum("bph,hg->bpg", bf(f), wpk[3])
    f = jnp.maximum(f + tbl[7], 0.0)
    net = jnp.einsum("bph,hd->bpd", bf(f), hw3) + tbl[8:9, :hw3.shape[1]]
    return pooled, net[..., :dout]


# -----------------------------------------------------------------------------
# JAX glue: FPS / ball query / grouping (data-dependent gathers stay in XLA)
# -----------------------------------------------------------------------------
def furthest_point_sample(xyz, npoint):
    """xyz: (B, N, 3) -> (B, npoint) int32 indices."""
    def one(pts):
        N = pts.shape[0]
        def body(i, carry):
            dists, inds = carry
            last = pts[inds[i - 1]]
            d = jnp.sum((pts - last) ** 2, axis=-1)
            dists = jnp.minimum(dists, d)
            inds = inds.at[i].set(jnp.argmax(dists).astype(jnp.int32))
            return dists, inds
        dists = jnp.full((N,), 1e10, jnp.float32)
        inds = jnp.zeros((npoint,), jnp.int32)
        _, inds = jax.lax.fori_loop(1, npoint, body, (dists, inds))
        return inds
    return jax.vmap(one)(xyz)


def ball_query(radius, nsample, xyz, new_xyz):
    """xyz: (B,N,3), new_xyz: (B,P,3) -> (B,P,nsample) int32 (first-found, padded)."""
    N = xyz.shape[1]
    d2 = jnp.sum((new_xyz[:, :, None, :] - xyz[:, None, :, :]) ** 2, -1)  # (B,P,N)
    within = d2 < radius * radius
    idx = jnp.broadcast_to(jnp.arange(N, dtype=jnp.int32), d2.shape)
    key = jnp.where(within, idx, idx + N)        # in-radius points first, index order
    _, grouped = jax.lax.top_k(-key, nsample)    # nsample smallest keys (no full argsort)
    grouped = grouped.astype(jnp.int32)          # (B,P,nsample)
    cnt = jnp.sum(within, axis=-1)               # (B,P)
    first = grouped[..., 0:1]
    mask = jnp.arange(nsample)[None, None, :] < jnp.maximum(cnt, 1)[..., None]
    return jnp.where(mask, grouped, first)


def gather_points(pts, idx):
    """pts: (B, N, D), idx: (B, ...) -> (B, ..., D)."""
    return jax.vmap(lambda p, i: p[i])(pts, idx)


def vote_aggregation_inputs(xyz, feats_cl, cfg):
    """PointnetSAModuleVotes grouping (vote_fps), producing sample-major blocks.

    The small (B,P,S) index tensor is transposed (not the big grouped tensor),
    so the gather directly emits sample-major (B, S, P, ·) layout for the kernel.
    """
    P, S, radius = cfg["num_proposal"], cfg["nsample"], cfg["radius"]
    fps_inds = furthest_point_sample(xyz, P)                  # (B,P)
    new_xyz = gather_points(xyz, fps_inds)                    # (B,P,3)
    idx = ball_query(radius, S, xyz, new_xyz)                 # (B,P,S)
    idx_sm = jnp.transpose(idx, (0, 2, 1))                    # (B,S,P)
    g_xyz = (gather_points(xyz, idx_sm) - new_xyz[:, None, :, :]) / radius  # normalize_xyz
    g_feat = gather_points(feats_cl, idx_sm)                  # (B,S,P,C) bf16
    return new_xyz, fps_inds, g_xyz.astype(jnp.float32), g_feat


# -----------------------------------------------------------------------------
# Box decoding (VoteNet utilities re-implemented in JAX)
# -----------------------------------------------------------------------------
def flip_axis_to_camera(pc):
    return jnp.stack([pc[..., 0], -pc[..., 2], pc[..., 1]], axis=-1)


def roty_batch(t):
    c, s = jnp.cos(t), jnp.sin(t)
    z, o = jnp.zeros_like(t), jnp.ones_like(t)
    return jnp.stack([jnp.stack([c, z, s], -1),
                      jnp.stack([z, o, z], -1),
                      jnp.stack([-s, z, c], -1)], axis=-2)


def get_3d_box_batch(box_center_unnorm, box_size, box_angle):
    center = flip_axis_to_camera(box_center_unnorm)
    l, w, h = box_size[..., 0:1], box_size[..., 1:2], box_size[..., 2:3]
    cx = jnp.concatenate([l/2, l/2, -l/2, -l/2, l/2, l/2, -l/2, -l/2], -1)
    cy = jnp.concatenate([h/2, h/2, h/2, h/2, -h/2, -h/2, -h/2, -h/2], -1)
    cz = jnp.concatenate([w/2, -w/2, -w/2, w/2, w/2, -w/2, -w/2, w/2], -1)
    corners = jnp.stack([cx, cy, cz], axis=-1)                 # (..., 8, 3)
    R = roty_batch(box_angle)                                  # (..., 3, 3)
    corners = jnp.einsum("...ij,...kj->...ik", corners, R)     # corners @ R^T
    return corners + center[..., None, :]


def decode_box_predictions(net, data_dict, NH, NS, mean_size_arr):
    """net: (B, P, Dout) channels-last (== PyTorch's transpose(2,1))."""
    B, P, _ = net.shape
    objectness_scores = net[..., 0:2]
    base_xyz = data_dict["aggregated_vote_xyz"]
    box_center = base_xyz + net[..., 2:5]
    size_scores = net[..., 5 + NH * 2: 5 + NH * 2 + NS]
    srn = net[..., 5 + NH * 2 + NS: 5 + NH * 2 + NS * 4].reshape(B, P, NS, 3)
    sem_cls_scores = net[..., 5 + NH * 2 + NS * 4:]

    msa = jnp.asarray(mean_size_arr, jnp.float32)[None, None]  # (1,1,NS,3)
    size_residuals = srn * msa
    best = jnp.argmax(size_scores, axis=-1)                    # (B,P)
    idx4 = jnp.broadcast_to(best[..., None, None], (B, P, 1, 3))
    pred_size = jnp.take_along_axis(size_residuals + msa, idx4, axis=2)[:, :, 0, :]

    data_dict["objectness_scores"] = objectness_scores
    data_dict["center"] = box_center
    data_dict["size_scores"] = size_scores
    data_dict["size_residuals_normalized"] = srn
    data_dict["size_residuals"] = size_residuals
    data_dict["pred_size"] = pred_size
    data_dict["sem_cls_scores"] = sem_cls_scores
    data_dict["box_corners"] = get_3d_box_batch(
        box_center, pred_size, jnp.zeros_like(box_center[..., 0]))
    data_dict["prop_features"] = data_dict["aggregated_vote_features"]
    data_dict["bbox_mask"] = jnp.argmax(objectness_scores, -1)
    data_dict["bbox_sems"] = jnp.argmax(sem_cls_scores, -1)
    data_dict["sem_cls"] = jnp.argmax(sem_cls_scores, -1)
    obj_argmin = jnp.argmin(objectness_scores, -1)[..., None].astype(jnp.float32) * 1e10
    data_dict["sem_cls_logits"] = jnp.concatenate([sem_cls_scores, obj_argmin], axis=-1)
    data_dict["objectness_prob"] = jax.nn.softmax(objectness_scores, axis=-1)[..., 1]
    data_dict["sem_cls_prob"] = jax.nn.softmax(sem_cls_scores, axis=-1)
    return data_dict


# -----------------------------------------------------------------------------
# Full forward (sampling == 'vote_fps')
# -----------------------------------------------------------------------------
def proposal_module_forward(params, xyz, features, end_points, cfg):
    """xyz: (B,K,3) f32; features: (B,C,K) f32 (PyTorch layout)."""
    dout = 2 + 3 + cfg["num_heading_bin"] * 2 + cfg["num_size_cluster"] * 4 + cfg["num_class"]
    feats_cl = jnp.transpose(features, (0, 2, 1)).astype(jnp.bfloat16)   # (B,K,C)
    new_xyz, fps_inds, g_xyz, g_feat = vote_aggregation_inputs(xyz, feats_cl, cfg)
    new_feats, net = fused_proposal_pallas(
        g_xyz, g_feat, params["kernel"], dout,
        tp=cfg.get("tp"), ts=cfg.get("ts"))

    end_points = dict(end_points)
    end_points["aggregated_vote_xyz"] = new_xyz
    end_points["aggregated_vote_inds"] = fps_inds
    # == features.permute(0,2,1).unsqueeze(0): (1, B, P, H)
    end_points["aggregated_vote_features"] = new_feats[None]
    return decode_box_predictions(net, end_points,
                                  cfg["num_heading_bin"], cfg["num_size_cluster"],
                                  cfg["mean_size_arr"])


# -----------------------------------------------------------------------------
# Deterministic parameter init (BN folded: scales into weights, biases kept)
# -----------------------------------------------------------------------------
def _conv_w(k, cin, cout):
    return jax.random.normal(k, (cin, cout), jnp.float32) / np.sqrt(cin)


def _bn_fold(k, c, eps=1e-5):
    k1, k2, k3, k4 = jax.random.split(k, 4)
    gamma = jax.random.uniform(k1, (c,), jnp.float32, 0.5, 1.5)
    beta = jax.random.normal(k2, (c,), jnp.float32) * 0.1
    mean = jax.random.normal(k3, (c,), jnp.float32) * 0.1
    var = jax.random.uniform(k4, (c,), jnp.float32, 0.5, 1.5)
    scale = gamma / jnp.sqrt(var + eps)
    bias = beta - mean * scale
    return scale, bias


def init_params(key, seed_feat_dim, prop_feat_size, dout, dout_pad=128):
    C, H, Dp = seed_feat_dim, prop_feat_size, dout_pad
    assert dout <= Dp <= H
    ks = jax.random.split(key, 12)

    # SA shared MLP: conv1 acts on concat([grouped_xyz(3); grouped_feat(C)])
    w1_full = _conv_w(ks[0], 3 + C, H)
    w1x, w1f = w1_full[:3], w1_full[3:]
    w2 = _conv_w(ks[1], H, H)
    w3 = _conv_w(ks[2], H, H)
    s1, b1 = _bn_fold(ks[3], H)
    s2, b2 = _bn_fold(ks[4], H)
    s3, b3 = _bn_fold(ks[5], H)

    # Proposal head: Conv1d->BN->ReLU, Conv1d->BN->ReLU, Conv1d(+bias)
    hw1 = _conv_w(ks[6], H, H)
    hw2 = _conv_w(ks[7], H, H)
    hw3 = _conv_w(ks[8], H, dout)
    bias3 = jax.random.normal(ks[9], (dout,), jnp.float32) * 0.01
    hs1, hb1 = _bn_fold(ks[10], H)
    hs2, hb2 = _bn_fold(ks[11], H)

    # Fold BN scales into the preceding conv weight columns (eval mode); only
    # bias rows remain for the in-kernel epilogues (add + ReLU).
    w1x_s = w1x * s1[None, :]
    w1f_s = w1f * s1[None, :]
    w2_s = w2 * s2[None, :]
    w3_s = w3 * s3[None, :]
    hw1_s = hw1 * hs1[None, :]
    hw2_s = hw2 * hs2[None, :]

    # Single f32 table: [w1x rows (scaled), b1, b2, b3, hb1, hb2, bias3(pad), 0...]
    tbl = jnp.zeros((16, H), jnp.float32)
    tbl = (tbl.at[0:3].set(w1x_s).at[3].set(b1).at[4].set(b2).at[5].set(b3)
              .at[6].set(hb1).at[7].set(hb2).at[8, :dout].set(bias3))

    # Packed bf16 weights: one DMA stream for the four (H,H) matmuls.
    wpk = jnp.stack([w2_s, w3_s, hw1_s, hw2_s]).astype(jnp.bfloat16)
    # Final head conv padded to 128 lanes so stores stay lane-dense.
    hw3p = jnp.zeros((H, Dp), jnp.float32).at[:, :dout].set(hw3).astype(jnp.bfloat16)

    kernel = dict(
        w1f=w1f_s.astype(jnp.bfloat16),
        wpk=wpk,
        hw3=hw3p,
        tbl=tbl,
    )
    return {"kernel": kernel}


# -----------------------------------------------------------------------------
if __name__ == "__main__":
    num_class, NH, NS = 4, 2, 3
    num_proposal, seed_feat_dim, prop_feat_size = 32, 256, 256
    nsample, radius = 16, 0.3
    B, N = 2, 64
    mean_size_arr = np.array([[0.5, 0.5, 0.5],
                              [1.0, 0.8, 0.6],
                              [1.5, 1.2, 0.9]], dtype=np.float32)
    dout = 2 + 3 + NH * 2 + NS * 4 + num_class  # = 25

    key = jax.random.PRNGKey(0)
    kx, kf, kp = jax.random.split(key, 3)
    xyz = jax.random.uniform(kx, (B, N, 3), jnp.float32, -1.0, 1.0)
    features = jax.random.normal(kf, (B, seed_feat_dim, N), jnp.float32)
    params = init_params(kp, seed_feat_dim, prop_feat_size, dout)

    # tp=16 / ts=8 -> grid = (2, 2, 2): exercises the parallel proposal-chunk
    # axis and the running-max reduction over sample chunks.
    cfg = dict(num_proposal=num_proposal, nsample=nsample, radius=radius,
               num_heading_bin=NH, num_size_cluster=NS,
               mean_size_arr=mean_size_arr, num_class=num_class,
               tp=16, ts=8)

    out = proposal_module_forward(params, xyz, features, {}, cfg)
    jax.tree_util.tree_map(jax.block_until_ready, out)

    # shape sanity checks
    assert out["box_corners"].shape == (B, num_proposal, 8, 3)
    assert out["objectness_scores"].shape == (B, num_proposal, 2)
    assert out["sem_cls_prob"].shape == (B, num_proposal, num_class)
    assert out["aggregated_vote_features"].shape == (1, B, num_proposal, prop_feat_size)

    # numerical sanity check of the fused kernel against a pure-JAX reference
    feats_cl = jnp.transpose(features, (0, 2, 1)).astype(jnp.bfloat16)
    _, _, g_xyz, g_feat = vote_aggregation_inputs(xyz, feats_cl, cfg)
    feats_k, net_k = fused_proposal_pallas(g_xyz, g_feat, params["kernel"], dout,
                                           tp=cfg["tp"], ts=cfg["ts"])
    feats_r, net_r = fused_proposal_reference(g_xyz, g_feat, params["kernel"], dout)
    np.testing.assert_allclose(np.asarray(feats_k), np.asarray(feats_r),
                               rtol=2e-2, atol=2e-2)
    np.testing.assert_allclose(np.asarray(net_k), np.asarray(net_r),
                               rtol=2e-2, atol=2e-2)
    print("KERNEL_OK")
</pallas_src>

<mosaic_0001>
module attributes {stable_mosaic.version = 11 : i64} {
  func.func @_fused_proposal_kernel(%arg0: i32, %arg1: i32, %arg2: i32, %arg3: memref<1x8x16x3xf32, #tpu.memory_space<vmem>>, %arg4: memref<1x8x16x256xbf16, #tpu.memory_space<vmem>>, %arg5: memref<256x256xbf16, #tpu.memory_space<vmem>>, %arg6: memref<4x256x256xbf16, #tpu.memory_space<vmem>>, %arg7: memref<256x128xbf16, #tpu.memory_space<vmem>>, %arg8: memref<16x256xf32, #tpu.memory_space<vmem>>, %arg9: memref<1x16x256xf32, #tpu.memory_space<vmem>>, %arg10: memref<1x16x128xf32, #tpu.memory_space<vmem>>, %arg11: memref<16x256xf32, #tpu.memory_space<vmem>>) attributes {dimension_semantics = [#tpu.dimension_semantics<parallel>, #tpu.dimension_semantics<parallel>, #tpu.dimension_semantics<arbitrary>], iteration_bounds = array<i64: 2, 2, 2>, scalar_prefetch = 0 : i64, scratch_operands = 1 : i64, tpu.core_type = #tpu.core_type<tc>, window_params = [{transform_indices = @transform_0, window_bounds = array<i64: 1, 8, 16, 3>}, {transform_indices = @transform_1, window_bounds = array<i64: 1, 8, 16, 256>}, {pipeline_mode = #tpu.pipeline_mode<synchronous>, transform_indices = @transform_2, window_bounds = array<i64: 256, 256>}, {pipeline_mode = #tpu.pipeline_mode<synchronous>, transform_indices = @transform_3, window_bounds = array<i64: 4, 256, 256>}, {pipeline_mode = #tpu.pipeline_mode<synchronous>, transform_indices = @transform_4, window_bounds = array<i64: 256, 128>}, {pipeline_mode = #tpu.pipeline_mode<synchronous>, transform_indices = @transform_5, window_bounds = array<i64: 16, 256>}, {transform_indices = @transform_6, window_bounds = array<i64: 1, 16, 256>}, {transform_indices = @transform_7, window_bounds = array<i64: 1, 16, 128>}]} {
    %c0 = arith.constant 0 : index
    %c0_0 = arith.constant 0 : index
    %c0_1 = arith.constant 0 : index
    %c0_2 = arith.constant 0 : index
    %0 = vector.load %arg3[%c0, %c0_0, %c0_1, %c0_2] : memref<1x8x16x3xf32, #tpu.memory_space<vmem>>, vector<1x8x16x3xf32>
    %1 = vector.shape_cast %0 : vector<1x8x16x3xf32> to vector<8x16x3xf32>
    %2 = vector.shape_cast %1 : vector<8x16x3xf32> to vector<128x3xf32>
    %c0_3 = arith.constant 0 : index
    %c0_4 = arith.constant 0 : index
    %c0_5 = arith.constant 0 : index
    %c0_6 = arith.constant 0 : index
    %3 = vector.load %arg4[%c0_3, %c0_4, %c0_5, %c0_6] : memref<1x8x16x256xbf16, #tpu.memory_space<vmem>>, vector<1x8x16x256xbf16>
    %4 = vector.shape_cast %3 : vector<1x8x16x256xbf16> to vector<8x16x256xbf16>
    %5 = vector.shape_cast %4 : vector<8x16x256xbf16> to vector<128x256xbf16>
    %c0_7 = arith.constant 0 : index
    %c0_8 = arith.constant 0 : index
    %6 = vector.load %arg5[%c0_7, %c0_8] : memref<256x256xbf16, #tpu.memory_space<vmem>>, vector<256x256xbf16>
    %cst = arith.constant dense<0.000000e+00> : vector<128x256xf32>
    %7 = tpu.matmul %5, %6, %cst {dimension_numbers = #tpu.dot_dimension_numbers<[1], [0], [0], [1], [0, 0, 1, 1], [], []>} : vector<128x256xbf16>, vector<256x256xbf16>, vector<128x256xf32> -> vector<128x256xf32>
    %8 = vector.extract_strided_slice %2 {offsets = [0, 0], sizes = [128, 1], strides = [1, 1]} : vector<128x3xf32> to vector<128x1xf32>
    %c0_9 = arith.constant 0 : index
    %c0_10 = arith.constant 0 : index
    %9 = vector.load %arg8[%c0_9, %c0_10] : memref<16x256xf32, #tpu.memory_space<vmem>>, vector<1x256xf32>
    %10 = vector.broadcast %8 : vector<128x1xf32> to vector<128x256xf32>
    %11 = vector.broadcast %9 : vector<1x256xf32> to vector<128x256xf32>
    %12 = arith.mulf %10, %11 : vector<128x256xf32>
    %13 = vector.extract_strided_slice %2 {offsets = [0, 1], sizes = [128, 1], strides = [1, 1]} : vector<128x3xf32> to vector<128x1xf32>
    %c1 = arith.constant 1 : index
    %c0_11 = arith.constant 0 : index
    %14 = vector.load %arg8[%c1, %c0_11] : memref<16x256xf32, #tpu.memory_space<vmem>>, vector<1x256xf32>
    %15 = vector.broadcast %13 : vector<128x1xf32> to vector<128x256xf32>
    %16 = vector.broadcast %14 : vector<1x256xf32> to vector<128x256xf32>
    %17 = arith.mulf %15, %16 : vector<128x256xf32>
    %18 = arith.addf %12, %17 : vector<128x256xf32>
    %19 = vector.extract_strided_slice %2 {offsets = [0, 2], sizes = [128, 1], strides = [1, 1]} : vector<128x3xf32> to vector<128x1xf32>
    %c2 = arith.constant 2 : index
    %c0_12 = arith.constant 0 : index
    %20 = vector.load %arg8[%c2, %c0_12] : memref<16x256xf32, #tpu.memory_space<vmem>>, vector<1x256xf32>
    %21 = vector.broadcast %19 : vector<128x1xf32> to vector<128x256xf32>
    %22 = vector.broadcast %20 : vector<1x256xf32> to vector<128x256xf32>
    %23 = arith.mulf %21, %22 : vector<128x256xf32>
    %24 = arith.addf %18, %23 : vector<128x256xf32>
    %25 = arith.addf %7, %24 : vector<128x256xf32>
    %c3 = arith.constant 3 : index
    %c0_13 = arith.constant 0 : index
    %26 = vector.load %arg8[%c3, %c0_13] : memref<16x256xf32, #tpu.memory_space<vmem>>, vector<1x256xf32>
    %27 = vector.broadcast %26 : vector<1x256xf32> to vector<128x256xf32>
    %28 = arith.addf %25, %27 : vector<128x256xf32>
    %cst_14 = arith.constant 0.000000e+00 : f32
    %29 = vector.broadcast %cst_14 : f32 to vector<128x256xf32>
    %30 = arith.maximumf %28, %29 : vector<128x256xf32>
    %31 = arith.truncf %30 : vector<128x256xf32> to vector<128x256xbf16>
    %c0_15 = arith.constant 0 : index
    %c0_16 = arith.constant 0 : index
    %c0_17 = arith.constant 0 : index
    %32 = vector.load %arg6[%c0_15, %c0_16, %c0_17] : memref<4x256x256xbf16, #tpu.memory_space<vmem>>, vector<1x256x256xbf16>
    %33 = vector.shape_cast %32 : vector<1x256x256xbf16> to vector<256x256xbf16>
    %cst_18 = arith.constant dense<0.000000e+00> : vector<128x256xf32>
    %34 = tpu.matmul %31, %33, %cst_18 {dimension_numbers = #tpu.dot_dimension_numbers<[1], [0], [0], [1], [0, 0, 1, 1], [], []>} : vector<128x256xbf16>, vector<256x256xbf16>, vector<128x256xf32> -> vector<128x256xf32>
    %c4 = arith.constant 4 : index
    %c0_19 = arith.constant 0 : index
    %35 = vector.load %arg8[%c4, %c0_19] : memref<16x256xf32, #tpu.memory_space<vmem>>, vector<1x256xf32>
    %36 = vector.broadcast %35 : vector<1x256xf32> to vector<128x256xf32>
    %37 = arith.addf %34, %36 : vector<128x256xf32>
    %cst_20 = arith.constant 0.000000e+00 : f32
    %38 = vector.broadcast %cst_20 : f32 to vector<128x256xf32>
    %39 = arith.maximumf %37, %38 : vector<128x256xf32>
    %40 = arith.truncf %39 : vector<128x256xf32> to vector<128x256xbf16>
    %c1_21 = arith.constant 1 : index
    %c0_22 = arith.constant 0 : index
    %c0_23 = arith.constant 0 : index
    %41 = vector.load %arg6[%c1_21, %c0_22, %c0_23] : memref<4x256x256xbf16, #tpu.memory_space<vmem>>, vector<1x256x256xbf16>
    %42 = vector.shape_cast %41 : vector<1x256x256xbf16> to vector<256x256xbf16>
    %cst_24 = arith.constant dense<0.000000e+00> : vector<128x256xf32>
    %43 = tpu.matmul %40, %42, %cst_24 {dimension_numbers = #tpu.dot_dimension_numbers<[1], [0], [0], [1], [0, 0, 1, 1], [], []>} : vector<128x256xbf16>, vector<256x256xbf16>, vector<128x256xf32> -> vector<128x256xf32>
    %44 = vector.extract_strided_slice %43 {offsets = [0, 0], sizes = [16, 256], strides = [1, 1]} : vector<128x256xf32> to vector<16x256xf32>
    %45 = vector.extract_strided_slice %43 {offsets = [16, 0], sizes = [16, 256], strides = [1, 1]} : vector<128x256xf32> to vector<16x256xf32>
    %46 = arith.maximumf %44, %45 : vector<16x256xf32>
    %47 = vector.extract_strided_slice %43 {offsets = [32, 0], sizes = [16, 256], strides = [1, 1]} : vector<128x256xf32> to vector<16x256xf32>
    %48 = arith.maximumf %46, %47 : vector<16x256xf32>
    %49 = vector.extract_strided_slice %43 {offsets = [48, 0], sizes = [16, 256], strides = [1, 1]} : vector<128x256xf32> to vector<16x256xf32>
    %50 = arith.maximumf %48, %49 : vector<16x256xf32>
    %51 = vector.extract_strided_slice %43 {offsets = [64, 0], sizes = [16, 256], strides = [1, 1]} : vector<128x256xf32> to vector<16x256xf32>
    %52 = arith.maximumf %50, %51 : vector<16x256xf32>
    %53 = vector.extract_strided_slice %43 {offsets = [80, 0], sizes = [16, 256], strides = [1, 1]} : vector<128x256xf32> to vector<16x256xf32>
    %54 = arith.maximumf %52, %53 : vector<16x256xf32>
    %55 = vector.extract_strided_slice %43 {offsets = [96, 0], sizes = [16, 256], strides = [1, 1]} : vector<128x256xf32> to vector<16x256xf32>
    %56 = arith.maximumf %54, %55 : vector<16x256xf32>
    %57 = vector.extract_strided_slice %43 {offsets = [112, 0], sizes = [16, 256], strides = [1, 1]} : vector<128x256xf32> to vector<16x256xf32>
    %58 = arith.maximumf %56, %57 : vector<16x256xf32>
    %c0_i32 = arith.constant 0 : i32
    %59 = arith.cmpi eq, %arg2, %c0_i32 : i32
    %60 = arith.extui %59 : i1 to i32
    %c0_i32_25 = arith.constant 0 : i32
    %61 = arith.cmpi ne, %60, %c0_i32_25 : i32
    scf.if %61 {
      %cst_31 = arith.constant 0xFF800000 : f32
      %68 = vector.broadcast %cst_31 : f32 to vector<16x256xf32>
      %c0_32 = arith.constant 0 : index
      %c0_33 = arith.constant 0 : index
      %69 = vector.load %arg11[%c0_32, %c0_33] : memref<16x256xf32, #tpu.memory_space<vmem>>, vector<16x256xf32>
      tpu.vector_store %arg11[%c0_32, %c0_33], %68 {strides = array<i32>} : memref<16x256xf32, #tpu.memory_space<vmem>>, vector<16x256xf32>,
    } else {
    }
    %c0_26 = arith.constant 0 : index
    %c0_27 = arith.constant 0 : index
    %62 = vector.load %arg11[%c0_26, %c0_27] : memref<16x256xf32, #tpu.memory_space<vmem>>, vector<16x256xf32>
    %63 = arith.maximumf %62, %58 : vector<16x256xf32>
    %c0_28 = arith.constant 0 : index
    %c0_29 = arith.constant 0 : index
    %64 = vector.load %arg11[%c0_28, %c0_29] : memref<16x256xf32, #tpu.memory_space<vmem>>, vector<16x256xf32>
    tpu.vector_store %arg11[%c0_28, %c0_29], %63 {strides = array<i32>} : memref<16x256xf32, #tpu.memory_space<vmem>>, vector<16x256xf32>,
    %c1_i32 = arith.constant 1 : i32
    %65 = arith.cmpi eq, %arg2, %c1_i32 : i32
    %66 = arith.extui %65 : i1 to i32
    %c0_i32_30 = arith.constant 0 : i32
    %67 = arith.cmpi ne, %66, %c0_i32_30 : i32
    scf.if %67 {
      %c0_31 = arith.constant 0 : index
      %c0_32 = arith.constant 0 : index
      %68 = vector.load %arg11[%c0_31, %c0_32] : memref<16x256xf32, #tpu.memory_space<vmem>>, vector<16x256xf32>
      %c5 = arith.constant 5 : index
      %c0_33 = arith.constant 0 : index
      %69 = vector.load %arg8[%c5, %c0_33] : memref<16x256xf32, #tpu.memory_space<vmem>>, vector<1x256xf32>
      %70 = vector.broadcast %69 : vector<1x256xf32> to vector<16x256xf32>
      %71 = arith.addf %68, %70 : vector<16x256xf32>
      %cst_34 = arith.constant 0.000000e+00 : f32
      %72 = vector.broadcast %cst_34 : f32 to vector<16x256xf32>
      %73 = arith.maximumf %71, %72 : vector<16x256xf32>
      %c0_35 = arith.constant 0 : index
      %c0_36 = arith.constant 0 : index
      %c0_37 = arith.constant 0 : index
      %74 = vector.load %arg9[%c0_35, %c0_36, %c0_37] : memref<1x16x256xf32, #tpu.memory_space<vmem>>, vector<1x16x256xf32>
      %75 = vector.shape_cast %74 : vector<1x16x256xf32> to vector<16x256xf32>
      %76 = vector.shape_cast %73 : vector<16x256xf32> to vector<1x16x256xf32>
      tpu.vector_store %arg9[%c0_35, %c0_36, %c0_37], %76 {strides = array<i32>} : memref<1x16x256xf32, #tpu.memory_space<vmem>>, vector<1x16x256xf32>,
      %77 = arith.truncf %73 : vector<16x256xf32> to vector<16x256xbf16>
      %c2_38 = arith.constant 2 : index
      %c0_39 = arith.constant 0 : index
      %c0_40 = arith.constant 0 : index
      %78 = vector.load %arg6[%c2_38, %c0_39, %c0_40] : memref<4x256x256xbf16, #tpu.memory_space<vmem>>, vector<1x256x256xbf16>
      %79 = vector.shape_cast %78 : vector<1x256x256xbf16> to vector<256x256xbf16>
      %cst_41 = arith.constant dense<0.000000e+00> : vector<16x256xf32>
      %80 = tpu.matmul %77, %79, %cst_41 {dimension_numbers = #tpu.dot_dimension_numbers<[1], [0], [0], [1], [0, 0, 1, 1], [], []>} : vector<16x256xbf16>, vector<256x256xbf16>, vector<16x256xf32> -> vector<16x256xf32>
      %c6 = arith.constant 6 : index
      %c0_42 = arith.constant 0 : index
      %81 = vector.load %arg8[%c6, %c0_42] : memref<16x256xf32, #tpu.memory_space<vmem>>, vector<1x256xf32>
      %82 = vector.broadcast %81 : vector<1x256xf32> to vector<16x256xf32>
      %83 = arith.addf %80, %82 : vector<16x256xf32>
      %cst_43 = arith.constant 0.000000e+00 : f32
      %84 = vector.broadcast %cst_43 : f32 to vector<16x256xf32>
      %85 = arith.maximumf %83, %84 : vector<16x256xf32>
      %86 = arith.truncf %85 : vector<16x256xf32> to vector<16x256xbf16>
      %c3_44 = arith.constant 3 : index
      %c0_45 = arith.constant 0 : index
      %c0_46 = arith.constant 0 : index
      %87 = vector.load %arg6[%c3_44, %c0_45, %c0_46] : memref<4x256x256xbf16, #tpu.memory_space<vmem>>, vector<1x256x256xbf16>
      %88 = vector.shape_cast %87 : vector<1x256x256xbf16> to vector<256x256xbf16>
      %cst_47 = arith.constant dense<0.000000e+00> : vector<16x256xf32>
      %89 = tpu.matmul %86, %88, %cst_47 {dimension_numbers = #tpu.dot_dimension_numbers<[1], [0], [0], [1], [0, 0, 1, 1], [], []>} : vector<16x256xbf16>, vector<256x256xbf16>, vector<16x256xf32> -> vector<16x256xf32>
      %c7 = arith.constant 7 : index
      %c0_48 = arith.constant 0 : index
      %90 = vector.load %arg8[%c7, %c0_48] : memref<16x256xf32, #tpu.memory_space<vmem>>, vector<1x256xf32>
      %91 = vector.broadcast %90 : vector<1x256xf32> to vector<16x256xf32>
      %92 = arith.addf %89, %91 : vector<16x256xf32>
      %cst_49 = arith.constant 0.000000e+00 : f32
      %93 = vector.broadcast %cst_49 : f32 to vector<16x256xf32>
      %94 = arith.maximumf %92, %93 : vector<16x256xf32>
      %95 = arith.truncf %94 : vector<16x256xf32> to vector<16x256xbf16>
      %c0_50 = arith.constant 0 : index
      %c0_51 = arith.constant 0 : index
      %96 = vector.load %arg7[%c0_50, %c0_51] : memref<256x128xbf16, #tpu.memory_space<vmem>>, vector<256x128xbf16>
      %cst_52 = arith.constant dense<0.000000e+00> : vector<16x128xf32>
      %97 = tpu.matmul %95, %96, %cst_52 {dimension_numbers = #tpu.dot_dimension_numbers<[1], [0], [0], [1], [0, 0, 1, 1], [], []>} : vector<16x256xbf16>, vector<256x128xbf16>, vector<16x128xf32> -> vector<16x128xf32>
      %c8 = arith.constant 8 : index
      %c0_53 = arith.constant 0 : index
      %98 = vector.load %arg8[%c8, %c0_53] : memref<16x256xf32, #tpu.memory_space<vmem>>, vector<1x128xf32>
      %99 = vector.broadcast %98 : vector<1x128xf32> to vector<16x128xf32>
      %100 = arith.addf %97, %99 : vector<16x128xf32>
      %c0_54 = arith.constant 0 : index
      %c0_55 = arith.constant 0 : index
      %c0_56 = arith.constant 0 : index
      %101 = vector.load %arg10[%c0_54, %c0_55, %c0_56] : memref<1x16x128xf32, #tpu.memory_space<vmem>>, vector<1x16x128xf32>
      %102 = vector.shape_cast %101 : vector<1x16x128xf32> to vector<16x128xf32>
      %103 = vector.shape_cast %100 : vector<16x128xf32> to vector<1x16x128xf32>
      tpu.vector_store %arg10[%c0_54, %c0_55, %c0_56], %103 {strides = array<i32>} : memref<1x16x128xf32, #tpu.memory_space<vmem>>, vector<1x16x128xf32>,
    } else {
    }
    return
  }
  func.func @transform_0(%arg0: i32, %arg1: i32, %arg2: i32) -> (i32, i32, i32, i32) {
    %c0_i32 = arith.constant 0 : i32
    %c0_i32_0 = arith.constant 0 : i32
    return %arg0, %arg2, %arg1, %c0_i32 : i32, i32, i32, i32
  }
  func.func @transform_1(%arg0: i32, %arg1: i32, %arg2: i32) -> (i32, i32, i32, i32) {
    %c0_i32 = arith.constant 0 : i32
    %c0_i32_0 = arith.constant 0 : i32
    return %arg0, %arg2, %arg1, %c0_i32 : i32, i32, i32, i32
  }
  func.func @transform_2(%arg0: i32, %arg1: i32, %arg2: i32) -> (i32, i32) {
    %c0_i32 = arith.constant 0 : i32
    %c0_i32_0 = arith.constant 0 : i32
    %c0_i32_1 = arith.constant 0 : i32
    return %c0_i32, %c0_i32_0 : i32, i32
  }
  func.func @transform_3(%arg0: i32, %arg1: i32, %arg2: i32) -> (i32, i32, i32) {
    %c0_i32 = arith.constant 0 : i32
    %c0_i32_0 = arith.constant 0 : i32
    %c0_i32_1 = arith.constant 0 : i32
    %c0_i32_2 = arith.constant 0 : i32
    return %c0_i32, %c0_i32_0, %c0_i32_1 : i32, i32, i32
  }
  func.func @transform_4(%arg0: i32, %arg1: i32, %arg2: i32) -> (i32, i32) {
    %c0_i32 = arith.constant 0 : i32
    %c0_i32_0 = arith.constant 0 : i32
    %c0_i32_1 = arith.constant 0 : i32
    return %c0_i32, %c0_i32_0 : i32, i32
  }
  func.func @transform_5(%arg0: i32, %arg1: i32, %arg2: i32) -> (i32, i32) {
    %c0_i32 = arith.constant 0 : i32
    %c0_i32_0 = arith.constant 0 : i32
    %c0_i32_1 = arith.constant 0 : i32
    return %c0_i32, %c0_i32_0 : i32, i32
  }
  func.func @transform_6(%arg0: i32, %arg1: i32, %arg2: i32) -> (i32, i32, i32) {
    %c0_i32 = arith.constant 0 : i32
    %c0_i32_0 = arith.constant 0 : i32
    return %arg0, %arg1, %c0_i32 : i32, i32, i32
  }
  func.func @transform_7(%arg0: i32, %arg1: i32, %arg2: i32) -> (i32, i32, i32) {
    %c0_i32 = arith.constant 0 : i32
    %c0_i32_0 = arith.constant 0 : i32
    return %arg0, %arg1, %c0_i32 : i32, i32, i32
  }
}

</mosaic_0001>

<bundles_post_ra>
// kernel: tpu_custom_call.1
= control target key start
LH: loop header
LB: loop body
LE: loop exit
PB: predicated region body
PF: predicated region fallthrough
CT: control target
= control target key end

     0   :  { %s5671_s0 = inlined_call_operand.vmem [shape: f32[2,16,32,3], index: 0, kind: input, shape index: {}]   ;;  %s5672_s1 = inlined_call_operand.vmem [shape: bf16[2,16,32,256], index: 1, kind: input, shape index: {}]   ;;  %s5673_s2 = inlined_call_operand.hbm [shape: bf16[256,256], index: 2, kind: input, shape index: {}]   ;;  %s5674_s3 = inlined_call_operand.hbm [shape: bf16[4,256,256], index: 3, kind: input, shape index: {}]   ;;  %s5675_s4 = inlined_call_operand.hbm [shape: bf16[256,128], index: 4, kind: input, shape index: {}]   ;;  %s5676_s5 = inlined_call_operand.vmem [shape: f32[16,256], index: 5, kind: input, shape index: {}]   ;;  %s5677_s6 = inlined_call_operand.hbm [shape: f32[2,32,256], index: 6, kind: output, shape index: {0}]   ;;  %s5678_s7 = inlined_call_operand.hbm [shape: f32[2,32,128], index: 7, kind: output, shape index: {1}]  }
   0x1   :  { %5692 = sst [smem:[#allocation30_spill]] %s5671_s0 }
   0x2   :  { %5693 = sst [smem:[#allocation31_spill]] %s5672_s1 }
   0x3   :  { %5694 = sst [smem:[#allocation32_spill]] %s5673_s2 }
   0x4   :  { %5695 = sst [smem:[#allocation33_spill]] %s5674_s3 }
   0x5   :  { %5696 = sst [smem:[#allocation34_spill]] %s5677_s6 }
   0x6   :  { %5697 = sst [smem:[#allocation35_spill]] %s5678_s7 }
   0x7   :  { %13 = vsyncpa [#allocation6], 0 }
   0x8   :  { %14 = vsyncpa [#allocation9], 0 }
   0x9   :  { %15 = vsyncpa [#allocation7], 0 }
   0xa   :  { %17 = vsyncpa [#allocation7 + $0x1], 0 }
   0xb   :  { %18 = vsyncpa [#allocation13], 0 }
   0xc   :  { %20 = vsyncpa [#allocation13 + $0x1], 0  ;;  %s4906_s24 = smov 0   ;;  %s4908_s25 = smov 0  }
   0xd   :  { %s4910_s26 = smov 0   ;;  %s4912_s27 = smov 0  }
   0xe   :  { %s4914_s28 = smov 0   ;;  %s4916_s29 = smov 0  }
   0xf   :  { %s4918_s30 = smov 0   ;;  %s4920_s8 = smov 0  }
  0x10   :  { %s4922_s9 = smov 0   ;;  %s4924_s10 = smov 0  }
  0x11   :  { %s4926_s11 = smov 0   ;;  %s4928_s12 = smov 0  }
  0x12 LB: > { %5698 = sst [smem:[#allocation18_spill]] %s4805_s24  ;;  %s5679_s13 = sadd.s32 4294967295, %s4849_s12   ;;  %s4849_s12 = sphi %s4928_s12, %s26_s12   ;;  %s4845_s11 = sphi %s4926_s11, %s5747_s11   ;;  %s4841_s10 = sphi %s4924_s10, %s5746_s10   ;;  %s4837_s9 = sphi %s4922_s9, %s5745_s9   ;;  %s4833_s8 = sphi %s4920_s8, %s5744_s8   ;;  %s4829_s30 = sphi %s4918_s30, %s5743_s30   ;;  %s4825_s29 = sphi %s4916_s29, %s5742_s29   ;;  %s4821_s28 = sphi %s4914_s28, %s5741_s28   ;;  %s4817_s27 = sphi %s4912_s27, %s5740_s27   ;;  %s4813_s26 = sphi %s4910_s26, %s5733_s26   ;;  %s4809_s25 = sphi %s4908_s25, %s5739_s25   ;;  %s4805_s24 = sphi %s4906_s24, %s5738_s24  }
  0x13   : > { %5699 = sst [smem:[#allocation19_spill]] %s4813_s26  ;;  %s3392_s14 = sadd.s32 4294967294, %s4849_s12  }
  0x14   : > { %5700 = sst [smem:[#allocation20_spill]] %s4825_s29  ;;  %s38_s15 = sadd.s32 1, %s4837_s9 }
  0x15   : > { %5701 = sst [smem:[#allocation21_spill]] %s4829_s30  ;;  %s41_s16 = sadd.s32 1, %s4841_s10 }
  0x16   : > { %5702 = sst [smem:[#allocation22_spill]] %s4833_s8  ;;  %p39_p0 = scmp.ge.s32.totalorder %s38_s15, 2 }
  0x17   : > { %s45_s17 = sadd.s32 1, %s4845_s11  ;;  %p63_p1 = scmp.ne.s32.totalorder %s4821_s28, %s4817_s27 }
  0x18   : > { %s5749_s15 = smov (%p39_p0, %s38_s15), 0  ;;  %s5751_s16 = smov (!%p39_p0, %s41_s16), %s4841_s10 }
  0x19   : > { %5703 = sst [smem:[#allocation23_spill]] %s5749_s15  ;;  %s50_s19 = ssub.s32 %s4837_s9, %s5749_s15 }
  0x1a   : > { %p64_p2 = scmp.eq.s32.totalorder %s4849_s12, 0  ;;  %p43_p3 = scmp.ge.s32.totalorder %s5751_s16, 2 }
  0x1b   : > { %s198_s20 = sadd.s32 1, %s4813_s26  ;;  %p208_p5 = scmp.ne.s32.totalorder %s4813_s26, %s4809_s25 }
  0x1c   : > { %p4981_p4 = por %p64_p2, %p63_p1  ;;  %s5753_s16 = smov (%p43_p3, %s5751_s16), 0 }
  0x1d   : > { %5705 = sst [smem:[#allocation24_spill]] %s5753_s16  ;;  %s5755_s17 = smov (!%p43_p3, %s45_s17), %s4845_s11 }
  0x1e   : > { %s52_s22 = ssub.s32 %s4841_s10, %s5753_s16  ;;  %p209_p6 = scmp.eq.s32.totalorder %s5679_s13, 7 }
  0x1f   : > { %p47_p7 = scmp.ge.s32.totalorder %s5755_s17, 2  ;;  %p214_p8 = scmp.ne.s32.totalorder %s4809_s25, %s4805_s24 }
  0x20   : > { %p4996_p9 = por %p209_p6, %p208_p5  ;;  %p215_p10 = scmp.eq.s32.totalorder %s3392_s14, 7 }
  0x21   : > { %s5757_s17 = smov (%p47_p7, %s5755_s17), 0  ;;  %p3393_p12 = scmp.ge.s32.totalorder %s4849_s12, 1 }
  0x22   : > { %s5706_s23 = scalar_select %p4996_p9, 1, 0 }
  0x23   : > { %5708 = sst [smem:[#allocation26_spill]] %s5757_s17  ;;  %p5002_p11 = por %p215_p10, %p214_p8 }
  0x24   : > { %5707 = sst [smem:[#allocation25_spill]] %s5706_s23  ;;  %s49_s13 = ssub.s32 %s4845_s11, %s5757_s17 }
  0x25   : > { %s5709_s18 = scalar_select %p5002_p11, 1, 0 }
  0x26   : > { %p250_p13 = scmp.lt.s32.totalorder %s4849_s12, 9  ;;  %s51_s16 = sor.u32 %s50_s19, %s49_s13 }
  0x27   : > { %5710 = sst [smem:[#allocation27_spill]] %s5709_s18  ;;  %s195_s15 = sor.u32 %s52_s22, %s49_s13 }
  0x28   : > { %s53_s7 = sor.u32 %s52_s22, %s51_s16  ;;  %p196_p0 = scmp.eq.s32.totalorder %s195_s15, 0 }
  0x29   : > { %p54_p1 = scmp.eq.s32.totalorder %s53_s7, 0  ;;  %p5010_p2 = pnand %p3393_p12, %p250_p13 }
  0x2a   : > { %s5015_s14 = scalar_select %p196_p0, %s4813_s26, %s198_s20  }
  0x2b   : > { %s5713_s6 = sadd.s32 1, %s4821_s28  ;;  %p4419_p3 = pneg %p5010_p2 }
  0x2c   : > { %5712 = sst [smem:[#allocation28_spill]] %s5015_s14  ;;  %s5715_s18 = sadd.s32 4294967295, %s4849_s12  }
  0x2d   : > { %s5020_s23 = scalar_select %p54_p1, %s4821_s28, %s5713_s6  }
  0x2e   : > { %p5026_p5 = scmp.eq.s32.totalorder %s5715_s18, 0  ;;  %s5717_s3 = sld [smem:[#allocation33_spill]] }
  0x2f   : > { %5714 = sst [smem:[#allocation29_spill]] %s5020_s23  ;;  %s4851_s6 = smov [#allocation8]  }
  0x30   : > { %p5035_p6 = pnand %p5026_p5, %p4419_p3  ;;  %s277_s19 = sshll.u32 %s4851_s6, 4  ;;  %s278_s19 = int_to_ptr.vmem [resolvable:$true] %s277_s19 }
  0x31   : > { %s4852_s18 = smov 128   ;;  %s4853_s20 = smov 8  }
  0x32   : > { %s5719_s2 = sld [smem:[#allocation32_spill]]  ;;  %s289_s8 = sshll.u32 %s5675_s4, 4  ;;  %s290_s8 = int_to_ptr.hbm [resolvable:$true] %s289_s8 }
  0x33   : > { %s4855_s6 = smov [#allocation10]   ;;  %s4856_s29 = smov 64  }
  0x34   : > { %s275_s7 = sshll.u32 %s5717_s3, 4  ;;  %s4854_s3 = smov [#allocation5]   ;;  %s276_s7 = int_to_ptr.hbm [resolvable:$true] %s275_s7 }
  0x35   : > { %4425 = dma.hbm_to_vmem [thread:$0]  (!%p5035_p6), %s276_s7, 16384, %s278_s19, [#allocation9], %s4852_s18, %s4852_s18, %s4853_s20  }
  0x36   : > { %s263_s23 = sshll.u32 %s4854_s3, 4  ;;  %s291_s30 = sshll.u32 %s4855_s6, 4  ;;  %s264_s23 = int_to_ptr.vmem [resolvable:$true] %s263_s23  ;;  %s292_s30 = int_to_ptr.vmem [resolvable:$true] %s291_s30 }
  0x37   : > { %s4857_s7 = smov 4   ;;  %p3397_p7 = scmp.ge.s32.totalorder %s4849_s12, 8 }
  0x38   : > { %s261_s15 = sshll.u32 %s5719_s2, 4  ;;  %s262_s15 = int_to_ptr.hbm [resolvable:$true] %s261_s15 }
  0x39   : > { %4422 = dma.hbm_to_vmem [thread:$0]  (!%p5035_p6), %s262_s15, 4096, %s264_s23, [#allocation6], %s4852_s18, %s4852_s18, %s4853_s20  }
  0x3a   : > { %4428 = dma.hbm_to_vmem [thread:$0]  (!%p5035_p6), %s290_s8, 2048, %s292_s30, [#allocation9], %s4856_s29, %s4856_s29, %s4857_s7  }
  0x3b   : > { %304 = sbr.rel (%p3397_p7) target bundleno = 118 (0x76), region = 32 }
  0x40   : > { %307 = sbr.rel (!%p4981_p4) target bundleno = 91 (0x5b), region = 36  ;;  %s309_s3 = sand.u32 (%p4981_p4), 1, %s4821_s28  }
  0x41   : > { %s3400_s26 = sshll.u32 (%p4981_p4), %s4841_s10, 1  ;;  %s4207_s23 = sshll.u32 (%p4981_p4), %s4837_s9, 5 }
  0x42   : > { %s3398_s14 = sshll.u32 (%p4981_p4), %s309_s3, 7  ;;  %s315_s19 = sadd.s32 (%p4981_p4), %s4207_s23, %s3400_s26 }
  0x43   : > { %s3402_s18 = sshll.u32 (%p4981_p4), %s4845_s11, 6  ;;  %s5720_s0 = sld [smem:[#allocation30_spill]] (%p4981_p4) }
  0x44   : > { %s317_s20 = sadd.s32 (%p4981_p4), %s3402_s18, %s315_s19  ;;  %s311_s8 = scalar_lea.vmem (%p4981_p4), [#allocation3], %s3398_s14 }
  0x45   : > { %s3403_s22 = sshll.u32 %s317_s20, 3 }
  0x49   : > { %s5061_s30 = scalar_lea.vmem %s5720_s0, %s3403_s22 }
  0x4a   : > { %v378_v0 = vld [vmem:[%s5061_s30] sm:$0xff]  ;;  %v380_v1 = vld [vmem:[%s5061_s30 + $0x8] sm:$0xff] }
  0x4b   : > { %v382_v2 = vld [vmem:[%s5061_s30 + $0x20] sm:$0xff]  ;;  %379 = vst [vmem:[%s311_s8] sm:$0xff] %v378_v0  ;;  %v384_v3 = vld [vmem:[%s5061_s30 + $0x28] sm:$0xff] }
  0x4c   : > { %381 = vst [vmem:[%s311_s8 + $0x8] sm:$0xff] %v380_v1  ;;  %v386_v4 = vld [vmem:[%s5061_s30 + $0x40] sm:$0xff]  ;;  %v388_v5 = vld [vmem:[%s5061_s30 + $0x48] sm:$0xff] }
  0x4d   : > { %383 = vst [vmem:[%s311_s8 + $0x10] sm:$0xff] %v382_v2  ;;  %v390_v6 = vld [vmem:[%s5061_s30 + $0x60] sm:$0xff]  ;;  %v392_v7 = vld [vmem:[%s5061_s30 + $0x68] sm:$0xff] }
  0x4e   : > { %385 = vst [vmem:[%s311_s8 + $0x18] sm:$0xff] %v384_v3  ;;  %v394_v8 = vld [vmem:[%s5061_s30 + $0x80] sm:$0xff]  ;;  %v396_v9 = vld [vmem:[%s5061_s30 + $0x88] sm:$0xff] }
  0x4f   : > { %387 = vst [vmem:[%s311_s8 + $0x20] sm:$0xff] %v386_v4  ;;  %v398_v10 = vld [vmem:[%s5061_s30 + $0xa0] sm:$0xff]  ;;  %v400_v11 = vld [vmem:[%s5061_s30 + $0xa8] sm:$0xff] }
  0x50   : > { %389 = vst [vmem:[%s311_s8 + $0x28] sm:$0xff] %v388_v5  ;;  %v402_v12 = vld [vmem:[%s5061_s30 + $0xc0] sm:$0xff]  ;;  %v404_v13 = vld [vmem:[%s5061_s30 + $0xc8] sm:$0xff] }
  0x51   : > { %391 = vst [vmem:[%s311_s8 + $0x30] sm:$0xff] %v390_v6  ;;  %v406_v14 = vld [vmem:[%s5061_s30 + $0xe0] sm:$0xff]  ;;  %v408_v15 = vld [vmem:[%s5061_s30 + $0xe8] sm:$0xff] }
  0x52   : > { %393 = vst [vmem:[%s311_s8 + $0x38] sm:$0xff] %v392_v7 }
  0x53   : > { %395 = vst [vmem:[%s311_s8 + $0x40] sm:$0xff] %v394_v8 }
  0x54   : > { %397 = vst [vmem:[%s311_s8 + $0x48] sm:$0xff] %v396_v9 }
  0x55   : > { %399 = vst [vmem:[%s311_s8 + $0x50] sm:$0xff] %v398_v10 }
  0x56   : > { %401 = vst [vmem:[%s311_s8 + $0x58] sm:$0xff] %v400_v11 }
  0x57   : > { %403 = vst [vmem:[%s311_s8 + $0x60] sm:$0xff] %v402_v12 }
  0x58   : > { %405 = vst [vmem:[%s311_s8 + $0x68] sm:$0xff] %v404_v13 }
  0x59   : > { %407 = vst [vmem:[%s311_s8 + $0x70] sm:$0xff] %v406_v14 }
  0x5a   : > { %409 = vst [vmem:[%s311_s8 + $0x78] sm:$0xff] %v408_v15 }
  0x5b PF: > { %415 = sbr.rel (!%p4981_p4) target bundleno = 118 (0x76), region = 74  ;;  %s417_s13 = sand.u32 (%p4981_p4), 1, %s4821_s28  }
  0x5c   : > { %s4208_s15 = sshll.u32 (%p4981_p4), %s4841_s10, 2  ;;  %s4209_s6 = sshll.u32 (%p4981_p4), %s4837_s9, 6 }
  0x5d   : > { %s3404_s7 = sshll.u32 (%p4981_p4), %s417_s13, 7  ;;  %s424_s3 = sadd.s32 (%p4981_p4), %s4209_s6, %s4208_s15 }
  0x5e   : > { %s3409_s26 = sshll.u32 (%p4981_p4), %s4845_s11, 7  ;;  %s5721_s1 = sld [smem:[#allocation31_spill]] (%p4981_p4) }
  0x5f   : > { %s426_s23 = sadd.s32 (%p4981_p4), %s3409_s26, %s424_s3  ;;  %s419_s21 = scalar_lea.vmem (%p4981_p4), [#allocation4], %s3404_s7 }
  0x60   : > { %s3410_s14 = sshll.u32 %s426_s23, 2 }
  0x64   : > { %s5088_s20 = scalar_lea.vmem %s5721_s1, %s3410_s14 }
  0x65   : > { %v487_v16 = vld [vmem:[%s5088_s20] sm:$0xff]  ;;  %v489_v17 = vld [vmem:[%s5088_s20 + $0x8] sm:$0xff] }
  0x66   : > { %v491_v18 = vld [vmem:[%s5088_s20 + $0x20] sm:$0xff]  ;;  %488 = vst [vmem:[%s419_s21] sm:$0xff] %v487_v16  ;;  %v493_v19 = vld [vmem:[%s5088_s20 + $0x28] sm:$0xff] }
  0x67   : > { %490 = vst [vmem:[%s419_s21 + $0x8] sm:$0xff] %v489_v17  ;;  %v495_v20 = vld [vmem:[%s5088_s20 + $0x40] sm:$0xff]  ;;  %v497_v21 = vld [vmem:[%s5088_s20 + $0x48] sm:$0xff] }
  0x68   : > { %492 = vst [vmem:[%s419_s21 + $0x10] sm:$0xff] %v491_v18  ;;  %v499_v22 = vld [vmem:[%s5088_s20 + $0x60] sm:$0xff]  ;;  %v501_v23 = vld [vmem:[%s5088_s20 + $0x68] sm:$0xff] }
  0x69   : > { %494 = vst [vmem:[%s419_s21 + $0x18] sm:$0xff] %v493_v19  ;;  %v503_v24 = vld [vmem:[%s5088_s20 + $0x80] sm:$0xff]  ;;  %v505_v25 = vld [vmem:[%s5088_s20 + $0x88] sm:$0xff] }
  0x6a   : > { %496 = vst [vmem:[%s419_s21 + $0x20] sm:$0xff] %v495_v20  ;;  %v507_v26 = vld [vmem:[%s5088_s20 + $0xa0] sm:$0xff]  ;;  %v509_v27 = vld [vmem:[%s5088_s20 + $0xa8] sm:$0xff] }
  0x6b   : > { %498 = vst [vmem:[%s419_s21 + $0x28] sm:$0xff] %v497_v21  ;;  %v511_v28 = vld [vmem:[%s5088_s20 + $0xc0] sm:$0xff]  ;;  %v513_v29 = vld [vmem:[%s5088_s20 + $0xc8] sm:$0xff] }
  0x6c   : > { %500 = vst [vmem:[%s419_s21 + $0x30] sm:$0xff] %v499_v22  ;;  %v515_v30 = vld [vmem:[%s5088_s20 + $0xe0] sm:$0xff]  ;;  %v517_v31 = vld [vmem:[%s5088_s20 + $0xe8] sm:$0xff] }
  0x6d   : > { %502 = vst [vmem:[%s419_s21 + $0x38] sm:$0xff] %v501_v23 }
  0x6e   : > { %504 = vst [vmem:[%s419_s21 + $0x40] sm:$0xff] %v503_v24 }
  0x6f   : > { %506 = vst [vmem:[%s419_s21 + $0x48] sm:$0xff] %v505_v25 }
  0x70   : > { %508 = vst [vmem:[%s419_s21 + $0x50] sm:$0xff] %v507_v26 }
  0x71   : > { %510 = vst [vmem:[%s419_s21 + $0x58] sm:$0xff] %v509_v27 }
  0x72   : > { %512 = vst [vmem:[%s419_s21 + $0x60] sm:$0xff] %v511_v28 }
  0x73   : > { %514 = vst [vmem:[%s419_s21 + $0x68] sm:$0xff] %v513_v29 }
  0x74   : > { %516 = vst [vmem:[%s419_s21 + $0x70] sm:$0xff] %v515_v30 }
  0x75   : > { %518 = vst [vmem:[%s419_s21 + $0x78] sm:$0xff] %v517_v31 }
  0x76 PF: > { %527 = sbr.rel (%p5010_p2) target bundleno = 1247 (0x4df), region = 112  ;;  %s530_s22 = sand.u32 (!%p5010_p2), 1, %s4817_s27  }
  0x77   : > { %s3412_s16 = sshll.u32 (!%p5010_p2), %s530_s22, 7 }
  0x78   : > { %s5109_s29 = scalar_lea.vmem (!%p5010_p2), [#allocation3], %s3412_s16  ;;  %s5111_s30 = scalar_lea.vmem (!%p5010_p2), [#allocation4], %s3412_s16 }
  0x7b   : > { %4788 = dma.done.wait (%p5026_p5), [#allocation6], 4096  }
  0x7c   : > { %4790 = vsyncadd (%p5026_p5), [#allocation6], 4294963200 }
  0x7d   : > { %4792 = dma.done.wait (%p5026_p5), [#allocation9], 18432  }
  0x7e   : > { %4794 = vsyncadd (%p5026_p5), [#allocation9], 4294948864  ;;  %s5122_s24 = sand.u32 1, %s4809_s25   ;;  %v4858_v32 = vmov 1   ;;  %v4859_v33 = vmov 0   ;;  %v4860_v34 = vmov 2  }
  0x7f   : > { %4555 = vset.pattern.permute.xlu1 %v4858_v32  ;;  %s3417_s27 = sshll.u32 %s5122_s24, 5  ;;  %s3418_s8 = sshll.u32 %s5122_s24, 4  ;;  %4554 = vset.pattern.permute.xlu0 %v4859_v33  ;;  %v3543_v35 = vld [vmem:[#allocation5 + $0x70] sm:$0xf]  ;;  %v4241_v36 = vld [vmem:[#allocation5 + $0x74] sm:$0xf0] }
  0x80   : > { %4556 = vset.pattern.permute.xlu2 %v4860_v34  ;;  %v3607_v37 = vld [vmem:[#allocation5 + $0xf0] sm:$0xf]  ;;  %v3544_v38 = vor.u32 %v4241_v36, %v3543_v35  ;;  %v4257_v39 = vld [vmem:[#allocation5 + $0xf4] sm:$0xf0]  ;;  %v4240_v40 = vld [vmem:[#allocation5 + $0x74] sm:$0xf] }
  0x81   : > { %v3545_v41 = vld [vmem:[#allocation5 + $0x78] sm:$0xf0]  ;;  %v3608_v42 = vor.u32 %v4257_v39, %v3607_v37  ;;  %v4256_v44 = vld [vmem:[#allocation5 + $0xf4] sm:$0xf]  ;;  %v598_v46 = vld [vmem:[%s5109_s29] sm:$0xff]  ;;  %s5571_s18 = scalar_lea.vmem [#allocation11], %s3417_s27 }
  0x82   : > { %v3548_v43 = vor.u32 %v4240_v40, %v3545_v41  ;;  %v3609_v45 = vld [vmem:[#allocation5 + $0xf8] sm:$0xf0]  ;;  %1290 = vmatpush.bf16.msra.mxu0 %v3544_v38  ;;  %783 = vperm.xlu1 %4555, %v598_v46   ;;  %v3535_v48 = vld [vmem:[#allocation5 + $0x60] sm:$0xf]  ;;  %v4239_v49 = vld [vmem:[#allocation5 + $0x64] sm:$0xf0] }
  0x83   : > { %v3612_v47 = vor.u32 %v4256_v44, %v3609_v45  ;;  %v3599_v50 = vld [vmem:[#allocation5 + $0xe0] sm:$0xf]  ;;  %1339 = vmatpush.bf16.msra.mxu1 %v3608_v42  ;;  %v3536_v51 = vor.u32 %v4239_v49, %v3535_v48  ;;  %v4255_v52 = vld [vmem:[#allocation5 + $0xe4] sm:$0xf0]  ;;  %v4238_v53 = vld [vmem:[#allocation5 + $0x64] sm:$0xf]  ;;  %665 = vperm.xlu0 %4554, %v598_v46  }
  0x84   : > { %1388 = vmatpush.bf16.msra.mxu2 %v3548_v43  ;;  %v3537_v54 = vld [vmem:[#allocation5 + $0x68] sm:$0xf0]  ;;  %v3600_v55 = vor.u32 %v4255_v52, %v3599_v50  ;;  %v4254_v57 = vld [vmem:[#allocation5 + $0xe4] sm:$0xf]  ;;  %v3527_v59 = vld [vmem:[#allocation5 + $0x50] sm:$0xf]  ;;  %918 = vperm.xlu2 %4556, %v598_v46  }
  0x85   : > { %1437 = vmatpush.bf16.msra.mxu3 %v3612_v47  ;;  %v3540_v56 = vor.u32 %v4238_v53, %v3537_v54  ;;  %v3601_v58 = vld [vmem:[#allocation5 + $0xe8] sm:$0xf0]  ;;  %v4237_v61 = vld [vmem:[#allocation5 + $0x54] sm:$0xf0]  ;;  %v3591_v62 = vld [vmem:[#allocation5 + $0xd0] sm:$0xf] }
  0x86   : > { %v3604_v60 = vor.u32 %v4254_v57, %v3601_v58  ;;  %v4253_v63 = vld [vmem:[#allocation5 + $0xd4] sm:$0xf0]  ;;  %1291 = vmatpush.bf16.msra.mxu0 %v3536_v51  ;;  %v3528_v0 = vor.u32 %v4237_v61, %v3527_v59  ;;  %v4236_v1 = vld [vmem:[#allocation5 + $0x54] sm:$0xf]  ;;  %v3529_v2 = vld [vmem:[#allocation5 + $0x58] sm:$0xf0] }
  0x87   : > { %v4252_v3 = vld [vmem:[#allocation5 + $0xd4] sm:$0xf]  ;;  %1340 = vmatpush.bf16.msra.mxu1 %v3600_v55  ;;  %v3592_v4 = vor.u32 %v4253_v63, %v3591_v62  ;;  %v3532_v5 = vor.u32 %v4236_v1, %v3529_v2  ;;  %v3593_v6 = vld [vmem:[#allocation5 + $0xd8] sm:$0xf0]  ;;  %v599_v7 = vld [vmem:[%s5109_s29 + $0x8] sm:$0xff]  ;;  %s5575_s20 = scalar_lea.vmem [#allocation12], %s3418_s8 }
  0x88   : > { %1389 = vmatpush.bf16.msra.mxu2 %v3540_v56  ;;  %v3519_v8 = vld [vmem:[#allocation5 + $0x40] sm:$0xf]  ;;  %v3596_v9 = vor.u32 %v4252_v3, %v3593_v6  ;;  %v4235_v10 = vld [vmem:[#allocation5 + $0x44] sm:$0xf0]  ;;  %v4234_v13 = vld [vmem:[#allocation5 + $0x44] sm:$0xf] }
  0x89   : > { %1438 = vmatpush.bf16.msra.mxu3 %v3604_v60  ;;  %v3583_v11 = vld [vmem:[#allocation5 + $0xc0] sm:$0xf]  ;;  %v4251_v12 = vld [vmem:[#allocation5 + $0xc4] sm:$0xf0]  ;;  %v3521_v14 = vld [vmem:[#allocation5 + $0x48] sm:$0xf0]  ;;  %v3520_v16 = vor.u32 %v4235_v10, %v3519_v8 }
  0x8a   : > { %v4250_v15 = vld [vmem:[#allocation5 + $0xc4] sm:$0xf]  ;;  %1292 = vmatpush.bf16.msra.mxu0 %v3528_v0  ;;  %787 = vperm.xlu1 %4555, %v599_v7   ;;  %v3585_v17 = vld [vmem:[#allocation5 + $0xc8] sm:$0xf0]  ;;  %v3584_v18 = vor.u32 %v4251_v12, %v3583_v11  ;;  %v3524_v19 = vor.u32 %v4234_v13, %v3521_v14  ;;  %v3511_v20 = vld [vmem:[#allocation5 + $0x30] sm:$0xf] }
  0x8b   : > { %1341 = vmatpush.bf16.msra.mxu1 %v3592_v4  ;;  %v4233_v21 = vld [vmem:[#allocation5 + $0x34] sm:$0xf0]  ;;  %v3575_v22 = vld [vmem:[#allocation5 + $0xb0] sm:$0xf]  ;;  %670 = vperm.xlu0 %4554, %v599_v7   ;;  %v3588_v23 = vor.u32 %v4250_v15, %v3585_v17  ;;  %v4232_v25 = vld [vmem:[#allocation5 + $0x34] sm:$0xf] }
  0x8c   : > { %1390 = vmatpush.bf16.msra.mxu2 %v3532_v5  ;;  %v4249_v24 = vld [vmem:[#allocation5 + $0xb4] sm:$0xf0]  ;;  %v3513_v26 = vld [vmem:[#allocation5 + $0x38] sm:$0xf0]  ;;  %v4248_v27 = vld [vmem:[#allocation5 + $0xb4] sm:$0xf]  ;;  %922 = vperm.xlu2 %4556, %v599_v7   ;;  %v3512_v29 = vor.u32 %v4233_v21, %v3511_v20 }
  0x8d   : > { %1439 = vmatpush.bf16.msra.mxu3 %v3596_v9  ;;  %v3577_v28 = vld [vmem:[#allocation5 + $0xb8] sm:$0xf0]  ;;  %v3576_v30 = vor.u32 %v4249_v24, %v3575_v22  ;;  %v3516_v31 = vor.u32 %v4232_v25, %v3513_v26  ;;  %v3503_v35 = vld [vmem:[#allocation5 + $0x20] sm:$0xf]  ;;  %v4231_v36 = vld [vmem:[#allocation5 + $0x24] sm:$0xf0] }
  0x8e   : > { %1293 = vmatpush.bf16.msra.mxu0 %v3520_v16  ;;  %v3567_v37 = vld [vmem:[#allocation5 + $0xa0] sm:$0xf]  ;;  %v3580_v38 = vor.u32 %v4248_v27, %v3577_v28  ;;  %v4247_v39 = vld [vmem:[#allocation5 + $0xa4] sm:$0xf0]  ;;  %v4230_v40 = vld [vmem:[#allocation5 + $0x24] sm:$0xf]  ;;  %v3504_v46 = vor.u32 %v4231_v36, %v3503_v35 }
  0x8f   : > { %1342 = vmatpush.bf16.msra.mxu1 %v3584_v18  ;;  %v3505_v41 = vld [vmem:[#allocation5 + $0x28] sm:$0xf0]  ;;  %v5132_v42 = vld [vmem:[%s5109_s29 + $0x18] sm:$0xff]  ;;  %v4246_v43 = vld [vmem:[#allocation5 + $0xa4] sm:$0xf]  ;;  %v3568_v47 = vor.u32 %v4247_v39, %v3567_v37  ;;  %s5722_s21 = sld [smem:[#allocation20_spill]] }
  0x90   : > { %1391 = vmatpush.bf16.msra.mxu2 %v3524_v19  ;;  %v3569_v44 = vld [vmem:[#allocation5 + $0xa8] sm:$0xf0]  ;;  %v600_v45 = vld [vmem:[%s5109_s29 + $0x10] sm:$0xff]  ;;  %v3508_v48 = vor.u32 %v4230_v40, %v3505_v41  ;;  %v4229_v50 = vld [vmem:[#allocation5 + $0x14] sm:$0xf0] }
  0x91   : > { %1440 = vmatpush.bf16.msra.mxu3 %v3588_v23  ;;  %v3495_v49 = vld [vmem:[#allocation5 + $0x10] sm:$0xf]  ;;  %v3572_v52 = vor.u32 %v4246_v43, %v3569_v44  ;;  %v4245_v53 = vld [vmem:[#allocation5 + $0x94] sm:$0xf0]  ;;  %v4228_v54 = vld [vmem:[#allocation5 + $0x14] sm:$0xf] }
  0x92   : > { %1294 = vmatpush.bf16.msra.mxu0 %v3512_v29  ;;  %4557 = vset.pattern.permute.xlu1 %v4859_v33  ;;  %v3559_v51 = vld [vmem:[#allocation5 + $0x90] sm:$0xf]  ;;  %v3497_v55 = vld [vmem:[#allocation5 + $0x18] sm:$0xf0]  ;;  %v4244_v56 = vld [vmem:[#allocation5 + $0x94] sm:$0xf]  ;;  %v3496_v58 = vor.u32 %v4229_v50, %v3495_v49 }
  0x93   : > { %1343 = vmatpush.bf16.msra.mxu1 %v3576_v30  ;;  %680 = vperm.xlu1 %4557, %v5132_v42   ;;  %v3561_v57 = vld [vmem:[#allocation5 + $0x98] sm:$0xf0]  ;;  %v3487_v59 = vld [vmem:[#allocation5] sm:$0xf]  ;;  %v3560_v60 = vor.u32 %v4245_v53, %v3559_v51  ;;  %v3500_v61 = vor.u32 %v4228_v54, %v3497_v55  ;;  %v4227_v62 = vld [vmem:[#allocation5 + $0x4] sm:$0xf0] }
  0x94   : > { %1392 = vmatpush.bf16.msra.mxu2 %v3516_v31  ;;  %675 = vperm.xlu0 %4554, %v600_v45   ;;  %v3551_v63 = vld [vmem:[#allocation5 + $0x80] sm:$0xf]  ;;  %v4243_v0 = vld [vmem:[#allocation5 + $0x84] sm:$0xf0]  ;;  %v3564_v1 = vor.u32 %v4244_v56, %v3561_v57  ;;  %v4226_v2 = vld [vmem:[#allocation5 + $0x4] sm:$0xf]  ;;  %v3488_v8 = vor.u32 %v4227_v62, %v3487_v59 }
  0x95   : > { %1441 = vmatpush.bf16.msra.mxu3 %v3580_v38  ;;  %4558 = vset.pattern.permute.xlu2 %v4858_v32  ;;  %v3489_v3 = vld [vmem:[#allocation5 + $0x8] sm:$0xf0]  ;;  %v4242_v4 = vld [vmem:[#allocation5 + $0x84] sm:$0xf]  ;;  %v4272_v6 = vld [vmem:[#allocation8 + $0x74] sm:$0xf]  ;;  %v3552_v11 = vor.u32 %v4243_v0, %v3551_v63 }
  0x96   : > { %1295 = vmatpush.bf16.msra.mxu0 %v3504_v46  ;;  %791 = vperm.xlu2 %4558, %v600_v45   ;;  %v3553_v5 = vld [vmem:[#allocation5 + $0x88] sm:$0xf0]  ;;  %v3675_v7 = vld [vmem:[#allocation8 + $0x78] sm:$0xf0]  ;;  %v3423_v9 = vld [vmem:[%s5111_s30] sm:$0xf]  ;;  %v3492_v12 = vor.u32 %v4226_v2, %v3489_v3 }
  0x97   : > { %1344 = vmatpush.bf16.msra.mxu1 %v3568_v47  ;;  %v4211_v10 = vld [vmem:[%s5111_s30 + $0x4] sm:$0xf0]  ;;  %v4210_v13 = vld [vmem:[%s5111_s30 + $0x4] sm:$0xf]  ;;  %v3425_v14 = vld [vmem:[%s5111_s30 + $0x8] sm:$0xf0]  ;;  %v3556_v15 = vor.u32 %v4242_v4, %v3553_v5  ;;  %v3678_v16 = vor.u32 %v4272_v6, %v3675_v7 }
  0x98   : > { %1393 = vmatpush.bf16.msra.mxu2 %v3508_v48  ;;  %v4288_v17 = vld [vmem:[#allocation8 + $0xf4] sm:$0xf]  ;;  %v3424_v18 = vor.u32 %v4211_v10, %v3423_v9  ;;  %v3739_v19 = vld [vmem:[#allocation8 + $0xf8] sm:$0xf0]  ;;  %v3673_v20 = vld [vmem:[#allocation8 + $0x70] sm:$0xf]  ;;  %v3428_v22 = vor.u32 %v4210_v13, %v3425_v14 }
  0x99   : > { %1442 = vmatpush.bf16.msra.mxu3 %v3572_v52  ;;  %v4273_v21 = vld [vmem:[#allocation8 + $0x74] sm:$0xf0]  ;;  %v3737_v23 = vld [vmem:[#allocation8 + $0xf0] sm:$0xf]  ;;  %v3742_v25 = vor.u32 %v4288_v17, %v3739_v19  ;;  %v602_v28 = vld [vmem:[%s5109_s29 + $0x20] sm:$0xff]  ;;  %p3871_p4 = scmp.ne.s32.totalorder %s5722_s21, 0 }
  0x9a   : > { %1296 = vmatpush.bf16.msra.mxu0 %v3496_v58  ;;  %v4289_v24 = vld [vmem:[#allocation8 + $0xf4] sm:$0xf0]  ;;  %v3674_v26 = vor.u32 %v4273_v21, %v3673_v20  ;;  %v4270_v29 = vld [vmem:[#allocation8 + $0x64] sm:$0xf]  ;;  %v3667_v30 = vld [vmem:[#allocation8 + $0x68] sm:$0xf0] }
  0x9b   : > { %1345 = vmatpush.bf16.msra.mxu1 %v3560_v60  ;;  %4560 = vset.pattern.permute.xlu1 %v4860_v34  ;;  %v3738_v27 = vor.u32 %v4289_v24, %v3737_v23  ;;  %v4286_v31 = vld [vmem:[#allocation8 + $0xe4] sm:$0xf]  ;;  %v3670_v35 = vor.u32 %v4270_v29, %v3667_v30  ;;  %v3731_v36 = vld [vmem:[#allocation8 + $0xe8] sm:$0xf0]  ;;  %v3431_v39 = vld [vmem:[%s5111_s30 + $0x10] sm:$0xf] }
  0x9c   : > { %1394 = vmatpush.bf16.msra.mxu2 %v3500_v61  ;;  %4559 = vset.pattern.permute.xlu0 %v4858_v32  ;;  %v3734_v37 = vor.u32 %v4286_v31, %v3731_v36  ;;  %v603_v38 = vld [vmem:[%s5109_s29 + $0x28] sm:$0xff]  ;;  %v4213_v40 = vld [vmem:[%s5111_s30 + $0x14] sm:$0xf0]  ;;  %v3665_v41 = vld [vmem:[#allocation8 + $0x60] sm:$0xf] }
  0x9d   : > { %1443 = vmatpush.bf16.msra.mxu3 %v3564_v1  ;;  %926 = vperm.xlu1 %4560, %v600_v45   ;;  %v3729_v43 = vld [vmem:[#allocation8 + $0xe0] sm:$0xf]  ;;  %v4212_v44 = vld [vmem:[%s5111_s30 + $0x14] sm:$0xf]  ;;  %v3433_v45 = vld [vmem:[%s5111_s30 + $0x18] sm:$0xf0]  ;;  %v3432_v49 = vor.u32 %v4213_v40, %v3431_v39 }
  0x9e   : > { %795 = vperm.xlu0 %4559, %v5132_v42   ;;  %1297 = vmatpush.bf16.msra.mxu0 %v3488_v8  ;;  %v4287_v47 = vld [vmem:[#allocation8 + $0xe4] sm:$0xf0]  ;;  %v3436_v50 = vor.u32 %v4212_v44, %v3433_v45  ;;  %v604_v51 = vld [vmem:[%s5109_s29 + $0x30] sm:$0xff]  ;;  %v3659_v53 = vld [vmem:[#allocation8 + $0x58] sm:$0xf0] }
  0x9f   : > { %1346 = vmatpush.bf16.msra.mxu1 %v3552_v11  ;;  %4561 = vset.pattern.permute.xlu2 %v4860_v34  ;;  %v3730_v48 = vor.u32 %v4287_v47, %v3729_v43  ;;  %v4268_v52 = vld [vmem:[#allocation8 + $0x54] sm:$0xf]  ;;  %v3723_v56 = vld [vmem:[#allocation8 + $0xd8] sm:$0xf0]  ;;  %v3657_v57 = vld [vmem:[#allocation8 + $0x50] sm:$0xf] }
  0xa0   : > { %1395 = vmatpush.bf16.msra.mxu2 %v3492_v12  ;;  %930 = vperm.xlu2 %4561, %v5132_v42   ;;  %v4271_v42 = vld [vmem:[#allocation8 + $0x64] sm:$0xf0]  ;;  %v4284_v54 = vld [vmem:[#allocation8 + $0xd4] sm:$0xf]  ;;  %v3662_v55 = vor.u32 %v4268_v52, %v3659_v53  ;;  %v4269_v58 = vld [vmem:[#allocation8 + $0x54] sm:$0xf0] }
  0xa1   : > { %1444 = vmatpush.bf16.msra.mxu3 %v3556_v15  ;;  %1298 = vmatmul.bf16.vlgmr.msra.gmra.mxu0 %v3424_v18  ;;  %v3666_v46 = vor.u32 %v4271_v42, %v3665_v41  ;;  %v3726_v59 = vor.u32 %v4284_v54, %v3723_v56  ;;  %v3658_v60 = vor.u32 %v4269_v58, %v3657_v57  ;;  %v3439_v61 = vld [vmem:[%s5111_s30 + $0x20] sm:$0xf]  ;;  %v4215_v62 = vld [vmem:[%s5111_s30 + $0x24] sm:$0xf0]  ;;  %v4214_v63 = vld [vmem:[%s5111_s30 + $0x24] sm:$0xf] }
  0xa2   : > { %1347 = vmatmul.bf16.vlgmr.msra.gmra.mxu1 %v3428_v22  ;;  %1772 = vmatpush.bf16.msrb.mxu0 %v3674_v26  ;;  %v3441_v0 = vld [vmem:[%s5111_s30 + $0x28] sm:$0xf0]  ;;  %v3440_v1 = vor.u32 %v4215_v62, %v3439_v61  ;;  %v605_v2 = vld [vmem:[%s5109_s29 + $0x38] sm:$0xff]  ;;  %v3721_v3 = vld [vmem:[#allocation8 + $0xd0] sm:$0xf] }
  0xa3   : > { %1396 = vmatmul.bf16.vlgmr.msra.gmra.mxu2 %v3424_v18  ;;  %1821 = vmatpush.bf16.msrb.mxu1 %v3738_v27  ;;  %v4285_v4 = vld [vmem:[#allocation8 + $0xd4] sm:$0xf0]  ;;  %v3444_v5 = vor.u32 %v4214_v63, %v3441_v0  ;;  %v5169_v7 = vld [vmem:[%s5109_s29 + $0x48] sm:$0xff]  ;;  %v4266_v8 = vld [vmem:[#allocation8 + $0x44] sm:$0xf] }
  0xa4   : > { %1870 = vmatpush.bf16.msrb.mxu2 %v3678_v16  ;;  %1445 = vmatmul.bf16.vlgmr.msra.gmra.mxu3 %v3428_v22  ;;  %v3722_v6 = vor.u32 %v4285_v4, %v3721_v3  ;;  %v3651_v9 = vld [vmem:[#allocation8 + $0x48] sm:$0xf0]  ;;  %v4282_v11 = vld [vmem:[#allocation8 + $0xc4] sm:$0xf]  ;;  %v3649_v14 = vld [vmem:[#allocation8 + $0x40] sm:$0xf] }
  0xa5   : > { %1919 = vmatpush.bf16.msrb.mxu3 %v3742_v25  ;;  %4562 = vset.pattern.permute.xlu1 %v4859_v33  ;;  %v3654_v10 = vor.u32 %v4266_v8, %v3651_v9  ;;  %v3715_v12 = vld [vmem:[#allocation8 + $0xc8] sm:$0xf0]  ;;  %v4267_v15 = vld [vmem:[#allocation8 + $0x44] sm:$0xf0]  ;;  %v3713_v16 = vld [vmem:[#allocation8 + $0xc0] sm:$0xf] }
  0xa6   : > { %685 = vperm.xlu1 %4562, %v602_v28   ;;  %799 = vperm.xlu0 %4559, %v602_v28   ;;  %v3718_v13 = vor.u32 %v4282_v11, %v3715_v12  ;;  %v5174_v17 = vld [vmem:[%s5109_s29 + $0x50] sm:$0xff]  ;;  %v3650_v18 = vor.u32 %v4267_v15, %v3649_v14  ;;  %v4283_v19 = vld [vmem:[#allocation8 + $0xc4] sm:$0xf0]  ;;  %v4217_v22 = vld [vmem:[%s5111_s30 + $0x34] sm:$0xf0] }
  0xa7   : > { %1773 = vmatpush.bf16.msrb.mxu0 %v3666_v46  ;;  %1822 = vmatpush.bf16.msrb.mxu1 %v3730_v48  ;;  %v3714_v20 = vor.u32 %v4283_v19, %v3713_v16  ;;  %v3447_v21 = vld [vmem:[%s5111_s30 + $0x30] sm:$0xf]  ;;  %v4216_v23 = vld [vmem:[%s5111_s30 + $0x34] sm:$0xf]  ;;  %v3449_v24 = vld [vmem:[%s5111_s30 + $0x38] sm:$0xf0] }
  0xa8   : > { %1871 = vmatpush.bf16.msrb.mxu2 %v3670_v35  ;;  %4563 = vset.pattern.permute.xlu2 %v4859_v33  ;;  %v3448_v25 = vor.u32 %v4217_v22, %v3447_v21  ;;  %v3452_v26 = vor.u32 %v4216_v23, %v3449_v24  ;;  %v606_v27 = vld [vmem:[%s5109_s29 + $0x40] sm:$0xff]  ;;  %v3643_v29 = vld [vmem:[#allocation8 + $0x38] sm:$0xf0]  ;;  %v4280_v36 = vld [vmem:[#allocation8 + $0xb4] sm:$0xf] }
  0xa9   : > { %1920 = vmatpush.bf16.msrb.mxu3 %v3734_v37  ;;  %690 = vperm.xlu2 %4563, %v603_v38   ;;  %v5186_v30 = vld [vmem:[%s5109_s29 + $0x58] sm:$0xff]  ;;  %v3455_v35 = vld [vmem:[%s5111_s30 + $0x40] sm:$0xf]  ;;  %v4219_v39 = vld [vmem:[%s5111_s30 + $0x44] sm:$0xf0] }
  0xaa   : > { %v3707_v37 = vld [vmem:[#allocation8 + $0xb8] sm:$0xf0]  ;;  %v4218_v40 = vld [vmem:[%s5111_s30 + $0x44] sm:$0xf]  ;;  %v4265_v42 = vld [vmem:[#allocation8 + $0x34] sm:$0xf0]  ;;  %v3456_v48 = vor.u32 %v4219_v39, %v3455_v35 }
  0xab   : > { %1774 = vmatpush.bf16.msrb.mxu0 %v3658_v60  ;;  %1823 = vmatpush.bf16.msrb.mxu1 %v3722_v6  ;;  %v3710_v41 = vor.u32 %v4280_v36, %v3707_v37  ;;  %v3457_v43 = vld [vmem:[%s5111_s30 + $0x48] sm:$0xf0]  ;;  %v3705_v45 = vld [vmem:[#allocation8 + $0xb0] sm:$0xf]  ;;  %v4281_v46 = vld [vmem:[#allocation8 + $0xb4] sm:$0xf0] }
  0xac   : > { %1872 = vmatpush.bf16.msrb.mxu2 %v3662_v55  ;;  %v3706_v47 = vor.u32 %v4281_v46, %v3705_v45  ;;  %v3635_v52 = vld [vmem:[#allocation8 + $0x28] sm:$0xf0]  ;;  %v4278_v53 = vld [vmem:[#allocation8 + $0xa4] sm:$0xf]  ;;  %v3463_v58 = vld [vmem:[%s5111_s30 + $0x50] sm:$0xf] }
  0xad   : > { %1921 = vmatpush.bf16.msrb.mxu3 %v3726_v59  ;;  %v3699_v55 = vld [vmem:[#allocation8 + $0xa8] sm:$0xf0]  ;;  %v4221_v59 = vld [vmem:[%s5111_s30 + $0x54] sm:$0xf0]  ;;  %v4220_v60 = vld [vmem:[%s5111_s30 + $0x54] sm:$0xf] }
  0xae   : > { %4564 = vset.pattern.permute.xlu1 %v4858_v32  ;;  %4566 = vset.pattern.permute.xlu0 %v4860_v34  ;;  %v3702_v56 = vor.u32 %v4278_v53, %v3699_v55  ;;  %v611_v57 = vld [vmem:[%s5109_s29 + $0x68] sm:$0xff]  ;;  %v3633_v61 = vld [vmem:[#allocation8 + $0x20] sm:$0xf]  ;;  %v3465_v63 = vld [vmem:[%s5111_s30 + $0x58] sm:$0xf0]  ;;  %v3464_v4 = vor.u32 %v4221_v59, %v3463_v58 }
  0xaf   : > { %803 = vperm.xlu1 %4564, %v603_v38   ;;  %938 = vperm.xlu0 %4566, %v603_v38   ;;  %v3641_v38 = vld [vmem:[#allocation8 + $0x30] sm:$0xf]  ;;  %v4263_v62 = vld [vmem:[#allocation8 + $0x24] sm:$0xf0]  ;;  %v4260_v9 = vld [vmem:[#allocation8 + $0x14] sm:$0xf] }
  0xb0   : > { %1873 = vmatpush.bf16.msrb.mxu2 %v3654_v10  ;;  %1775 = vmatpush.bf16.msrb.mxu0 %v3650_v18  ;;  %v3642_v44 = vor.u32 %v4265_v42, %v3641_v38  ;;  %v3634_v0 = vor.u32 %v4263_v62, %v3633_v61  ;;  %v3627_v10 = vld [vmem:[#allocation8 + $0x18] sm:$0xf0]  ;;  %v4276_v11 = vld [vmem:[#allocation8 + $0x94] sm:$0xf]  ;;  %v3471_v16 = vld [vmem:[%s5111_s30 + $0x60] sm:$0xf] }
  0xb1   : > { %1303 = vmatmul.bf16.gmra.mxu0 %v3432_v49  ;;  %4565 = vset.pattern.permute.xlu2 %v4860_v34  ;;  %v3630_v12 = vor.u32 %v4260_v9, %v3627_v10  ;;  %v4222_v18 = vld [vmem:[%s5111_s30 + $0x64] sm:$0xf]  ;;  %v3473_v19 = vld [vmem:[%s5111_s30 + $0x68] sm:$0xf0]  ;;  %v4261_v21 = vld [vmem:[#allocation8 + $0x14] sm:$0xf0] }
  0xb2   : > { %1352 = vmatmul.bf16.gmra.mxu1 %v3436_v50  ;;  %934 = vperm.xlu2 %4565, %v602_v28   ;;  %v4264_v28 = vld [vmem:[#allocation8 + $0x34] sm:$0xf]  ;;  %v3689_v24 = vld [vmem:[#allocation8 + $0x90] sm:$0xf]  ;;  %v4225_v35 = vld [vmem:[%s5111_s30 + $0x74] sm:$0xf0] }
  0xb3   : > { %1401 = vmatmul.bf16.gmra.mxu2 %v3432_v49  ;;  %1922 = vmatpush.bf16.msrb.mxu3 %v3718_v13  ;;  %v3646_v31 = vor.u32 %v4264_v28, %v3643_v29  ;;  %v5198_v49 = vld [vmem:[%s5109_s29 + $0x60] sm:$0xff]  ;;  %v3691_v13 = vld [vmem:[#allocation8 + $0x98] sm:$0xf0]  ;;  %v4224_v36 = vld [vmem:[%s5111_s30 + $0x74] sm:$0xf] }
  0xb4   : > { %1450 = vmatmul.bf16.gmra.mxu3 %v3436_v50  ;;  %1824 = vmatpush.bf16.msrb.mxu1 %v3714_v20  ;;  %v3460_v50 = vor.u32 %v4218_v40, %v3457_v43  ;;  %v3694_v14 = vor.u32 %v4276_v11, %v3691_v13  ;;  %v3625_v20 = vld [vmem:[#allocation8 + $0x10] sm:$0xf]  ;;  %v3481_v37 = vld [vmem:[%s5111_s30 + $0x78] sm:$0xf0]  ;;  %v4258_v39 = vld [vmem:[#allocation8 + $0x4] sm:$0xf] }
  0xb5   : > { %1874 = vmatpush.bf16.msrb.mxu2 %v3646_v31  ;;  %1776 = vmatpush.bf16.msrb.mxu0 %v3642_v44  ;;  %v3626_v23 = vor.u32 %v4261_v21, %v3625_v20  ;;  %v3479_v31 = vld [vmem:[%s5111_s30 + $0x70] sm:$0xf]  ;;  %v3619_v40 = vld [vmem:[#allocation8 + $0x8] sm:$0xf0]  ;;  %v4274_v44 = vld [vmem:[#allocation8 + $0x84] sm:$0xf] }
  0xb6   : > { %v3622_v43 = vor.u32 %v4258_v39, %v3619_v40  ;;  %v3683_v45 = vld [vmem:[#allocation8 + $0x88] sm:$0xf0]  ;;  %v3617_v46 = vld [vmem:[#allocation8] sm:$0xf]  ;;  %v613_v53 = vld [vmem:[%s5109_s29 + $0x78] sm:$0xff] }
  0xb7   : > { %4567 = vset.pattern.permute.xlu1 %v4859_v33  ;;  %942 = vperm.xlu0 %4566, %v604_v51   ;;  %v3420_v58 = vld [vmem:[%s5676_s5 + $0x2] ss:$8 sm:$0x3] }
  0xb8   : > { %695 = vperm.xlu1 %4567, %v604_v51   ;;  %1923 = vmatpush.bf16.msrb.mxu3 %v3710_v41  ;;  %v3480_v41 = vor.u32 %v4225_v35, %v3479_v31  ;;  %v5293_v11 = vperm.slane %v3420_v58, 1 }
  0xb9   : > { %1825 = vmatpush.bf16.msrb.mxu1 %v3706_v47  ;;  %1777 = vmatpush.bf16.msrb.mxu0 %v3634_v0  ;;  %v3484_v47 = vor.u32 %v4224_v36, %v3481_v37  ;;  %v5275_v0 = vperm.slane %v3420_v58, 0  ;;  %v3803_v58 = vld [vmem:[#allocation8 + $0x178] sm:$0xf0] }
  0xba   : > { %4568 = vset.pattern.permute.xlu2 %v4859_v33 }
  0xbb   : > { %700 = vperm.xlu2 %4568, %v605_v2  }
  0xbc   : > { %1924 = vmatpush.bf16.msrb.mxu3 %v3702_v56 }
  0xbd   : > { %1778 = vmatpush.bf16.msrb.mxu0 %v3626_v23 }
  0xbf   : > { %4573 = vset.pattern.permute.xlu0 %v4859_v33 }
  0xc0   : > { %4569 = vset.pattern.permute.xlu1 %v4858_v32  ;;  %710 = vperm.xlu0 %4573, %v5169_v7  }
  0xc1   : > { %1308 = vmatmul.bf16.gmra.mxu0 %v3440_v1  ;;  %807 = vperm.xlu1 %4569, %v604_v51   ;;  %v4262_v51 = vld [vmem:[#allocation8 + $0x24] sm:$0xf] }
  0xc2   : > { %1357 = vmatmul.bf16.gmra.mxu1 %v3444_v5  ;;  %v3638_v54 = vor.u32 %v4262_v51, %v3635_v52  ;;  %1925 = vmatpush.bf16.msrb.mxu3 %v3694_v14  ;;  %v662_v52 = vld [vmem:[%s5676_s5] ss:$8 sm:$0x3] }
  0xc3   : > { %1406 = vmatmul.bf16.gmra.mxu2 %v3440_v1  ;;  %4570 = vset.pattern.permute.xlu2 %v4858_v32  ;;  %v3697_v1 = vld [vmem:[#allocation8 + $0xa0] sm:$0xf]  ;;  %v5263_v56 = vperm.slane %v662_v52, 0 }
  0xc4   : > { %1455 = vmatmul.bf16.gmra.mxu3 %v3444_v5  ;;  %811 = vperm.xlu2 %4570, %v605_v2   ;;  %v3468_v5 = vor.u32 %v4220_v60, %v3465_v63 }
  0xc5   : > { %1875 = vmatpush.bf16.msrb.mxu2 %v3638_v54 }
  0xc8   : > { %715 = vperm.xlu0 %4573, %v5174_v17  }
  0xc9   : > { %4571 = vset.pattern.permute.xlu1 %v4860_v34  ;;  %1876 = vmatpush.bf16.msrb.mxu2 %v3630_v12 }
  0xca   : > { %946 = vperm.xlu1 %4571, %v605_v2   ;;  %v4279_v2 = vld [vmem:[#allocation8 + $0xa4] sm:$0xf0] }
  0xcb   : > { %v3698_v3 = vor.u32 %v4279_v2, %v3697_v1 }
  0xcc   : > { %4572 = vset.pattern.permute.xlu2 %v4859_v33 }
  0xcd   : > { %705 = vperm.xlu2 %4572, %v606_v27   ;;  %1826 = vmatpush.bf16.msrb.mxu1 %v3698_v3  ;;  %v5282_v3 = vperm.slane %v662_v52, 1 }
  0xce   : > { %1877 = vmatpush.bf16.msrb.mxu2 %v3622_v43 }
  0xd0   : > { %4580 = vset.pattern.permute.xlu0 %v4858_v32 }
  0xd1   : > { %1313 = vmatmul.bf16.gmra.mxu0 %v3448_v25  ;;  %827 = vperm.xlu0 %4580, %v5186_v30  }
  0xd2   : > { %1362 = vmatmul.bf16.gmra.mxu1 %v3452_v26  ;;  %4574 = vset.pattern.permute.xlu1 %v4858_v32 }
  0xd3   : > { %1411 = vmatmul.bf16.gmra.mxu2 %v3448_v25  ;;  %815 = vperm.xlu1 %4574, %v606_v27   ;;  %v4277_v25 = vld [vmem:[#allocation8 + $0x94] sm:$0xf0] }
  0xd4   : > { %1460 = vmatmul.bf16.gmra.mxu3 %v3452_v26  ;;  %v3690_v28 = vor.u32 %v4277_v25, %v3689_v24 }
  0xd5   : > { %4575 = vset.pattern.permute.xlu2 %v4858_v32 }
  0xd6   : > { %819 = vperm.xlu2 %4575, %v5169_v7   ;;  %1827 = vmatpush.bf16.msrb.mxu1 %v3690_v28 }
  0xd9   : > { %831 = vperm.xlu0 %4580, %v5198_v49  }
  0xdb   : > { %4576 = vset.pattern.permute.xlu1 %v4860_v34 }
  0xdc   : > { %950 = vperm.xlu1 %4576, %v606_v27   ;;  %v3476_v27 = vor.u32 %v4222_v18, %v3473_v19 }
  0xde   : > { %4577 = vset.pattern.permute.xlu2 %v4860_v34  ;;  %v5215_v6 = vpop.permute.xlu2 %918 }
  0xdf   : > { %954 = vperm.xlu2 %4577, %v5169_v7   ;;  %v5218_v7 = vld [vmem:[%s5109_s29 + $0x70] sm:$0xff] }
  0xe1   : > { %1318 = vmatmul.bf16.gmra.mxu0 %v3456_v48  ;;  %4587 = vset.pattern.permute.xlu0 %v4860_v34 }
  0xe2   : > { %1367 = vmatmul.bf16.gmra.mxu1 %v3460_v50  ;;  %970 = vperm.xlu0 %4587, %v611_v57  }
  0xe3   : > { %1416 = vmatmul.bf16.gmra.mxu2 %v3456_v48  ;;  %v3686_v48 = vor.u32 %v4274_v44, %v3683_v45 }
  0xe4   : > { %1465 = vmatmul.bf16.gmra.mxu3 %v3460_v50  ;;  %4578 = vset.pattern.permute.xlu1 %v4859_v33  ;;  %v3419_v50 = vld [vmem:[%s5676_s5 + $0x1] ss:$8 sm:$0x3] }
  0xe5   : > { %720 = vperm.xlu1 %4578, %v5186_v30   ;;  %1926 = vmatpush.bf16.msrb.mxu3 %v3686_v48  ;;  %v5261_v55 = vperm.slane %v3419_v50, 0  ;;  %v5280_v2 = vperm.slane %v3419_v50, 1 }
  0xe6   : > { %v5227_v15 = vpop.permute.xlu2 %922 }
  0xe7   : > { %4579 = vset.pattern.permute.xlu2 %v4858_v32  ;;  %v988_v18 = vmul.f32 %v5275_v0, %v5227_v15  ;;  %v989_v43 = vmul.f32 %v5293_v11, %v5227_v15 }
  0xe8   : > { %823 = vperm.xlu2 %4579, %v5174_v17  }
  0xea   : > { %974 = vperm.xlu0 %4587, %v5218_v7  }
  0xed   : > { %4581 = vset.pattern.permute.xlu1 %v4860_v34 }
  0xee   : > { %958 = vperm.xlu1 %4581, %v5174_v17   ;;  %v4223_v17 = vld [vmem:[%s5111_s30 + $0x64] sm:$0xf0] }
  0xef   : > { %v3472_v22 = vor.u32 %v4223_v17, %v3471_v16 }
  0xf0   : > { %4582 = vset.pattern.permute.xlu2 %v4860_v34  ;;  %v5237_v29 = vpop.permute.xlu2 %791 }
  0xf1   : > { %1323 = vmatmul.bf16.gmra.mxu0 %v3464_v4  ;;  %962 = vperm.xlu2 %4582, %v5186_v30  }
  0xf2   : > { %1372 = vmatmul.bf16.gmra.mxu1 %v3468_v5 }
  0xf3   : > { %1421 = vmatmul.bf16.gmra.mxu2 %v3464_v4 }
  0xf4   : > { %1470 = vmatmul.bf16.gmra.mxu3 %v3468_v5  ;;  %v5221_v8 = vpop.permute.xlu1 %783  ;;  %v986_v5 = vmul.f32 %v5275_v0, %v5215_v6 }
  0xf5   : > { %v666_v38 = vpop.permute.xlu0 %665  ;;  %v851_v62 = vmul.f32 %v5261_v55, %v5221_v8 }
  0xf6   : > { %4583 = vset.pattern.permute.xlu1 %v4859_v33  ;;  %v748_v63 = vmul.f32 %v5263_v56, %v666_v38  ;;  %v749_v10 = vmul.f32 %v5282_v3, %v666_v38 }
  0xf7   : > { %725 = vperm.xlu1 %4583, %v5198_v49  }
  0xf8   : > { %v883_v4 = vadd.f32 %v851_v62, %v748_v63 }
  0xf9   : > { %4584 = vset.pattern.permute.xlu2 %v4859_v33 }
  0xfa   : > { %730 = vperm.xlu2 %4584, %v611_v57   ;;  %v5249_v42 = vpop.permute.xlu2 %930  ;;  %v1018_v13 = vadd.f32 %v986_v5, %v883_v4  ;;  %v4320_v5 = vld [vmem:[#allocation8 + $0x1f4] sm:$0xf] }
  0xfc   : > { %v5234_v26 = vpop.permute.xlu1 %787 }
  0xfd   : > { %v671_v61 = vpop.permute.xlu0 %670  ;;  %v854_v23 = vmul.f32 %v5280_v2, %v5234_v26 }
  0xfe   : > { %v750_v9 = vmul.f32 %v5263_v56, %v671_v61  ;;  %v751_v24 = vmul.f32 %v5282_v3, %v671_v61 }
  0xff   : > { %4585 = vset.pattern.permute.xlu1 %v4858_v32 }
 0x100   : > { %835 = vperm.xlu1 %4585, %v611_v57   ;;  %v3681_v57 = vld [vmem:[#allocation8 + $0x80] sm:$0xf] }
 0x101   : > { %1328 = vmatmul.bf16.gmra.mxu0 %v3472_v22 }
 0x102   : > { %1377 = vmatmul.bf16.gmra.mxu1 %v3476_v27  ;;  %4586 = vset.pattern.permute.xlu2 %v4860_v34 }
 0x103   : > { %1426 = vmatmul.bf16.gmra.mxu2 %v3472_v22  ;;  %966 = vperm.xlu2 %4586, %v5198_v49   ;;  %v4259_v49 = vld [vmem:[#allocation8 + $0x4] sm:$0xf0]  ;;  %v5270_v60 = vpop.permute.xlu2 %690 }
 0x104   : > { %1475 = vmatmul.bf16.gmra.mxu3 %v3476_v27  ;;  %v3618_v54 = vor.u32 %v4259_v49, %v3617_v46  ;;  %v3613_v22 = vld [vmem:[%s5676_s5 + $0x3] ss:$8 sm:$0x3] }
 0x105   : > { %v5239_v30 = vpop.permute.xlu1 %680  ;;  %v5309_v27 = vperm.slane %v3613_v22, 0 }
 0x106   : > { %1779 = vmatpush.bf16.msrb.mxu0 %v3618_v54  ;;  %v676_v17 = vpop.permute.xlu0 %675 }
 0x107   : > { %v752_v38 = vmul.f32 %v5263_v56, %v676_v17 }
 0x108   : > { %4588 = vset.pattern.permute.xlu1 %v4859_v33 }
 0x109   : > { %735 = vperm.xlu1 %4588, %v5218_v7  }
 0x10b   : > { %4589 = vset.pattern.permute.xlu2 %v4859_v33  ;;  %v4275_v33 = vld [vmem:[#allocation8 + $0x84] sm:$0xf0] }
 0x10c   : > { %740 = vperm.xlu2 %4589, %v613_v53   ;;  %v3682_v59 = vor.u32 %v4275_v33, %v3681_v57  ;;  %v5295_v16 = vpop.permute.xlu2 %934  ;;  %v5326_v57 = vperm.slane %v3613_v22, 1  ;;  %v4304_v33 = vld [vmem:[#allocation8 + $0x174] sm:$0xf] }
 0x10d   : > { %v3806_v4 = vor.u32 %v4304_v33, %v3803_v58 }
 0x10e   : > { %1828 = vmatpush.bf16.msrb.mxu1 %v3682_v59 }
 0x10f   : > { %v5254_v51 = vpop.permute.xlu1 %926  ;;  %2307 = vmatpush.bf16.msra.mxu2 %v3806_v4 }
 0x110   : > { %v990_v49 = vmul.f32 %v5275_v0, %v5254_v51 }
 0x111   : > { %1333 = vmatmul.bf16.gmra.mxu0 %v3480_v41  ;;  %4590 = vset.pattern.permute.xlu1 %v4858_v32 }
 0x112   : > { %1382 = vmatmul.bf16.gmra.mxu1 %v3484_v47  ;;  %839 = vperm.xlu1 %4590, %v5218_v7   ;;  %v853_v7 = vmul.f32 %v5261_v55, %v5234_v26  ;;  %v886_v26 = vadd.f32 %v854_v23, %v751_v24  ;;  %v992_v23 = vmul.f32 %v5275_v0, %v5249_v42 }
 0x113   : > { %1431 = vmatmul.bf16.gmra.mxu2 %v3480_v41 }
 0x114   : > { %1480 = vmatmul.bf16.gmra.mxu3 %v3484_v47  ;;  %4591 = vset.pattern.permute.xlu2 %v4858_v32  ;;  %v852_v32 = vmul.f32 %v5280_v2, %v5221_v8  ;;  %v987_v8 = vmul.f32 %v5293_v11, %v5215_v6  ;;  %v855_v6 = vmul.f32 %v5261_v55, %v5237_v29  ;;  %v796_v47 = vpop.permute.xlu0 %795 }
 0x115   : > { %843 = vperm.xlu2 %4591, %v613_v53   ;;  %v5314_v41 = vpop.permute.xlu2 %700  ;;  %v1021_v15 = vadd.f32 %v989_v43, %v886_v26  ;;  %v857_v59 = vmul.f32 %v5261_v55, %v796_v47  ;;  %v3801_v43 = vld [vmem:[#allocation8 + $0x170] sm:$0xf] }
 0x116   : > { %v884_v21 = vadd.f32 %v852_v32, %v749_v10  ;;  %v887_v48 = vadd.f32 %v855_v6, %v752_v38  ;;  %v856_v32 = vmul.f32 %v5280_v2, %v5237_v29 }
 0x118   : > { %v5277_v1 = vpop.permute.xlu1 %685  ;;  %v1019_v35 = vadd.f32 %v987_v8, %v884_v21 }
 0x11a   : > { %4592 = vset.pattern.permute.xlu1 %v4860_v34  ;;  %v885_v34 = vadd.f32 %v853_v7, %v750_v9  ;;  %v3867_v7 = vld [vmem:[#allocation8 + $0x1f8] sm:$0xf0]  ;;  %v753_v9 = vmul.f32 %v5282_v3, %v676_v17 }
 0x11b   : > { %978 = vperm.xlu1 %4592, %v613_v53   ;;  %v754_v53 = vmul.f32 %v5263_v56, %v5239_v30 }
 0x11c   : > { %v1020_v31 = vadd.f32 %v988_v18, %v885_v34  ;;  %v1022_v34 = vadd.f32 %v990_v49, %v887_v48  ;;  %v888_v24 = vadd.f32 %v856_v32, %v753_v9  ;;  %v758_v32 = vmul.f32 %v5263_v56, %v5270_v60 }
 0x11d   : > { %v889_v22 = vadd.f32 %v857_v59, %v754_v53  ;;  %v993_v59 = vmul.f32 %v5293_v11, %v5249_v42 }
 0x11e   : > { %v1299_v12 = vpop.f32.mrf.mxu0  ;;  %v5335_v29 = vpop.permute.xlu2 %811 }
 0x11f   : > { %v1348_v14 = vpop.f32.mrf.mxu1  ;;  %v1300_v19 = vadd.f32 %v1299_v12, %v1018_v13  ;;  %v1024_v26 = vadd.f32 %v992_v23, %v889_v22  ;;  %v4318_v22 = vld [vmem:[#allocation8 + $0x1e4] sm:$0xf]  ;;  %v3859_v23 = vld [vmem:[#allocation8 + $0x1e8] sm:$0xf0] }
 0x121   : > { %v5299_v20 = vpop.permute.xlu1 %803  ;;  %v1349_v25 = vadd.f32 %v1348_v14, %v1300_v19  ;;  %v3870_v14 = vor.u32 %v4320_v5, %v3867_v7  ;;  %v994_v5 = vmul.f32 %v5275_v0, %v5295_v16 }
 0x123   : > { %v1493_v45 = vadd.f32 %v5309_v27, %v1349_v25  ;;  %2356 = vmatpush.bf16.msra.mxu3 %v3870_v14  ;;  %v991_v25 = vmul.f32 %v5293_v11, %v5254_v51  ;;  %v756_v51 = vmul.f32 %v5263_v56, %v5277_v1  ;;  %v861_v14 = vmul.f32 %v5261_v55, %v5299_v20 }
 0x125   : > { %v1525_v61 = vmax.f32 %v1493_v45, 0.0  ;;  %v1023_v45 = vadd.f32 %v991_v25, %v888_v24 }
 0x126   : > { %v1397_v28 = vpop.f32.mrf.mxu2  ;;  %v1301_v37 = vpop.f32.mrf.mxu0 }
 0x127   : > { %v1446_v36 = vpop.f32.mrf.mxu3  ;;  %v1302_v39 = vadd.f32 %v1301_v37, %v1020_v31  ;;  %v1350_v40 = vpop.f32.mrf.mxu1  ;;  %v1398_v44 = vadd.f32 %v1397_v28, %v1019_v35  ;;  %v755_v35 = vmul.f32 %v5282_v3, %v5239_v30  ;;  %v4321_v30 = vld [vmem:[#allocation8 + $0x1f4] sm:$0xf0] }
 0x128   : > { %v800_v31 = vpop.permute.xlu0 %799  ;;  %v5354_v9 = vpop.permute.xlu2 %705 }
 0x129   : > { %v1351_v46 = vadd.f32 %v1350_v40, %v1302_v39  ;;  %v1447_v54 = vadd.f32 %v1446_v36, %v1398_v44  ;;  %v858_v36 = vmul.f32 %v5280_v2, %v796_v47  ;;  %v4305_v44 = vld [vmem:[#allocation8 + $0x174] sm:$0xf0]  ;;  %v859_v47 = vmul.f32 %v5261_v55, %v800_v31 }
 0x12a   : > { %v5322_v52 = vpop.permute.xlu1 %695  ;;  %v860_v24 = vmul.f32 %v5280_v2, %v800_v31 }
 0x12b   : > { %v1495_v50 = vadd.f32 %v5309_v27, %v1351_v46  ;;  %v1494_v21 = vadd.f32 %v5326_v57, %v1447_v54  ;;  %v890_v58 = vadd.f32 %v858_v36, %v755_v35  ;;  %v891_v4 = vadd.f32 %v859_v47, %v756_v51 }
 0x12c   : > { %v3862_v36 = vor.u32 %v4318_v22, %v3859_v23 }
 0x12d   : > { %v1527_v62 = vmax.f32 %v1495_v50, 0.0  ;;  %v1526_v37 = vmax.f32 %v1494_v21, 0.0  ;;  %v3865_v50 = vld [vmem:[#allocation8 + $0x1f0] sm:$0xf] }
 0x12e   : > { %v1399_v63 = vpop.f32.mrf.mxu2  ;;  %v1304_v13 = vpop.f32.mrf.mxu0  ;;  %v3866_v33 = vor.u32 %v4321_v30, %v3865_v50  ;;  %2357 = vmatpush.bf16.msra.mxu3 %v3862_v36 }
 0x12f   : > { %v1400_v10 = vadd.f32 %v1399_v63, %v1021_v15  ;;  %v1448_v12 = vpop.f32.mrf.mxu3  ;;  %v1353_v18 = vpop.f32.mrf.mxu1  ;;  %v1557_v19 = vpack.c.bf16 %v1527_v62, %v1525_v61  ;;  %v1305_v17 = vadd.f32 %v1304_v13, %v1022_v34  ;;  %v3802_v15 = vor.u32 %v4305_v44, %v3801_v43  ;;  %v3795_v13 = vld [vmem:[#allocation8 + $0x168] sm:$0xf0] }
 0x130   : > { %2258 = vmatpush.bf16.msra.mxu1 %v3866_v33  ;;  %v939_v34 = vpop.permute.xlu0 %938  ;;  %v893_v44 = vadd.f32 %v861_v14, %v758_v32  ;;  %v3793_v33 = vld [vmem:[#allocation8 + $0x160] sm:$0xf] }
 0x131   : > { %v1449_v8 = vadd.f32 %v1448_v12, %v1400_v10  ;;  %1780 = vmatmul.bf16.vlgmr.msrb.gmra.mxu0 %v1557_v19  ;;  %1878 = vmatmul.bf16.vlgmr.msrb.gmra.mxu2 %v1557_v19  ;;  %v1354_v6 = vadd.f32 %v1353_v18, %v1305_v17  ;;  %v1025_v10 = vadd.f32 %v993_v59, %v890_v58  ;;  %v4302_v12 = vld [vmem:[#allocation8 + $0x164] sm:$0xf]  ;;  %v4303_v58 = vld [vmem:[#allocation8 + $0x164] sm:$0xf0] }
 0x132   : > { %2209 = vmatpush.bf16.msra.mxu0 %v3802_v15  ;;  %v757_v17 = vmul.f32 %v5282_v3, %v5277_v1  ;;  %v996_v51 = vmul.f32 %v5275_v0, %v939_v34  ;;  %v5374_v15 = vpop.permute.xlu2 %819 }
 0x133   : > { %v1496_v28 = vadd.f32 %v5326_v57, %v1449_v8  ;;  %v5343_v39 = vpop.permute.xlu1 %807  ;;  %v1497_v62 = vadd.f32 %v5309_v27, %v1354_v6  ;;  %v3798_v8 = vor.u32 %v4302_v12, %v3795_v13  ;;  %v997_v13 = vmul.f32 %v5293_v11, %v939_v34 }
 0x134   : > { %v892_v31 = vadd.f32 %v860_v24, %v757_v17  ;;  %v865_v34 = vmul.f32 %v5261_v55, %v5335_v29 }
 0x135   : > { %v1528_v38 = vmax.f32 %v1496_v28, 0.0  ;;  %v1529_v18 = vmax.f32 %v1497_v62, 0.0  ;;  %2308 = vmatpush.bf16.msra.mxu2 %v3798_v8 }
 0x136   : > { %v1402_v40 = vpop.f32.mrf.mxu2  ;;  %v1306_v48 = vpop.f32.mrf.mxu0 }
 0x137   : > { %v1451_v46 = vpop.f32.mrf.mxu3  ;;  %v1558_v49 = vpack.c.bf16 %v1528_v38, %v1526_v37  ;;  %v1307_v53 = vadd.f32 %v1306_v48, %v1024_v26  ;;  %v1355_v54 = vpop.f32.mrf.mxu1  ;;  %v1403_v61 = vadd.f32 %v1402_v40, %v1023_v45  ;;  %v1026_v38 = vadd.f32 %v994_v5, %v891_v4  ;;  %v3857_v4 = vld [vmem:[#allocation8 + $0x1e0] sm:$0xf]  ;;  %v4319_v5 = vld [vmem:[#allocation8 + $0x1e4] sm:$0xf0] }
 0x138   : > { %v995_v45 = vmul.f32 %v5293_v11, %v5295_v16  ;;  %v759_v48 = vmul.f32 %v5282_v3, %v5270_v60  ;;  %v760_v60 = vmul.f32 %v5263_v56, %v5322_v52  ;;  %v943_v14 = vpop.permute.xlu0 %942 }
 0x139   : > { %1829 = vmatmul.bf16.vlgmr.msrb.gmra.mxu1 %v1558_v49  ;;  %1927 = vmatmul.bf16.vlgmr.msrb.gmra.mxu3 %v1558_v49  ;;  %v1356_v63 = vadd.f32 %v1355_v54, %v1307_v53  ;;  %v1452_v42 = vadd.f32 %v1451_v46, %v1403_v61  ;;  %v862_v49 = vmul.f32 %v5280_v2, %v5299_v20 }
 0x13a   : > { %v1028_v54 = vadd.f32 %v996_v51, %v893_v44  ;;  %v1027_v59 = vadd.f32 %v995_v45, %v892_v31  ;;  %v863_v20 = vmul.f32 %v5261_v55, %v5343_v39  ;;  %v998_v22 = vmul.f32 %v5275_v0, %v943_v14  ;;  %v4316_v31 = vld [vmem:[#allocation8 + $0x1d4] sm:$0xf]  ;;  %v3851_v45 = vld [vmem:[#allocation8 + $0x1d8] sm:$0xf0] }
 0x13b   : > { %v1499_v7 = vadd.f32 %v5309_v27, %v1356_v63  ;;  %v1498_v26 = vadd.f32 %v5326_v57, %v1452_v42  ;;  %v3794_v63 = vor.u32 %v4303_v58, %v3793_v33  ;;  %v894_v12 = vadd.f32 %v862_v49, %v759_v48  ;;  %v5399_v33 = vpop.permute.xlu2 %954 }
 0x13c   : > { %v5363_v37 = vpop.permute.xlu1 %946  ;;  %v895_v8 = vadd.f32 %v863_v20, %v760_v60 }
 0x13d   : > { %v1531_v21 = vmax.f32 %v1499_v7, 0.0  ;;  %v1530_v50 = vmax.f32 %v1498_v26, 0.0  ;;  %2210 = vmatpush.bf16.msra.mxu0 %v3794_v63  ;;  %v1029_v24 = vadd.f32 %v997_v13, %v894_v12  ;;  %v864_v26 = vmul.f32 %v5280_v2, %v5343_v39 }
 0x13e   : > { %v1404_v19 = vpop.f32.mrf.mxu2  ;;  %v1309_v35 = vpop.f32.mrf.mxu0  ;;  %v1000_v39 = vmul.f32 %v5275_v0, %v5363_v37 }
 0x13f   : > { %v1405_v25 = vadd.f32 %v1404_v19, %v1025_v10  ;;  %v1453_v28 = vpop.f32.mrf.mxu3  ;;  %v1358_v6 = vpop.f32.mrf.mxu1  ;;  %v1559_v40 = vpack.c.bf16 %v1531_v21, %v1529_v18  ;;  %v1310_v1 = vadd.f32 %v1309_v35, %v1026_v38  ;;  %v3858_v10 = vor.u32 %v4319_v5, %v3857_v4  ;;  %v4300_v38 = vld [vmem:[#allocation8 + $0x154] sm:$0xf] }
 0x140   : > { %v5407_v60 = vpop.permute.xlu0 %710 }
 0x141   : > { %v1454_v43 = vadd.f32 %v1453_v28, %v1405_v25  ;;  %1785 = vmatmul.bf16.gmra.mxu0 %v1559_v40  ;;  %1883 = vmatmul.bf16.gmra.mxu2 %v1559_v40  ;;  %v1359_v47 = vadd.f32 %v1358_v6, %v1310_v1  ;;  %v762_v25 = vmul.f32 %v5263_v56, %v5314_v41  ;;  %v3787_v6 = vld [vmem:[#allocation8 + $0x158] sm:$0xf0] }
 0x142   : > { %2259 = vmatpush.bf16.msra.mxu1 %v3858_v10  ;;  %v761_v40 = vmul.f32 %v5282_v3, %v5322_v52  ;;  %v3790_v1 = vor.u32 %v4300_v38, %v3787_v6  ;;  %v4301_v10 = vld [vmem:[#allocation8 + $0x154] sm:$0xf0] }
 0x143   : > { %v1500_v46 = vadd.f32 %v5326_v57, %v1454_v43  ;;  %v1501_v19 = vadd.f32 %v5309_v27, %v1359_v47  ;;  %v897_v52 = vadd.f32 %v865_v34, %v762_v25  ;;  %v1001_v25 = vmul.f32 %v5293_v11, %v5363_v37 }
 0x144   : > { %2309 = vmatpush.bf16.msra.mxu2 %v3790_v1  ;;  %v896_v58 = vadd.f32 %v864_v26, %v761_v40  ;;  %v5421_v26 = vpop.permute.xlu2 %823  ;;  %v766_v1 = vmul.f32 %v5263_v56, %v5407_v60 }
 0x145   : > { %v1532_v30 = vmax.f32 %v1500_v46, 0.0  ;;  %v5380_v42 = vpop.permute.xlu1 %815  ;;  %v1533_v28 = vmax.f32 %v1501_v19, 0.0  ;;  %v1030_v46 = vadd.f32 %v998_v22, %v895_v8  ;;  %v4317_v8 = vld [vmem:[#allocation8 + $0x1d4] sm:$0xf0] }
 0x146   : > { %v1407_v53 = vpop.f32.mrf.mxu2  ;;  %v1311_v16 = vpop.f32.mrf.mxu0 }
 0x147   : > { %v1456_v61 = vpop.f32.mrf.mxu3  ;;  %v1560_v62 = vpack.c.bf16 %v1532_v30, %v1530_v50  ;;  %v1312_v7 = vadd.f32 %v1311_v16, %v1028_v54  ;;  %v1360_v32 = vpop.f32.mrf.mxu1  ;;  %v1408_v18 = vadd.f32 %v1407_v53, %v1027_v59  ;;  %v3854_v50 = vor.u32 %v4316_v31, %v3851_v45 }
 0x148   : > { %v999_v59 = vmul.f32 %v5293_v11, %v943_v14  ;;  %v763_v16 = vmul.f32 %v5282_v3, %v5314_v41  ;;  %v764_v41 = vmul.f32 %v5263_v56, %v5354_v9 }
 0x149   : > { %1834 = vmatmul.bf16.gmra.mxu1 %v1560_v62  ;;  %1932 = vmatmul.bf16.gmra.mxu3 %v1560_v62  ;;  %v1361_v21 = vadd.f32 %v1360_v32, %v1312_v7  ;;  %v1457_v17 = vadd.f32 %v1456_v61, %v1408_v18  ;;  %v866_v62 = vmul.f32 %v5280_v2, %v5335_v29  ;;  %v3785_v32 = vld [vmem:[#allocation8 + $0x150] sm:$0xf] }
 0x14a   : > { %2358 = vmatpush.bf16.msra.mxu3 %v3854_v50  ;;  %v1032_v7 = vadd.f32 %v1000_v39, %v897_v52  ;;  %v1031_v12 = vadd.f32 %v999_v59, %v896_v58  ;;  %v3786_v19 = vor.u32 %v4301_v10, %v3785_v32  ;;  %v867_v29 = vmul.f32 %v5261_v55, %v5380_v42  ;;  %v3843_v58 = vld [vmem:[#allocation8 + $0x1c8] sm:$0xf0] }
 0x14b   : > { %v1503_v23 = vadd.f32 %v5309_v27, %v1361_v21  ;;  %v1502_v30 = vadd.f32 %v5326_v57, %v1457_v17  ;;  %v3849_v21 = vld [vmem:[#allocation8 + $0x1d0] sm:$0xf]  ;;  %v868_v50 = vmul.f32 %v5280_v2, %v5380_v42 }
 0x14c   : > { %v3850_v17 = vor.u32 %v4317_v8, %v3849_v21  ;;  %2211 = vmatpush.bf16.msra.mxu0 %v3786_v19  ;;  %v899_v38 = vadd.f32 %v867_v29, %v764_v41  ;;  %v5443_v8 = vpop.permute.xlu2 %962 }
 0x14d   : > { %v1535_v36 = vmax.f32 %v1503_v23, 0.0  ;;  %v1534_v63 = vmax.f32 %v1502_v30, 0.0 }
 0x14e   : > { %v1409_v35 = vpop.f32.mrf.mxu2  ;;  %v1314_v51 = vpop.f32.mrf.mxu0  ;;  %2260 = vmatpush.bf16.msra.mxu1 %v3850_v17 }
 0x14f   : > { %v1410_v43 = vadd.f32 %v1409_v35, %v1029_v24  ;;  %v1458_v44 = vpop.f32.mrf.mxu3  ;;  %v1363_v48 = vpop.f32.mrf.mxu1  ;;  %v1561_v49 = vpack.c.bf16 %v1535_v36, %v1533_v28  ;;  %v1315_v54 = vadd.f32 %v1314_v51, %v1030_v46  ;;  %v898_v24 = vadd.f32 %v866_v62, %v763_v16  ;;  %v4298_v46 = vld [vmem:[#allocation8 + $0x144] sm:$0xf] }
 0x150   : > { %v5395_v53 = vpop.permute.xlu1 %950 }
 0x151   : > { %v1459_v47 = vadd.f32 %v1458_v44, %v1410_v43  ;;  %1790 = vmatmul.bf16.gmra.mxu0 %v1561_v49  ;;  %1888 = vmatmul.bf16.gmra.mxu2 %v1561_v49  ;;  %v1364_v5 = vadd.f32 %v1363_v48, %v1315_v54  ;;  %v1002_v6 = vmul.f32 %v5275_v0, %v5395_v53  ;;  %v3779_v48 = vld [vmem:[#allocation8 + $0x148] sm:$0xf0]  ;;  %v4314_v54 = vld [vmem:[#allocation8 + $0x1c4] sm:$0xf] }
 0x152   : > { %v1033_v37 = vadd.f32 %v1001_v25, %v898_v24  ;;  %v869_v44 = vmul.f32 %v5261_v55, %v5374_v15  ;;  %v765_v49 = vmul.f32 %v5282_v3, %v5354_v9  ;;  %v3782_v39 = vor.u32 %v4298_v46, %v3779_v48 }
 0x153   : > { %v1504_v61 = vadd.f32 %v5326_v57, %v1459_v47  ;;  %v1505_v35 = vadd.f32 %v5309_v27, %v1364_v5  ;;  %v1034_v59 = vadd.f32 %v1002_v6, %v899_v38  ;;  %v3846_v62 = vor.u32 %v4314_v54, %v3843_v58 }
 0x154   : > { %2310 = vmatpush.bf16.msra.mxu2 %v3782_v39  ;;  %v1004_v9 = vmul.f32 %v5275_v0, %v5399_v33  ;;  %v900_v32 = vadd.f32 %v868_v50, %v765_v49  ;;  %v1003_v10 = vmul.f32 %v5293_v11, %v5395_v53  ;;  %v5459_v58 = vpop.permute.xlu2 %730 }
 0x155   : > { %v1536_v4 = vmax.f32 %v1504_v61, 0.0  ;;  %v1537_v51 = vmax.f32 %v1505_v35, 0.0  ;;  %2359 = vmatpush.bf16.msra.mxu3 %v3846_v62  ;;  %v3841_v35 = vld [vmem:[#allocation8 + $0x1c0] sm:$0xf] }
 0x156   : > { %v1412_v20 = vpop.f32.mrf.mxu2  ;;  %v1316_v14 = vpop.f32.mrf.mxu0  ;;  %v1035_v17 = vadd.f32 %v1003_v10, %v900_v32 }
 0x157   : > { %v1461_v13 = vpop.f32.mrf.mxu3  ;;  %v1562_v18 = vpack.c.bf16 %v1536_v4, %v1534_v63  ;;  %v1317_v22 = vadd.f32 %v1316_v14, %v1032_v7  ;;  %v1365_v23 = vpop.f32.mrf.mxu1  ;;  %v1413_v34 = vadd.f32 %v1412_v20, %v1031_v12  ;;  %v901_v20 = vadd.f32 %v869_v44, %v766_v1 }
 0x158   : > { %v5415_v28 = vpop.permute.xlu1 %720  ;;  %v716_v4 = vpop.permute.xlu0 %715  ;;  %v767_v14 = vmul.f32 %v5282_v3, %v5407_v60  ;;  %v871_v60 = vmul.f32 %v5261_v55, %v5421_v26 }
 0x159   : > { %1839 = vmatmul.bf16.gmra.mxu1 %v1562_v18  ;;  %1937 = vmatmul.bf16.gmra.mxu3 %v1562_v18  ;;  %v1366_v36 = vadd.f32 %v1365_v23, %v1317_v22  ;;  %v1462_v43 = vadd.f32 %v1461_v13, %v1413_v34  ;;  %v870_v13 = vmul.f32 %v5280_v2, %v5374_v15  ;;  %v3777_v22 = vld [vmem:[#allocation8 + $0x140] sm:$0xf]  ;;  %v4299_v23 = vld [vmem:[#allocation8 + $0x144] sm:$0xf0] }
 0x15a   : > { %v1036_v29 = vadd.f32 %v1004_v9, %v901_v20  ;;  %v3778_v34 = vor.u32 %v4299_v23, %v3777_v22  ;;  %v768_v15 = vmul.f32 %v5263_v56, %v716_v4  ;;  %v3771_v20 = vld [vmem:[#allocation8 + $0x138] sm:$0xf0]  ;;  %v4312_v9 = vld [vmem:[#allocation8 + $0x1b4] sm:$0xf] }
 0x15b   : > { %v1507_v40 = vadd.f32 %v5309_v27, %v1366_v36  ;;  %v1506_v63 = vadd.f32 %v5326_v57, %v1462_v43  ;;  %v4315_v36 = vld [vmem:[#allocation8 + $0x1c4] sm:$0xf0]  ;;  %v902_v43 = vadd.f32 %v870_v13, %v767_v14 }
 0x15c   : > { %2212 = vmatpush.bf16.msra.mxu0 %v3778_v34  ;;  %v903_v46 = vadd.f32 %v871_v60, %v768_v15 }
 0x15d   : > { %v1539_v45 = vmax.f32 %v1507_v40, 0.0  ;;  %v1538_v18 = vmax.f32 %v1506_v63, 0.0  ;;  %v3842_v40 = vor.u32 %v4315_v36, %v3841_v35 }
 0x15e   : > { %v1414_v31 = vpop.f32.mrf.mxu2  ;;  %v1319_v52 = vpop.f32.mrf.mxu0 }
 0x15f   : > { %v1415_v30 = vadd.f32 %v1414_v31, %v1033_v37  ;;  %v1463_v47 = vpop.f32.mrf.mxu3  ;;  %v1368_v61 = vpop.f32.mrf.mxu1  ;;  %v1563_v16 = vpack.c.bf16 %v1539_v45, %v1537_v51  ;;  %v1320_v42 = vadd.f32 %v1319_v52, %v1034_v59  ;;  %v1005_v37 = vmul.f32 %v5293_v11, %v5399_v33  ;;  %2261 = vmatpush.bf16.msra.mxu1 %v3842_v40  ;;  %v3769_v40 = vld [vmem:[#allocation8 + $0x130] sm:$0xf] }
 0x160   : > { %v5434_v7 = vpop.permute.xlu1 %958  ;;  %v828_v31 = vpop.permute.xlu0 %827  ;;  %v770_v33 = vmul.f32 %v5263_v56, %v5415_v28  ;;  %v769_v59 = vmul.f32 %v5282_v3, %v716_v4  ;;  %v1008_v4 = vmul.f32 %v5275_v0, %v5443_v8 }
 0x161   : > { %v1464_v5 = vadd.f32 %v1463_v47, %v1415_v30  ;;  %1795 = vmatmul.bf16.gmra.mxu0 %v1563_v16  ;;  %1893 = vmatmul.bf16.gmra.mxu2 %v1563_v16  ;;  %v1369_v21 = vadd.f32 %v1368_v61, %v1320_v42  ;;  %v1006_v48 = vmul.f32 %v5275_v0, %v5434_v7 }
 0x162   : > { %v1037_v30 = vadd.f32 %v1005_v37, %v902_v43  ;;  %v873_v52 = vmul.f32 %v5261_v55, %v828_v31  ;;  %v872_v61 = vmul.f32 %v5280_v2, %v5421_v26  ;;  %v4297_v43 = vld [vmem:[#allocation8 + $0x134] sm:$0xf0]  ;;  %v3833_v37 = vld [vmem:[#allocation8 + $0x1b0] sm:$0xf] }
 0x163   : > { %v1508_v12 = vadd.f32 %v5326_v57, %v1464_v5  ;;  %v1509_v51 = vadd.f32 %v5309_v27, %v1369_v21  ;;  %v4296_v5 = vld [vmem:[#allocation8 + $0x134] sm:$0xf]  ;;  %v1038_v42 = vadd.f32 %v1006_v48, %v903_v46  ;;  %v4313_v46 = vld [vmem:[#allocation8 + $0x1b4] sm:$0xf0] }
 0x164   : > { %v905_v21 = vadd.f32 %v873_v52, %v770_v33  ;;  %v3834_v52 = vor.u32 %v4313_v46, %v3833_v37  ;;  %v4295_v37 = vld [vmem:[#allocation8 + $0x124] sm:$0xf0] }
 0x165   : > { %v1540_v19 = vmax.f32 %v1508_v12, 0.0  ;;  %v1541_v47 = vmax.f32 %v1509_v51, 0.0  ;;  %v3835_v12 = vld [vmem:[#allocation8 + $0x1b8] sm:$0xf0] }
 0x166   : > { %v1417_v41 = vpop.f32.mrf.mxu2  ;;  %v1321_v24 = vpop.f32.mrf.mxu0  ;;  %v1040_v15 = vadd.f32 %v1008_v4, %v905_v21  ;;  %2262 = vmatpush.bf16.msra.mxu1 %v3834_v52  ;;  %v4310_v21 = vld [vmem:[#allocation8 + $0x1a4] sm:$0xf] }
 0x167   : > { %v1466_v53 = vpop.f32.mrf.mxu3  ;;  %v1564_v25 = vpack.c.bf16 %v1540_v19, %v1538_v18  ;;  %v1322_v38 = vadd.f32 %v1321_v24, %v1036_v29  ;;  %v1370_v6 = vpop.f32.mrf.mxu1  ;;  %v1418_v44 = vadd.f32 %v1417_v41, %v1035_v17  ;;  %v3774_v18 = vor.u32 %v4296_v5, %v3771_v20 }
 0x168   : > { %v3838_v19 = vor.u32 %v4312_v9, %v3835_v12  ;;  %v904_v41 = vadd.f32 %v872_v61, %v769_v59  ;;  %v1007_v29 = vmul.f32 %v5293_v11, %v5434_v7  ;;  %v832_v23 = vpop.permute.xlu0 %831  ;;  %v874_v24 = vmul.f32 %v5280_v2, %v828_v31 }
 0x169   : > { %1844 = vmatmul.bf16.gmra.mxu1 %v1564_v25  ;;  %1942 = vmatmul.bf16.gmra.mxu3 %v1564_v25  ;;  %v1371_v1 = vadd.f32 %v1370_v6, %v1322_v38  ;;  %v5451_v45 = vpop.permute.xlu1 %725  ;;  %v1467_v50 = vadd.f32 %v1466_v53, %v1418_v44  ;;  %v771_v53 = vmul.f32 %v5282_v3, %v5415_v28 }
 0x16a   : > { %2311 = vmatpush.bf16.msra.mxu2 %v3774_v18  ;;  %2360 = vmatpush.bf16.msra.mxu3 %v3838_v19  ;;  %v1039_v60 = vadd.f32 %v1007_v29, %v904_v41  ;;  %v1009_v44 = vmul.f32 %v5293_v11, %v5443_v8  ;;  %v875_v51 = vmul.f32 %v5261_v55, %v832_v23  ;;  %v4294_v18 = vld [vmem:[#allocation8 + $0x124] sm:$0xf]  ;;  %v3763_v19 = vld [vmem:[#allocation8 + $0x128] sm:$0xf0] }
 0x16b   : > { %v1511_v49 = vadd.f32 %v5309_v27, %v1371_v1  ;;  %v1510_v13 = vadd.f32 %v5326_v57, %v1467_v50  ;;  %v3770_v31 = vor.u32 %v4297_v43, %v3769_v40  ;;  %v906_v48 = vadd.f32 %v874_v24, %v771_v53  ;;  %v3827_v41 = vld [vmem:[#allocation8 + $0x1a8] sm:$0xf0]  ;;  %v3761_v43 = vld [vmem:[#allocation8 + $0x120] sm:$0xf] }
 0x16c   : > { %v876_v5 = vmul.f32 %v5280_v2, %v832_v23  ;;  %v3830_v24 = vor.u32 %v4310_v21, %v3827_v41 }
 0x16d   : > { %v1543_v39 = vmax.f32 %v1511_v49, 0.0  ;;  %v1542_v25 = vmax.f32 %v1510_v13, 0.0  ;;  %v772_v49 = vmul.f32 %v5263_v56, %v5451_v45  ;;  %2213 = vmatpush.bf16.msra.mxu0 %v3770_v31  ;;  %v1041_v61 = vadd.f32 %v1009_v44, %v906_v48  ;;  %v4311_v31 = vld [vmem:[#allocation8 + $0x1a4] sm:$0xf0] }
 0x16e   : > { %v1419_v54 = vpop.f32.mrf.mxu2  ;;  %v1324_v63 = vpop.f32.mrf.mxu0  ;;  %2361 = vmatpush.bf16.msra.mxu3 %v3830_v24 }
 0x16f   : > { %v1420_v16 = vadd.f32 %v1419_v54, %v1037_v30  ;;  %v1468_v62 = vpop.f32.mrf.mxu3  ;;  %v1373_v32 = vpop.f32.mrf.mxu1  ;;  %v1565_v10 = vpack.c.bf16 %v1543_v39, %v1541_v47  ;;  %v1325_v26 = vadd.f32 %v1324_v63, %v1038_v42  ;;  %v907_v39 = vadd.f32 %v875_v51, %v772_v49 }
 0x170   : > { %v967_v30 = vpop.permute.xlu2 %966  ;;  %v971_v9 = vpop.permute.xlu0 %970 }
 0x171   : > { %v1469_v14 = vadd.f32 %v1468_v62, %v1420_v16  ;;  %1800 = vmatmul.bf16.gmra.mxu0 %v1565_v10  ;;  %1898 = vmatmul.bf16.gmra.mxu2 %v1565_v10  ;;  %v1374_v35 = vadd.f32 %v1373_v32, %v1325_v26  ;;  %v1010_v59 = vmul.f32 %v5275_v0, %v967_v30 }
 0x172   : > { %v5470_v17 = vpop.permute.xlu1 %835  ;;  %v773_v62 = vmul.f32 %v5282_v3, %v5451_v45  ;;  %v774_v32 = vmul.f32 %v5263_v56, %v5459_v58  ;;  %v3766_v26 = vor.u32 %v4294_v18, %v3763_v19 }
 0x173   : > { %v1512_v22 = vadd.f32 %v5326_v57, %v1469_v14  ;;  %v1513_v33 = vadd.f32 %v5309_v27, %v1374_v35  ;;  %v877_v10 = vmul.f32 %v5261_v55, %v5470_v17  ;;  %v1042_v23 = vadd.f32 %v1010_v59, %v907_v39 }
 0x174   : > { %v1012_v35 = vmul.f32 %v5275_v0, %v971_v9  ;;  %2312 = vmatpush.bf16.msra.mxu2 %v3766_v26 }
 0x175   : > { %v1544_v34 = vmax.f32 %v1512_v22, 0.0  ;;  %v1545_v63 = vmax.f32 %v1513_v33, 0.0 }
 0x176   : > { %v1422_v36 = vpop.f32.mrf.mxu2  ;;  %v1326_v7 = vpop.f32.mrf.mxu0 }
 0x177   : > { %v1471_v38 = vpop.f32.mrf.mxu3  ;;  %v1566_v6 = vpack.c.bf16 %v1544_v34, %v1542_v25  ;;  %v1327_v28 = vadd.f32 %v1326_v7, %v1040_v15  ;;  %v1375_v1 = vpop.f32.mrf.mxu1  ;;  %v1423_v50 = vadd.f32 %v1422_v36, %v1039_v60  ;;  %v908_v25 = vadd.f32 %v876_v5, %v773_v62  ;;  %v4292_v62 = vld [vmem:[#allocation8 + $0x114] sm:$0xf] }
 0x178   : > { %v5493_v53 = vpop.permute.xlu2 %740  ;;  %v1011_v34 = vmul.f32 %v5293_v11, %v967_v30  ;;  %v909_v36 = vadd.f32 %v877_v10, %v774_v32  ;;  %v878_v7 = vmul.f32 %v5280_v2, %v5470_v17  ;;  %v4308_v5 = vld [vmem:[#allocation8 + $0x194] sm:$0xf] }
 0x179   : > { %1849 = vmatmul.bf16.gmra.mxu1 %v1566_v6  ;;  %1947 = vmatmul.bf16.gmra.mxu3 %v1566_v6  ;;  %v1376_v47 = vadd.f32 %v1375_v1, %v1327_v28  ;;  %v1472_v54 = vadd.f32 %v1471_v38, %v1423_v50  ;;  %v775_v38 = vmul.f32 %v5282_v3, %v5459_v58  ;;  %v3825_v1 = vld [vmem:[#allocation8 + $0x1a0] sm:$0xf] }
 0x17a   : > { %v1043_v44 = vadd.f32 %v1011_v34, %v908_v25  ;;  %v3762_v28 = vor.u32 %v4295_v37, %v3761_v43  ;;  %v1044_v50 = vadd.f32 %v1012_v35, %v909_v36  ;;  %v3826_v33 = vor.u32 %v4311_v31, %v3825_v1  ;;  %v3753_v36 = vld [vmem:[#allocation8 + $0x110] sm:$0xf] }
 0x17b   : > { %v1515_v8 = vadd.f32 %v5309_v27, %v1376_v47  ;;  %v5483_v16 = vpop.permute.xlu1 %735  ;;  %v1514_v29 = vadd.f32 %v5326_v57, %v1472_v54  ;;  %v910_v47 = vadd.f32 %v878_v7, %v775_v38  ;;  %v1013_v58 = vmul.f32 %v5293_v11, %v971_v9 }
 0x17c   : > { %v776_v17 = vmul.f32 %v5263_v56, %v5483_v16  ;;  %2214 = vmatpush.bf16.msra.mxu0 %v3762_v28  ;;  %2263 = vmatpush.bf16.msra.mxu1 %v3826_v33 }
 0x17d   : > { %v1547_v20 = vmax.f32 %v1515_v8, 0.0  ;;  %v1546_v6 = vmax.f32 %v1514_v29, 0.0  ;;  %v1045_v21 = vadd.f32 %v1013_v58, %v910_v47 }
 0x17e   : > { %v1424_v42 = vpop.f32.mrf.mxu2  ;;  %v1329_v14 = vpop.f32.mrf.mxu0 }
 0x17f   : > { %v1425_v12 = vadd.f32 %v1424_v42, %v1041_v61  ;;  %v1473_v13 = vpop.f32.mrf.mxu3  ;;  %v1378_v4 = vpop.f32.mrf.mxu1  ;;  %v1567_v45 = vpack.c.bf16 %v1547_v20, %v1545_v63  ;;  %v1330_v60 = vadd.f32 %v1329_v14, %v1042_v23  ;;  %v3755_v63 = vld [vmem:[#allocation8 + $0x118] sm:$0xf0] }
 0x180   : > { %v975_v61 = vpop.permute.xlu0 %974  ;;  %v3758_v20 = vor.u32 %v4292_v62, %v3755_v63  ;;  %v3819_v42 = vld [vmem:[#allocation8 + $0x198] sm:$0xf0]  ;;  %v844_v10 = vpop.permute.xlu2 %843  ;;  %v3811_v63 = vld [vmem:[#allocation8 + $0x188] sm:$0xf0] }
 0x181   : > { %v1474_v22 = vadd.f32 %v1473_v13, %v1425_v12  ;;  %1805 = vmatmul.bf16.gmra.mxu0 %v1567_v45  ;;  %1903 = vmatmul.bf16.gmra.mxu2 %v1567_v45  ;;  %v1379_v46 = vadd.f32 %v1378_v4, %v1330_v60  ;;  %v3822_v12 = vor.u32 %v4308_v5, %v3819_v42  ;;  %v3817_v60 = vld [vmem:[#allocation8 + $0x190] sm:$0xf] }
 0x182   : > { %v1014_v13 = vmul.f32 %v5275_v0, %v975_v61  ;;  %2313 = vmatpush.bf16.msra.mxu2 %v3758_v20  ;;  %v777_v4 = vmul.f32 %v5282_v3, %v5483_v16  ;;  %v778_v45 = vmul.f32 %v5263_v56, %v5493_v53  ;;  %v881_v26 = vmul.f32 %v5261_v55, %v844_v10 }
 0x183   : > { %v1516_v15 = vadd.f32 %v5326_v57, %v1474_v22  ;;  %v1517_v9 = vadd.f32 %v5309_v27, %v1379_v46  ;;  %2362 = vmatpush.bf16.msra.mxu3 %v3822_v12  ;;  %v1015_v16 = vmul.f32 %v5293_v11, %v975_v61  ;;  %v779_v46 = vmul.f32 %v5282_v3, %v5493_v53  ;;  %v3747_v53 = vld [vmem:[#allocation8 + $0x108] sm:$0xf0] }
 0x184   : > { %v840_v49 = vpop.permute.xlu1 %839 }
 0x185   : > { %v1548_v40 = vmax.f32 %v1516_v15, 0.0  ;;  %v879_v54 = vmul.f32 %v5261_v55, %v840_v49  ;;  %v1549_v29 = vmax.f32 %v1517_v9, 0.0  ;;  %v880_v22 = vmul.f32 %v5280_v2, %v840_v49  ;;  %v4293_v15 = vld [vmem:[#allocation8 + $0x114] sm:$0xf0] }
 0x186   : > { %v1427_v51 = vpop.f32.mrf.mxu2  ;;  %v1331_v52 = vpop.f32.mrf.mxu0  ;;  %v4309_v55 = vld [vmem:[#allocation8 + $0x194] sm:$0xf0]  ;;  %v3754_v37 = vor.u32 %v4293_v15, %v3753_v36  ;;  %v3614_v36 = vld [vmem:[%s5676_s5 + $0x4] ss:$8 sm:$0x3] }
 0x187   : > { %v1476_v48 = vpop.f32.mrf.mxu3  ;;  %v1568_v30 = vpack.c.bf16 %v1548_v40, %v1546_v6  ;;  %v1380_v8 = vpop.f32.mrf.mxu1  ;;  %v1428_v39 = vadd.f32 %v1427_v51, %v1043_v44  ;;  %v1332_v59 = vadd.f32 %v1331_v52, %v1044_v50  ;;  %v911_v18 = vadd.f32 %v879_v54, %v776_v17 }
 0x188   : > { %v913_v40 = vadd.f32 %v881_v26, %v778_v45  ;;  %v3818_v44 = vor.u32 %v4309_v55, %v3817_v60  ;;  %v912_v51 = vadd.f32 %v880_v22, %v777_v4  ;;  %2215 = vmatpush.bf16.msra.mxu0 %v3754_v37  ;;  %v3809_v22 = vld [vmem:[#allocation8 + $0x180] sm:$0xf] }
 0x189   : > { %1854 = vmatmul.bf16.gmra.mxu1 %v1568_v30  ;;  %1952 = vmatmul.bf16.gmra.mxu3 %v1568_v30  ;;  %v1381_v32 = vadd.f32 %v1380_v8, %v1332_v59  ;;  %v1477_v14 = vadd.f32 %v1476_v48, %v1428_v39  ;;  %v1046_v56 = vadd.f32 %v1014_v13, %v911_v18  ;;  %v4306_v59 = vld [vmem:[#allocation8 + $0x184] sm:$0xf] }
 0x18a   : > { %v882_v48 = vmul.f32 %v5280_v2, %v844_v10  ;;  %2264 = vmatpush.bf16.msra.mxu1 %v3818_v44  ;;  %v1047_v58 = vadd.f32 %v1015_v16, %v912_v51  ;;  %v4290_v2 = vld [vmem:[#allocation8 + $0x104] sm:$0xf]  ;;  %v3814_v42 = vor.u32 %v4306_v59, %v3811_v63 }
 0x18b   : > { %v1519_v19 = vadd.f32 %v5309_v27, %v1381_v32  ;;  %v1518_v38 = vadd.f32 %v5326_v57, %v1477_v14  ;;  %v3750_v62 = vor.u32 %v4290_v2, %v3747_v53 }
 0x18c   : > { %v914_v8 = vadd.f32 %v882_v48, %v779_v46  ;;  %2363 = vmatpush.bf16.msra.mxu3 %v3814_v42 }
 0x18d   : > { %v1551_v23 = vmax.f32 %v1519_v19, 0.0  ;;  %v979_v34 = vpop.permute.xlu1 %978  ;;  %v1550_v49 = vmax.f32 %v1518_v38, 0.0  ;;  %2314 = vmatpush.bf16.msra.mxu2 %v3750_v62  ;;  %v3745_v19 = vld [vmem:[#allocation8 + $0x100] sm:$0xf] }
 0x18e   : > { %v1429_v41 = vpop.f32.mrf.mxu2  ;;  %v1334_v35 = vpop.f32.mrf.mxu0  ;;  %v1016_v1 = vmul.f32 %v5275_v0, %v979_v34  ;;  %v1017_v39 = vmul.f32 %v5293_v11, %v979_v34 }
 0x18f   : > { %v1430_v24 = vadd.f32 %v1429_v41, %v1045_v21  ;;  %v1478_v25 = vpop.f32.mrf.mxu3  ;;  %v1383_v6 = vpop.f32.mrf.mxu1  ;;  %v1569_v43 = vpack.c.bf16 %v1551_v23, %v1549_v29  ;;  %v1335_v31 = vadd.f32 %v1334_v35, %v1046_v56  ;;  %v4291_v21 = vld [vmem:[#allocation8 + $0x104] sm:$0xf0] }
 0x190   : > { %v1048_v33 = vadd.f32 %v1016_v1, %v913_v40  ;;  %v1049_v9 = vadd.f32 %v1017_v39, %v914_v8  ;;  %v3746_v41 = vor.u32 %v4291_v21, %v3745_v19  ;;  %v4307_v23 = vld [vmem:[#allocation8 + $0x184] sm:$0xf0] }
 0x191   : > { %v1479_v7 = vadd.f32 %v1478_v25, %v1430_v24  ;;  %1810 = vmatmul.bf16.gmra.mxu0 %v1569_v43  ;;  %1908 = vmatmul.bf16.gmra.mxu2 %v1569_v43  ;;  %v1384_v47 = vadd.f32 %v1383_v6, %v1335_v31  ;;  %v5533_v6 = vperm.slane %v3614_v36, 1 }
 0x192   : > { %2216 = vmatpush.bf16.msra.mxu0 %v3746_v41 }
 0x193   : > { %v1520_v28 = vadd.f32 %v5326_v57, %v1479_v7  ;;  %v1521_v5 = vadd.f32 %v5309_v27, %v1384_v47 }
 0x195   : > { %v1552_v50 = vmax.f32 %v1520_v28, 0.0  ;;  %v1553_v12 = vmax.f32 %v1521_v5, 0.0 }
 0x196   : > { %v1432_v30 = vpop.f32.mrf.mxu2  ;;  %v1336_v0 = vpop.f32.mrf.mxu0 }
 0x197   : > { %v1481_v17 = vpop.f32.mrf.mxu3  ;;  %v1570_v52 = vpack.c.bf16 %v1552_v50, %v1550_v49  ;;  %v1433_v54 = vadd.f32 %v1432_v30, %v1047_v58  ;;  %v1337_v3 = vadd.f32 %v1336_v0, %v1048_v33  ;;  %v1385_v61 = vpop.f32.mrf.mxu1 }
 0x199   : > { %1859 = vmatmul.bf16.gmra.mxu1 %v1570_v52  ;;  %1957 = vmatmul.bf16.gmra.mxu3 %v1570_v52  ;;  %v1386_v20 = vadd.f32 %v1385_v61, %v1337_v3  ;;  %v1482_v32 = vadd.f32 %v1481_v17, %v1433_v54 }
 0x19b   : > { %v1523_v10 = vadd.f32 %v5309_v27, %v1386_v20  ;;  %v1522_v4 = vadd.f32 %v5326_v57, %v1482_v32  ;;  %v3810_v27 = vor.u32 %v4307_v23, %v3809_v22 }
 0x19d   : > { %v1555_v13 = vmax.f32 %v1523_v10, 0.0  ;;  %v1554_v24 = vmax.f32 %v1522_v4, 0.0  ;;  %2265 = vmatpush.bf16.msra.mxu1 %v3810_v27 }
 0x19e   : > { %v1434_v11 = vpop.f32.mrf.mxu2 }
 0x19f   : > { %v1435_v14 = vadd.f32 %v1434_v11, %v1049_v9  ;;  %v1483_v18 = vpop.f32.mrf.mxu3  ;;  %v1571_v26 = vpack.c.bf16 %v1555_v13, %v1553_v12 }
 0x1a1   : > { %v1484_v45 = vadd.f32 %v1483_v18, %v1435_v14  ;;  %1815 = vmatmul.bf16.gmra.mxu0 %v1571_v26  ;;  %1913 = vmatmul.bf16.gmra.mxu2 %v1571_v26 }
 0x1a3   : > { %v1524_v29 = vadd.f32 %v5326_v57, %v1484_v45  ;;  %v5530_v57 = vperm.slane %v3614_v36, 0 }
 0x1a5   : > { %v1556_v25 = vmax.f32 %v1524_v29, 0.0 }
 0x1a7   : > { %v1572_v34 = vpack.c.bf16 %v1556_v25, %v1554_v24 }
 0x1a9   : > { %1864 = vmatmul.bf16.gmra.mxu1 %v1572_v34  ;;  %1962 = vmatmul.bf16.gmra.mxu3 %v1572_v34 }
 0x1ae   : > { %v1781_v35 = vpop.f32.mrf.mxu0 }
 0x1af   : > { %v1782_v16 = vadd.f32 %v1781_v35, %v5530_v57 }
 0x1b4   : > { %v1879_v15 = vpop.f32.mrf.mxu2 }
 0x1b5   : > { %v1880_v28 = vadd.f32 %v1879_v15, %v5533_v6 }
 0x1b6   : > { %v1830_v60 = vpop.f32.mrf.mxu1  ;;  %v1783_v38 = vpop.f32.mrf.mxu0 }
 0x1b7   : > { %v1831_v56 = vadd.f32 %v1830_v60, %v1782_v16  ;;  %v1784_v55 = vadd.f32 %v1783_v38, %v5530_v57 }
 0x1b9   : > { %v1968_v51 = vmax.f32 %v1831_v56, 0.0 }
 0x1bc   : > { %v1928_v7 = vpop.f32.mrf.mxu3  ;;  %v1881_v40 = vpop.f32.mrf.mxu2 }
 0x1bd   : > { %v1929_v31 = vadd.f32 %v1928_v7, %v1880_v28  ;;  %v1882_v48 = vadd.f32 %v1881_v40, %v5533_v6 }
 0x1be   : > { %v1832_v43 = vpop.f32.mrf.mxu1  ;;  %v1786_v44 = vpop.f32.mrf.mxu0 }
 0x1bf   : > { %v1833_v37 = vadd.f32 %v1832_v43, %v1784_v55  ;;  %v1969_v47 = vmax.f32 %v1929_v31, 0.0  ;;  %v1787_v8 = vadd.f32 %v1786_v44, %v5530_v57 }
 0x1c1   : > { %v1970_v1 = vmax.f32 %v1833_v37, 0.0 }
 0x1c3   : > { %v2000_v46 = vpack.c.bf16 %v1970_v1, %v1968_v51 }
 0x1c4   : > { %v1930_v49 = vpop.f32.mrf.mxu3  ;;  %v1884_v30 = vpop.f32.mrf.mxu2 }
 0x1c5   : > { %v1931_v50 = vadd.f32 %v1930_v49, %v1882_v48  ;;  %2217 = vmatmul.bf16.vlgmr.msra.gmra.mxu0 %v2000_v46  ;;  %2315 = vmatmul.bf16.vlgmr.msra.gmra.mxu2 %v2000_v46  ;;  %v1885_v62 = vadd.f32 %v1884_v30, %v5533_v6 }
 0x1c6   : > { %v1835_v33 = vpop.f32.mrf.mxu1  ;;  %v1788_v17 = vpop.f32.mrf.mxu0 }
 0x1c7   : > { %v1971_v58 = vmax.f32 %v1931_v50, 0.0  ;;  %v1836_v39 = vadd.f32 %v1835_v33, %v1787_v8  ;;  %v1789_v54 = vadd.f32 %v1788_v17, %v5530_v57 }
 0x1c9   : > { %v2001_v52 = vpack.c.bf16 %v1971_v58, %v1969_v47  ;;  %v1972_v61 = vmax.f32 %v1836_v39, 0.0 }
 0x1cb   : > { %2266 = vmatmul.bf16.vlgmr.msra.gmra.mxu1 %v2001_v52  ;;  %2364 = vmatmul.bf16.vlgmr.msra.gmra.mxu3 %v2001_v52 }
 0x1cc   : > { %v1933_v0 = vpop.f32.mrf.mxu3  ;;  %v1886_v3 = vpop.f32.mrf.mxu2 }
 0x1cd   : > { %v1934_v5 = vadd.f32 %v1933_v0, %v1885_v62  ;;  %v1887_v20 = vadd.f32 %v1886_v3, %v5533_v6 }
 0x1ce   : > { %v1837_v2 = vpop.f32.mrf.mxu1  ;;  %v1791_v59 = vpop.f32.mrf.mxu0 }
 0x1cf   : > { %v1838_v53 = vadd.f32 %v1837_v2, %v1789_v54  ;;  %v1973_v12 = vmax.f32 %v1934_v5, 0.0  ;;  %v1792_v19 = vadd.f32 %v1791_v59, %v5530_v57 }
 0x1d1   : > { %v1974_v63 = vmax.f32 %v1838_v53, 0.0 }
 0x1d3   : > { %v2002_v42 = vpack.c.bf16 %v1974_v63, %v1972_v61 }
 0x1d4   : > { %v1935_v9 = vpop.f32.mrf.mxu3  ;;  %v1889_v10 = vpop.f32.mrf.mxu2 }
 0x1d5   : > { %v1936_v32 = vadd.f32 %v1935_v9, %v1887_v20  ;;  %2222 = vmatmul.bf16.gmra.mxu0 %v2002_v42  ;;  %2320 = vmatmul.bf16.gmra.mxu2 %v2002_v42  ;;  %v1890_v27 = vadd.f32 %v1889_v10, %v5533_v6 }
 0x1d6   : > { %v1840_v11 = vpop.f32.mrf.mxu1  ;;  %v1793_v14 = vpop.f32.mrf.mxu0 }
 0x1d7   : > { %v1975_v13 = vmax.f32 %v1936_v32, 0.0  ;;  %v1841_v4 = vadd.f32 %v1840_v11, %v1792_v19  ;;  %v1794_v45 = vadd.f32 %v1793_v14, %v5530_v57 }
 0x1d9   : > { %v2003_v18 = vpack.c.bf16 %v1975_v13, %v1973_v12  ;;  %v1976_v23 = vmax.f32 %v1841_v4, 0.0 }
 0x1db   : > { %2271 = vmatmul.bf16.gmra.mxu1 %v2003_v18  ;;  %2369 = vmatmul.bf16.gmra.mxu3 %v2003_v18 }
 0x1dc   : > { %v1938_v21 = vpop.f32.mrf.mxu3  ;;  %v1891_v26 = vpop.f32.mrf.mxu2 }
 0x1dd   : > { %v1939_v25 = vadd.f32 %v1938_v21, %v1890_v27  ;;  %v1892_v34 = vadd.f32 %v1891_v26, %v5533_v6 }
 0x1de   : > { %v1842_v41 = vpop.f32.mrf.mxu1  ;;  %v1796_v22 = vpop.f32.mrf.mxu0 }
 0x1df   : > { %v1843_v29 = vadd.f32 %v1842_v41, %v1794_v45  ;;  %v1977_v16 = vmax.f32 %v1939_v25, 0.0  ;;  %v1797_v40 = vadd.f32 %v1796_v22, %v5530_v57 }
 0x1e1   : > { %v1978_v24 = vmax.f32 %v1843_v29, 0.0 }
 0x1e3   : > { %v2004_v35 = vpack.c.bf16 %v1978_v24, %v1976_v23 }
 0x1e4   : > { %v1940_v36 = vpop.f32.mrf.mxu3  ;;  %v1894_v60 = vpop.f32.mrf.mxu2 }
 0x1e5   : > { %v1941_v15 = vadd.f32 %v1940_v36, %v1892_v34  ;;  %2227 = vmatmul.bf16.gmra.mxu0 %v2004_v35  ;;  %2325 = vmatmul.bf16.gmra.mxu2 %v2004_v35  ;;  %v1895_v48 = vadd.f32 %v1894_v60, %v5533_v6 }
 0x1e6   : > { %v1845_v38 = vpop.f32.mrf.mxu1  ;;  %v1798_v56 = vpop.f32.mrf.mxu0 }
 0x1e7   : > { %v1979_v7 = vmax.f32 %v1941_v15, 0.0  ;;  %v1846_v37 = vadd.f32 %v1845_v38, %v1797_v40  ;;  %v1799_v44 = vadd.f32 %v1798_v56, %v5530_v57 }
 0x1e9   : > { %v2005_v55 = vpack.c.bf16 %v1979_v7, %v1977_v16  ;;  %v1980_v46 = vmax.f32 %v1846_v37, 0.0 }
 0x1eb   : > { %2276 = vmatmul.bf16.gmra.mxu1 %v2005_v55  ;;  %2374 = vmatmul.bf16.gmra.mxu3 %v2005_v55 }
 0x1ec   : > { %v1943_v43 = vpop.f32.mrf.mxu3  ;;  %v1896_v51 = vpop.f32.mrf.mxu2 }
 0x1ed   : > { %v1944_v50 = vadd.f32 %v1943_v43, %v1895_v48  ;;  %v1897_v30 = vadd.f32 %v1896_v51, %v5533_v6 }
 0x1ee   : > { %v1847_v28 = vpop.f32.mrf.mxu1  ;;  %v1801_v31 = vpop.f32.mrf.mxu0 }
 0x1ef   : > { %v1848_v1 = vadd.f32 %v1847_v28, %v1799_v44  ;;  %v1981_v8 = vmax.f32 %v1944_v50, 0.0  ;;  %v1802_v3 = vadd.f32 %v1801_v31, %v5530_v57 }
 0x1f1   : > { %v1982_v49 = vmax.f32 %v1848_v1, 0.0 }
 0x1f3   : > { %v2006_v33 = vpack.c.bf16 %v1982_v49, %v1980_v46 }
 0x1f4   : > { %v1945_v47 = vpop.f32.mrf.mxu3  ;;  %v1899_v17 = vpop.f32.mrf.mxu2 }
 0x1f5   : > { %v1946_v58 = vadd.f32 %v1945_v47, %v1897_v30  ;;  %2232 = vmatmul.bf16.gmra.mxu0 %v2006_v33  ;;  %2330 = vmatmul.bf16.gmra.mxu2 %v2006_v33  ;;  %v1900_v42 = vadd.f32 %v1899_v17, %v5533_v6 }
 0x1f6   : > { %v1850_v52 = vpop.f32.mrf.mxu1  ;;  %v1803_v39 = vpop.f32.mrf.mxu0 }
 0x1f7   : > { %v1983_v0 = vmax.f32 %v1946_v58, 0.0  ;;  %v1851_v53 = vadd.f32 %v1850_v52, %v1802_v3  ;;  %v1804_v59 = vadd.f32 %v1803_v39, %v5530_v57 }
 0x1f9   : > { %v2007_v54 = vpack.c.bf16 %v1983_v0, %v1981_v8  ;;  %v1984_v20 = vmax.f32 %v1851_v53, 0.0 }
 0x1fb   : > { %2281 = vmatmul.bf16.gmra.mxu1 %v2007_v54  ;;  %2379 = vmatmul.bf16.gmra.mxu3 %v2007_v54 }
 0x1fc   : > { %v1948_v2 = vpop.f32.mrf.mxu3  ;;  %v1901_v61 = vpop.f32.mrf.mxu2 }
 0x1fd   : > { %v1949_v32 = vadd.f32 %v1948_v2, %v1900_v42  ;;  %v1902_v11 = vadd.f32 %v1901_v61, %v5533_v6 }
 0x1fe   : > { %v1852_v62 = vpop.f32.mrf.mxu1  ;;  %v1806_v5 = vpop.f32.mrf.mxu0 }
 0x1ff   : > { %v1853_v63 = vadd.f32 %v1852_v62, %v1804_v59  ;;  %v1985_v19 = vmax.f32 %v1949_v32, 0.0  ;;  %v1807_v26 = vadd.f32 %v1806_v5, %v5530_v57 }
 0x201   : > { %v1986_v9 = vmax.f32 %v1853_v63, 0.0 }
 0x203   : > { %v2008_v10 = vpack.c.bf16 %v1986_v9, %v1984_v20 }
 0x204   : > { %v1950_v12 = vpop.f32.mrf.mxu3  ;;  %v1904_v14 = vpop.f32.mrf.mxu2 }
 0x205   : > { %v1951_v13 = vadd.f32 %v1950_v12, %v1902_v11  ;;  %2237 = vmatmul.bf16.gmra.mxu0 %v2008_v10  ;;  %2335 = vmatmul.bf16.gmra.mxu2 %v2008_v10  ;;  %v1905_v34 = vadd.f32 %v1904_v14, %v5533_v6 }
 0x206   : > { %v1855_v18 = vpop.f32.mrf.mxu1  ;;  %v1808_v4 = vpop.f32.mrf.mxu0 }
 0x207   : > { %v1987_v21 = vmax.f32 %v1951_v13, 0.0  ;;  %v1856_v29 = vadd.f32 %v1855_v18, %v1807_v26  ;;  %v1809_v22 = vadd.f32 %v1808_v4, %v5530_v57 }
 0x209   : > { %v2009_v45 = vpack.c.bf16 %v1987_v21, %v1985_v19  ;;  %v1988_v25 = vmax.f32 %v1856_v29, 0.0 }
 0x20b   : > { %2286 = vmatmul.bf16.gmra.mxu1 %v2009_v45  ;;  %2384 = vmatmul.bf16.gmra.mxu3 %v2009_v45 }
 0x20c   : > { %v1953_v41 = vpop.f32.mrf.mxu3  ;;  %v1906_v23 = vpop.f32.mrf.mxu2 }
 0x20d   : > { %v1954_v15 = vadd.f32 %v1953_v41, %v1905_v34  ;;  %v1907_v38 = vadd.f32 %v1906_v23, %v5533_v6 }
 0x20e   : > { %v1857_v27 = vpop.f32.mrf.mxu1  ;;  %v1811_v36 = vpop.f32.mrf.mxu0 }
 0x20f   : > { %v1858_v24 = vadd.f32 %v1857_v27, %v1809_v22  ;;  %v1989_v55 = vmax.f32 %v1954_v15, 0.0  ;;  %v1812_v51 = vadd.f32 %v1811_v36, %v5530_v57 }
 0x211   : > { %v1990_v35 = vmax.f32 %v1858_v24, 0.0 }
 0x213   : > { %v2010_v60 = vpack.c.bf16 %v1990_v35, %v1988_v25 }
 0x214   : > { %v1955_v16 = vpop.f32.mrf.mxu3  ;;  %v1909_v43 = vpop.f32.mrf.mxu2 }
 0x215   : > { %v1956_v7 = vadd.f32 %v1955_v16, %v1907_v38  ;;  %2242 = vmatmul.bf16.gmra.mxu0 %v2010_v60  ;;  %2340 = vmatmul.bf16.gmra.mxu2 %v2010_v60  ;;  %v1910_v30 = vadd.f32 %v1909_v43, %v5533_v6 }
 0x216   : > { %v1860_v56 = vpop.f32.mrf.mxu1  ;;  %v1813_v44 = vpop.f32.mrf.mxu0 }
 0x217   : > { %v1991_v40 = vmax.f32 %v1956_v7, 0.0  ;;  %v1861_v1 = vadd.f32 %v1860_v56, %v1812_v51  ;;  %v1814_v31 = vadd.f32 %v1813_v44, %v5530_v57 }
 0x219   : > { %v2011_v37 = vpack.c.bf16 %v1991_v40, %v1989_v55  ;;  %v1992_v50 = vmax.f32 %v1861_v1, 0.0 }
 0x21b   : > { %2291 = vmatmul.bf16.gmra.mxu1 %v2011_v37  ;;  %2389 = vmatmul.bf16.gmra.mxu3 %v2011_v37 }
 0x21c   : > { %v1958_v28 = vpop.f32.mrf.mxu3  ;;  %v1911_v49 = vpop.f32.mrf.mxu2 }
 0x21d   : > { %v1959_v58 = vadd.f32 %v1958_v28, %v1910_v30  ;;  %v1912_v52 = vadd.f32 %v1911_v49, %v5533_v6 }
 0x21e   : > { %v1862_v46 = vpop.f32.mrf.mxu1  ;;  %v1816_v47 = vpop.f32.mrf.mxu0 }
 0x21f   : > { %v1863_v48 = vadd.f32 %v1862_v46, %v1814_v31  ;;  %v1993_v54 = vmax.f32 %v1959_v58, 0.0  ;;  %v1817_v61 = vadd.f32 %v1816_v47, %v5530_v57 }
 0x221   : > { %v1994_v33 = vmax.f32 %v1863_v48, 0.0 }
 0x223   : > { %v2012_v17 = vpack.c.bf16 %v1994_v33, %v1992_v50 }
 0x224   : > { %v1960_v8 = vpop.f32.mrf.mxu3  ;;  %v1914_v2 = vpop.f32.mrf.mxu2 }
 0x225   : > { %v1961_v0 = vadd.f32 %v1960_v8, %v1912_v52  ;;  %2247 = vmatmul.bf16.gmra.mxu0 %v2012_v17  ;;  %2345 = vmatmul.bf16.gmra.mxu2 %v2012_v17  ;;  %v1915_v10 = vadd.f32 %v1914_v2, %v5533_v6 }
 0x226   : > { %v1865_v39 = vpop.f32.mrf.mxu1  ;;  %v1818_v59 = vpop.f32.mrf.mxu0 }
 0x227   : > { %v1995_v3 = vmax.f32 %v1961_v0, 0.0  ;;  %v1866_v63 = vadd.f32 %v1865_v39, %v1817_v61  ;;  %v1819_v5 = vadd.f32 %v1818_v59, %v5530_v57 }
 0x229   : > { %v2013_v53 = vpack.c.bf16 %v1995_v3, %v1993_v54  ;;  %v1996_v32 = vmax.f32 %v1866_v63, 0.0 }
 0x22b   : > { %2296 = vmatmul.bf16.gmra.mxu1 %v2013_v53  ;;  %2394 = vmatmul.bf16.gmra.mxu3 %v2013_v53 }
 0x22c   : > { %v1963_v62 = vpop.f32.mrf.mxu3  ;;  %v1916_v9 = vpop.f32.mrf.mxu2 }
 0x22d   : > { %v1964_v12 = vadd.f32 %v1963_v62, %v1915_v10  ;;  %v1917_v14 = vadd.f32 %v1916_v9, %v5533_v6 }
 0x22e   : > { %v1867_v20 = vpop.f32.mrf.mxu1 }
 0x22f   : > { %v1868_v42 = vadd.f32 %v1867_v20, %v1819_v5  ;;  %v1997_v21 = vmax.f32 %v1964_v12, 0.0 }
 0x231   : > { %v1998_v11 = vmax.f32 %v1868_v42, 0.0 }
 0x233   : > { %v2014_v13 = vpack.c.bf16 %v1998_v11, %v1996_v32 }
 0x234   : > { %v1965_v18 = vpop.f32.mrf.mxu3 }
 0x235   : > { %v1966_v19 = vadd.f32 %v1965_v18, %v1917_v14  ;;  %2252 = vmatmul.bf16.gmra.mxu0 %v2014_v13  ;;  %2350 = vmatmul.bf16.gmra.mxu2 %v2014_v13 }
 0x237   : > { %v1999_v4 = vmax.f32 %v1966_v19, 0.0 }
 0x239   : > { %v2015_v45 = vpack.c.bf16 %v1999_v4, %v1997_v21 }
 0x23b   : > { %2301 = vmatmul.bf16.gmra.mxu1 %v2015_v45  ;;  %2399 = vmatmul.bf16.gmra.mxu3 %v2015_v45 }
 0x242   : > { %v2218_v57 = vpop.f32.mrf.mxu0 }
 0x248   : > { %v2267_v26 = vpop.f32.mrf.mxu1  ;;  %v2316_v41 = vpop.f32.mrf.mxu2 }
 0x249   : > { %v2268_v29 = vadd.f32 %v2267_v26, %v2218_v57 }
 0x24a   : > { %v2220_v22 = vpop.f32.mrf.mxu0 }
 0x24e   : > { %v2365_v23 = vpop.f32.mrf.mxu3 }
 0x24f   : > { %v2366_v27 = vadd.f32 %v2365_v23, %v2316_v41 }
 0x250   : > { %v2269_v24 = vpop.f32.mrf.mxu1  ;;  %v2318_v25 = vpop.f32.mrf.mxu2 }
 0x251   : > { %v2270_v34 = vadd.f32 %v2269_v24, %v2220_v22 }
 0x252   : > { %v2223_v6 = vpop.f32.mrf.mxu0 }
 0x256   : > { %v2367_v35 = vpop.f32.mrf.mxu3 }
 0x257   : > { %v2368_v36 = vadd.f32 %v2367_v35, %v2318_v25 }
 0x258   : > { %v2272_v15 = vpop.f32.mrf.mxu1  ;;  %v2321_v60 = vpop.f32.mrf.mxu2 }
 0x259   : > { %v2273_v38 = vadd.f32 %v2272_v15, %v2223_v6 }
 0x25a   : > { %v2225_v16 = vpop.f32.mrf.mxu0 }
 0x25b   : > { %v2405_v7 = vmax.f32 %v2268_v29, %v2273_v38 }
 0x25e   : > { %v2370_v56 = vpop.f32.mrf.mxu3 }
 0x25f   : > { %v2371_v55 = vadd.f32 %v2370_v56, %v2321_v60 }
 0x260   : > { %v2274_v40 = vpop.f32.mrf.mxu1  ;;  %v2323_v43 = vpop.f32.mrf.mxu2 }
 0x261   : > { %v2406_v37 = vmax.f32 %v2366_v27, %v2371_v55  ;;  %v2275_v44 = vadd.f32 %v2274_v40, %v2225_v16 }
 0x262   : > { %v2228_v51 = vpop.f32.mrf.mxu0 }
 0x263   : > { %v2407_v28 = vmax.f32 %v2270_v34, %v2275_v44 }
 0x266   : > { %v2372_v1 = vpop.f32.mrf.mxu3 }
 0x267   : > { %v2373_v31 = vadd.f32 %v2372_v1, %v2323_v43 }
 0x268   : > { %v2277_v46 = vpop.f32.mrf.mxu1  ;;  %v2326_v48 = vpop.f32.mrf.mxu2 }
 0x269   : > { %v2408_v49 = vmax.f32 %v2368_v36, %v2373_v31  ;;  %v2278_v50 = vadd.f32 %v2277_v46, %v2228_v51 }
 0x26a   : > { %v2230_v30 = vpop.f32.mrf.mxu0 }
 0x26b   : > { %v2409_v33 = vmax.f32 %v2405_v7, %v2278_v50 }
 0x26e   : > { %v2375_v47 = vpop.f32.mrf.mxu3 }
 0x26f   : > { %v2376_v58 = vadd.f32 %v2375_v47, %v2326_v48 }
 0x270   : > { %v2279_v17 = vpop.f32.mrf.mxu1  ;;  %v2328_v52 = vpop.f32.mrf.mxu2 }
 0x271   : > { %v2410_v8 = vmax.f32 %v2406_v37, %v2376_v58  ;;  %v2280_v0 = vadd.f32 %v2279_v17, %v2230_v30 }
 0x272   : > { %v2233_v39 = vpop.f32.mrf.mxu0 }
 0x273   : > { %v2411_v54 = vmax.f32 %v2407_v28, %v2280_v0 }
 0x276   : > { %v2377_v3 = vpop.f32.mrf.mxu3 }
 0x277   : > { %v2378_v2 = vadd.f32 %v2377_v3, %v2328_v52 }
 0x278   : > { %v2282_v53 = vpop.f32.mrf.mxu1  ;;  %v2331_v59 = vpop.f32.mrf.mxu2 }
 0x279   : > { %v5566_v61 = vmax.f32 %v2408_v49, %v2378_v2  ;;  %v2283_v62 = vadd.f32 %v2282_v53, %v2233_v39 }
 0x27a   : > { %v2235_v63 = vpop.f32.mrf.mxu0 }
 0x27b   : > { %v2413_v5 = vmax.f32 %v2409_v33, %v2283_v62 }
 0x27e   : > { %v2380_v20 = vpop.f32.mrf.mxu3 }
 0x27f   : > { %v2381_v42 = vadd.f32 %v2380_v20, %v2331_v59 }
 0x280   : > { %v2284_v9 = vpop.f32.mrf.mxu1  ;;  %v2333_v32 = vpop.f32.mrf.mxu2 }
 0x281   : > { %v2414_v10 = vmax.f32 %v2410_v8, %v2381_v42  ;;  %v2285_v55 = vadd.f32 %v2284_v9, %v2235_v63 }
 0x282   : > { %v2238_v11 = vpop.f32.mrf.mxu0 }
 0x283   : > { %v2415_v48 = vmax.f32 %v2411_v54, %v2285_v55 }
 0x286   : > { %v2382_v12 = vpop.f32.mrf.mxu3 }
 0x287   : > { %v2383_v47 = vadd.f32 %v2382_v12, %v2333_v32 }
 0x288   : > { %v2287_v13 = vpop.f32.mrf.mxu1  ;;  %v2336_v14 = vpop.f32.mrf.mxu2 }
 0x289   : > { %v2288_v60 = vadd.f32 %v2287_v13, %v2238_v11  ;;  %v2416_v59 = vmax.f32 %v5566_v61, %v2383_v47 }
 0x28a   : > { %v2240_v18 = vpop.f32.mrf.mxu0 }
 0x28b   : > { %v2417_v7 = vmax.f32 %v2413_v5, %v2288_v60 }
 0x28e   : > { %v2385_v19 = vpop.f32.mrf.mxu3 }
 0x28f   : > { %v2386_v37 = vadd.f32 %v2385_v19, %v2336_v14 }
 0x290   : > { %v2289_v21 = vpop.f32.mrf.mxu1  ;;  %v2338_v4 = vpop.f32.mrf.mxu2 }
 0x291   : > { %v2290_v28 = vadd.f32 %v2289_v21, %v2240_v18  ;;  %v2418_v49 = vmax.f32 %v2414_v10, %v2386_v37 }
 0x292   : > { %v2243_v45 = vpop.f32.mrf.mxu0 }
 0x293   : > { %v2419_v17 = vmax.f32 %v2415_v48, %v2290_v28 }
 0x296   : > { %v2387_v57 = vpop.f32.mrf.mxu3 }
 0x297   : > { %v2388_v39 = vadd.f32 %v2387_v57, %v2338_v4 }
 0x298   : > { %v2292_v26 = vpop.f32.mrf.mxu1  ;;  %v2341_v41 = vpop.f32.mrf.mxu2 }
 0x299   : > { %v2293_v16 = vadd.f32 %v2292_v26, %v2243_v45  ;;  %v2420_v9 = vmax.f32 %v2416_v59, %v2388_v39 }
 0x29a   : > { %v2245_v29 = vpop.f32.mrf.mxu0 }
 0x29b   : > { %v2421_v44 = vmax.f32 %v2417_v7, %v2293_v16 }
 0x29e   : > { %v2390_v22 = vpop.f32.mrf.mxu3 }
 0x29f   : > { %v2391_v1 = vadd.f32 %v2390_v22, %v2341_v41 }
 0x2a0   : > { %v2294_v23 = vpop.f32.mrf.mxu1  ;;  %v2343_v27 = vpop.f32.mrf.mxu2 }
 0x2a1   : > { %v2295_v50 = vadd.f32 %v2294_v23, %v2245_v29  ;;  %v2422_v52 = vmax.f32 %v2418_v49, %v2391_v1 }
 0x2a2   : > { %v2248_v24 = vpop.f32.mrf.mxu0 }
 0x2a3   : > { %v2423_v3 = vmax.f32 %v2419_v17, %v2295_v50 }
 0x2a6   : > { %v2392_v25 = vpop.f32.mrf.mxu3 }
 0x2a7   : > { %v2393_v63 = vadd.f32 %v2392_v25, %v2343_v27 }
 0x2a8   : > { %v2297_v34 = vpop.f32.mrf.mxu1  ;;  %v2346_v6 = vpop.f32.mrf.mxu2 }
 0x2a9   : > { %v2298_v56 = vadd.f32 %v2297_v34, %v2248_v24  ;;  %v2424_v11 = vmax.f32 %v2420_v9, %v2393_v63 }
 0x2aa   : > { %v2250_v35 = vpop.f32.mrf.mxu0 }
 0x2ab   : > { %v2425_v31 = vmax.f32 %v2421_v44, %v2298_v56 }
 0x2ae   : > { %v2395_v36 = vpop.f32.mrf.mxu3 }
 0x2af   : > { %v2396_v30 = vadd.f32 %v2395_v36, %v2346_v6 }
 0x2b0   : > { %v2299_v15 = vpop.f32.mrf.mxu1  ;;  %v2348_v38 = vpop.f32.mrf.mxu2 }
 0x2b1   : > { %v2300_v8 = vadd.f32 %v2299_v15, %v2250_v35  ;;  %v2426_v2 = vmax.f32 %v2422_v52, %v2396_v30 }
 0x2b2   : > { %v2253_v40 = vpop.f32.mrf.mxu0 }
 0x2b3   : > { %v2427_v5 = vmax.f32 %v2423_v3, %v2300_v8 }
 0x2b6   : > { %v2397_v43 = vpop.f32.mrf.mxu3 }
 0x2b7   : > { %v2398_v32 = vadd.f32 %v2397_v43, %v2348_v38 }
 0x2b8   : > { %v2302_v51 = vpop.f32.mrf.mxu1  ;;  %v2351_v58 = vpop.f32.mrf.mxu2 }
 0x2b9   : > { %v2303_v46 = vadd.f32 %v2302_v51, %v2253_v40  ;;  %v2428_v14 = vmax.f32 %v2424_v11, %v2398_v32 }
 0x2ba   : > { %v2255_v62 = vpop.f32.mrf.mxu0 }
 0x2bb   : > { %v2429_v33 = vmax.f32 %v2425_v31, %v2303_v46 }
 0x2be   : > { %v2400_v0 = vpop.f32.mrf.mxu3 }
 0x2bf   : > { %v2401_v53 = vadd.f32 %v2400_v0, %v2351_v58 }
 0x2c0   : > { %v2304_v54 = vpop.f32.mrf.mxu1  ;;  %v2353_v12 = vpop.f32.mrf.mxu2 }
 0x2c1   : > { %v2430_v20 = vmax.f32 %v2426_v2, %v2401_v53  ;;  %v2305_v42 = vadd.f32 %v2304_v54, %v2255_v62 }
 0x2c3   : > { %v2431_v10 = vmax.f32 %v2427_v5, %v2305_v42 }
 0x2c5   : > { %2436 = sbr.rel (%p3871_p4) target bundleno = 719 (0x2cf), region = 136 }
 0x2c6   : > { %v2402_v13 = vpop.f32.mrf.mxu3 }
 0x2c7   : > { %v2403_v18 = vadd.f32 %v2402_v13, %v2353_v12 }
 0x2c9   : > { %v2432_v19 = vmax.f32 %v2428_v14, %v2403_v18 }
 0x2ca   : > { %v4861_v61 = vmov -inf  }
 0x2cb   : > { %2437 = vst [vmem:[#allocation2 + $0x10] sm:$0xff] %v4861_v61 }
 0x2cc   : > { %2438 = vst [vmem:[#allocation2] sm:$0xff] %v4861_v61 }
 0x2cd   : > { %2439 = vst [vmem:[#allocation2 + $0x18] sm:$0xff] %v4861_v61 }
 0x2ce   : > { %2440 = vst [vmem:[#allocation2 + $0x8] sm:$0xff] %v4861_v61 }
 0x2cf PF: > { %s5723_s22 = sld [smem:[#allocation20_spill]] }
 0x2d2   : > { %v2441_v21 = vld [vmem:[#allocation2 + $0x10] sm:$0xff] }
 0x2d3   : > { %v2442_v4 = vld [vmem:[#allocation2] sm:$0xff]  ;;  %v2445_v57 = vmax.f32 %v2441_v21, %v2429_v33 }
 0x2d4   : > { %v2443_v45 = vld [vmem:[#allocation2 + $0x18] sm:$0xff]  ;;  %v2446_v26 = vmax.f32 %v2442_v4, %v2430_v20 }
 0x2d5   : > { %v2447_v41 = vmax.f32 %v2443_v45, %v2431_v10  ;;  %v2444_v29 = vld [vmem:[#allocation2 + $0x8] sm:$0xff]  ;;  %2449 = vst [vmem:[#allocation2 + $0x10] sm:$0xff] %v2445_v57  ;;  %p3872_p8 = scmp.ne.s32.totalorder %s5723_s22, 1 }
 0x2d6   : > { %v2448_v22 = vmax.f32 %v2444_v29, %v2432_v19  ;;  %2450 = vst [vmem:[#allocation2] sm:$0xff] %v2446_v26 }
 0x2d7   : > { %2451 = vst [vmem:[#allocation2 + $0x18] sm:$0xff] %v2447_v41  ;;  %2456 = sbr.rel (%p3872_p8) target bundleno = 1200 (0x4b0), region = 140 }
 0x2d8   : > { %2452 = vst [vmem:[#allocation2 + $0x8] sm:$0xff] %v2448_v22 }
 0x2dc   : > { %v3933_v23 = vld [vmem:[#allocation8 + $0x270] sm:$0xf]  ;;  %v4337_v27 = vld [vmem:[#allocation8 + $0x274] sm:$0xf0]  ;;  %v4336_v6 = vld [vmem:[#allocation8 + $0x274] sm:$0xf] }
 0x2dd   : > { %v3997_v24 = vld [vmem:[#allocation8 + $0x2f0] sm:$0xf]  ;;  %v3934_v25 = vor.u32 %v4337_v27, %v3933_v23  ;;  %v4353_v34 = vld [vmem:[#allocation8 + $0x2f4] sm:$0xf0]  ;;  %v3935_v35 = vld [vmem:[#allocation8 + $0x278] sm:$0xf0] }
 0x2de   : > { %v3998_v36 = vor.u32 %v4353_v34, %v3997_v24  ;;  %v3938_v15 = vor.u32 %v4336_v6, %v3935_v35  ;;  %v4352_v60 = vld [vmem:[#allocation8 + $0x2f4] sm:$0xf]  ;;  %v3999_v38 = vld [vmem:[#allocation8 + $0x2f8] sm:$0xf0]  ;;  %v3925_v16 = vld [vmem:[#allocation8 + $0x260] sm:$0xf] }
 0x2df   : > { %2682 = vmatpush.bf16.msra.mxu0 %v3934_v25  ;;  %v4002_v7 = vor.u32 %v4352_v60, %v3999_v38  ;;  %v4335_v56 = vld [vmem:[#allocation8 + $0x264] sm:$0xf0]  ;;  %v3989_v55 = vld [vmem:[#allocation8 + $0x2e0] sm:$0xf]  ;;  %v4334_v44 = vld [vmem:[#allocation8 + $0x264] sm:$0xf] }
 0x2e0   : > { %v4351_v40 = vld [vmem:[#allocation8 + $0x2e4] sm:$0xf0]  ;;  %2696 = vmatpush.bf16.msra.mxu1 %v3998_v36  ;;  %2710 = vmatpush.bf16.msra.mxu2 %v3938_v15  ;;  %v3926_v43 = vor.u32 %v4335_v56, %v3925_v16  ;;  %v3927_v51 = vld [vmem:[#allocation8 + $0x268] sm:$0xf0]  ;;  %v4350_v28 = vld [vmem:[#allocation8 + $0x2e4] sm:$0xf] }
 0x2e1   : > { %v3990_v37 = vor.u32 %v4351_v40, %v3989_v55  ;;  %2724 = vmatpush.bf16.msra.mxu3 %v4002_v7  ;;  %v3930_v1 = vor.u32 %v4334_v44, %v3927_v51  ;;  %v3991_v31 = vld [vmem:[#allocation8 + $0x2e8] sm:$0xf0]  ;;  %v3917_v46 = vld [vmem:[#allocation8 + $0x250] sm:$0xf]  ;;  %v4333_v48 = vld [vmem:[#allocation8 + $0x254] sm:$0xf0] }
 0x2e2   : > { %v3994_v49 = vor.u32 %v4350_v28, %v3991_v31  ;;  %v3981_v50 = vld [vmem:[#allocation8 + $0x2d0] sm:$0xf]  ;;  %v4349_v30 = vld [vmem:[#allocation8 + $0x2d4] sm:$0xf0]  ;;  %v4332_v33 = vld [vmem:[#allocation8 + $0x254] sm:$0xf]  ;;  %v3918_v47 = vor.u32 %v4333_v48, %v3917_v46 }
 0x2e3   : > { %2683 = vmatpush.bf16.msra.mxu0 %v3926_v43  ;;  %v3919_v58 = vld [vmem:[#allocation8 + $0x258] sm:$0xf0]  ;;  %v4348_v17 = vld [vmem:[#allocation8 + $0x2d4] sm:$0xf]  ;;  %v3982_v8 = vor.u32 %v4349_v30, %v3981_v50  ;;  %v3909_v39 = vld [vmem:[#allocation8 + $0x240] sm:$0xf] }
 0x2e4   : > { %v3983_v52 = vld [vmem:[#allocation8 + $0x2d8] sm:$0xf0]  ;;  %2697 = vmatpush.bf16.msra.mxu1 %v3990_v37  ;;  %2711 = vmatpush.bf16.msra.mxu2 %v3930_v1  ;;  %v3922_v0 = vor.u32 %v4332_v33, %v3919_v58  ;;  %v4331_v3 = vld [vmem:[#allocation8 + $0x244] sm:$0xf0]  ;;  %v3973_v2 = vld [vmem:[#allocation8 + $0x2c0] sm:$0xf] }
 0x2e5   : > { %2725 = vmatpush.bf16.msra.mxu3 %v3994_v49  ;;  %v3986_v53 = vor.u32 %v4348_v17, %v3983_v52  ;;  %v4347_v59 = vld [vmem:[#allocation8 + $0x2c4] sm:$0xf0]  ;;  %v4330_v62 = vld [vmem:[#allocation8 + $0x244] sm:$0xf]  ;;  %v3911_v54 = vld [vmem:[#allocation8 + $0x248] sm:$0xf0]  ;;  %v3910_v20 = vor.u32 %v4331_v3, %v3909_v39 }
 0x2e6   : > { %v4346_v63 = vld [vmem:[#allocation8 + $0x2c4] sm:$0xf]  ;;  %v3975_v5 = vld [vmem:[#allocation8 + $0x2c8] sm:$0xf0]  ;;  %v3974_v42 = vor.u32 %v4347_v59, %v3973_v2  ;;  %v3914_v9 = vor.u32 %v4330_v62, %v3911_v54  ;;  %v3901_v32 = vld [vmem:[#allocation8 + $0x230] sm:$0xf] }
 0x2e7   : > { %2684 = vmatpush.bf16.msra.mxu0 %v3918_v47  ;;  %v4329_v10 = vld [vmem:[#allocation8 + $0x234] sm:$0xf0]  ;;  %v3965_v11 = vld [vmem:[#allocation8 + $0x2b0] sm:$0xf]  ;;  %v3978_v12 = vor.u32 %v4346_v63, %v3975_v5  ;;  %v4328_v14 = vld [vmem:[#allocation8 + $0x234] sm:$0xf] }
 0x2e8   : > { %2698 = vmatpush.bf16.msra.mxu1 %v3982_v8  ;;  %2712 = vmatpush.bf16.msra.mxu2 %v3922_v0  ;;  %v4345_v13 = vld [vmem:[#allocation8 + $0x2b4] sm:$0xf0]  ;;  %v3903_v18 = vld [vmem:[#allocation8 + $0x238] sm:$0xf0]  ;;  %v4344_v19 = vld [vmem:[#allocation8 + $0x2b4] sm:$0xf]  ;;  %v3902_v21 = vor.u32 %v4329_v10, %v3901_v32 }
 0x2e9   : > { %2726 = vmatpush.bf16.msra.mxu3 %v3986_v53  ;;  %v3967_v61 = vld [vmem:[#allocation8 + $0x2b8] sm:$0xf0]  ;;  %v3966_v4 = vor.u32 %v4345_v13, %v3965_v11  ;;  %v3906_v45 = vor.u32 %v4328_v14, %v3903_v18  ;;  %v3893_v57 = vld [vmem:[#allocation8 + $0x220] sm:$0xf]  ;;  %v4327_v26 = vld [vmem:[#allocation8 + $0x224] sm:$0xf0] }
 0x2ea   : > { %v3957_v41 = vld [vmem:[#allocation8 + $0x2a0] sm:$0xf]  ;;  %v3970_v29 = vor.u32 %v4344_v19, %v3967_v61  ;;  %v4343_v22 = vld [vmem:[#allocation8 + $0x2a4] sm:$0xf0]  ;;  %v4326_v23 = vld [vmem:[#allocation8 + $0x224] sm:$0xf]  ;;  %v3894_v6 = vor.u32 %v4327_v26, %v3893_v57 }
 0x2eb   : > { %2685 = vmatpush.bf16.msra.mxu0 %v3910_v20  ;;  %v3895_v27 = vld [vmem:[#allocation8 + $0x228] sm:$0xf0]  ;;  %v4342_v24 = vld [vmem:[#allocation8 + $0x2a4] sm:$0xf]  ;;  %v3885_v34 = vld [vmem:[#allocation8 + $0x210] sm:$0xf]  ;;  %v3958_v60 = vor.u32 %v4343_v22, %v3957_v41 }
 0x2ec   : > { %2699 = vmatpush.bf16.msra.mxu1 %v3974_v42  ;;  %2713 = vmatpush.bf16.msra.mxu2 %v3914_v9  ;;  %v3959_v25 = vld [vmem:[#allocation8 + $0x2a8] sm:$0xf0]  ;;  %v4325_v35 = vld [vmem:[#allocation8 + $0x214] sm:$0xf0]  ;;  %v3949_v36 = vld [vmem:[#allocation8 + $0x290] sm:$0xf]  ;;  %v3898_v38 = vor.u32 %v4326_v23, %v3895_v27 }
 0x2ed   : > { %2727 = vmatpush.bf16.msra.mxu3 %v3978_v12  ;;  %v4341_v15 = vld [vmem:[#allocation8 + $0x294] sm:$0xf0]  ;;  %v4324_v16 = vld [vmem:[#allocation8 + $0x214] sm:$0xf]  ;;  %v3887_v7 = vld [vmem:[#allocation8 + $0x218] sm:$0xf0]  ;;  %v3962_v55 = vor.u32 %v4342_v24, %v3959_v25  ;;  %v3886_v1 = vor.u32 %v4325_v35, %v3885_v34 }
 0x2ee   : > { %v4340_v56 = vld [vmem:[#allocation8 + $0x294] sm:$0xf]  ;;  %v3951_v40 = vld [vmem:[#allocation8 + $0x298] sm:$0xf0]  ;;  %v2458_v51 = vld [vmem:[#allocation2] sm:$0xff]  ;;  %v3950_v50 = vor.u32 %v4341_v15, %v3949_v36  ;;  %v3890_v30 = vor.u32 %v4324_v16, %v3887_v7 }
 0x2ef   : > { %2686 = vmatpush.bf16.msra.mxu0 %v3902_v21  ;;  %v2457_v43 = vld [vmem:[#allocation2 + $0x10] sm:$0xff]  ;;  %v2459_v37 = vld [vmem:[#allocation2 + $0x18] sm:$0xff]  ;;  %v3873_v44 = vld [vmem:[%s5676_s5 + $0x5] ss:$8 sm:$0x3]  ;;  %v3954_v33 = vor.u32 %v4340_v56, %v3951_v40 }
 0x2f0   : > { %2700 = vmatpush.bf16.msra.mxu1 %v3966_v4  ;;  %2714 = vmatpush.bf16.msra.mxu2 %v3906_v45  ;;  %v2460_v28 = vld [vmem:[#allocation2 + $0x8] sm:$0xff]  ;;  %v3877_v31 = vld [vmem:[#allocation8 + $0x200] sm:$0xf]  ;;  %v2464_v48 = vperm.slane %v3873_v44, 0  ;;  %v2465_v49 = vperm.slane %v3873_v44, 1 }
 0x2f1   : > { %2728 = vmatpush.bf16.msra.mxu3 %v3970_v29  ;;  %v4323_v46 = vld [vmem:[#allocation8 + $0x204] sm:$0xf0]  ;;  %v3941_v47 = vld [vmem:[#allocation8 + $0x280] sm:$0xf]  ;;  %v4322_v17 = vld [vmem:[#allocation8 + $0x204] sm:$0xf] }
 0x2f2   : > { %v4339_v58 = vld [vmem:[#allocation8 + $0x284] sm:$0xf0]  ;;  %v3879_v52 = vld [vmem:[#allocation8 + $0x208] sm:$0xf0]  ;;  %v4338_v8 = vld [vmem:[#allocation8 + $0x284] sm:$0xf]  ;;  %v2468_v39 = vadd.f32 %v2464_v48, %v2457_v43  ;;  %v2470_v3 = vadd.f32 %v2464_v48, %v2459_v37  ;;  %v2469_v2 = vadd.f32 %v2465_v49, %v2458_v51  ;;  %v2471_v53 = vadd.f32 %v2465_v49, %v2460_v28 }
 0x2f3   : > { %2687 = vmatpush.bf16.msra.mxu0 %v3894_v6  ;;  %v3943_v0 = vld [vmem:[#allocation8 + $0x288] sm:$0xf0]  ;;  %v3878_v59 = vor.u32 %v4323_v46, %v3877_v31  ;;  %v4062_v62 = vld [vmem:[#allocation8 + $0x370] sm:$0xf]  ;;  %v4369_v54 = vld [vmem:[#allocation8 + $0x374] sm:$0xf0]  ;;  %v3942_v10 = vor.u32 %v4339_v58, %v3941_v47  ;;  %v3882_v11 = vor.u32 %v4322_v17, %v3879_v52 }
 0x2f4   : > { %2701 = vmatpush.bf16.msra.mxu1 %v3958_v60  ;;  %2715 = vmatpush.bf16.msra.mxu2 %v3898_v38  ;;  %v4368_v63 = vld [vmem:[#allocation8 + $0x374] sm:$0xf]  ;;  %v2472_v5 = vmax.f32 %v2468_v39, 0.0  ;;  %v2474_v20 = vmax.f32 %v2470_v3, 0.0  ;;  %v2473_v42 = vmax.f32 %v2469_v2, 0.0  ;;  %v2475_v9 = vmax.f32 %v2471_v53, 0.0 }
 0x2f5   : > { %2729 = vmatpush.bf16.msra.mxu3 %v3962_v55  ;;  %v4064_v32 = vld [vmem:[#allocation8 + $0x378] sm:$0xf0]  ;;  %v4054_v12 = vld [vmem:[#allocation8 + $0x360] sm:$0xf]  ;;  %v3946_v13 = vor.u32 %v4338_v8, %v3943_v0  ;;  %v4063_v14 = vor.u32 %v4369_v54, %v4062_v62  ;;  %v4367_v18 = vld [vmem:[#allocation8 + $0x364] sm:$0xf0] }
 0x2f6   : > { %2476 = vst [vmem:[%s5571_s18] sm:$0xff] %v2472_v5  ;;  %v4126_v19 = vld [vmem:[#allocation8 + $0x3f0] sm:$0xf]  ;;  %v4385_v61 = vld [vmem:[#allocation8 + $0x3f4] sm:$0xf0]  ;;  %v2480_v21 = vpack.c.bf16 %v2474_v20, %v2472_v5  ;;  %v4067_v4 = vor.u32 %v4368_v63, %v4064_v32  ;;  %v4384_v45 = vld [vmem:[#allocation8 + $0x3f4] sm:$0xf]  ;;  %v2481_v26 = vpack.c.bf16 %v2475_v9, %v2473_v42  ;;  %v4055_v23 = vor.u32 %v4367_v18, %v4054_v12 }
 0x2f7   : > { %2688 = vmatpush.bf16.msra.mxu0 %v3886_v1  ;;  %2478 = vst [vmem:[%s5571_s18 + $0x10] sm:$0xff] %v2474_v20  ;;  %v4128_v57 = vld [vmem:[#allocation8 + $0x3f8] sm:$0xf0]  ;;  %v4366_v41 = vld [vmem:[#allocation8 + $0x364] sm:$0xf]  ;;  %v4127_v22 = vor.u32 %v4385_v61, %v4126_v19 }
 0x2f8   : > { %2702 = vmatpush.bf16.msra.mxu1 %v3950_v50  ;;  %2716 = vmatpush.bf16.msra.mxu2 %v3890_v30  ;;  %2477 = vst [vmem:[%s5571_s18 + $0x8] sm:$0xff] %v2473_v42  ;;  %v4056_v29 = vld [vmem:[#allocation8 + $0x368] sm:$0xf0]  ;;  %v4131_v27 = vor.u32 %v4384_v45, %v4128_v57  ;;  %v4046_v24 = vld [vmem:[#allocation8 + $0x350] sm:$0xf] }
 0x2f9   : > { %2730 = vmatpush.bf16.msra.mxu3 %v3954_v33  ;;  %2479 = vst [vmem:[%s5571_s18 + $0x18] sm:$0xff] %v2475_v9  ;;  %v4118_v25 = vld [vmem:[#allocation8 + $0x3e0] sm:$0xf]  ;;  %v4383_v34 = vld [vmem:[#allocation8 + $0x3e4] sm:$0xf0]  ;;  %v4059_v6 = vor.u32 %v4366_v41, %v4056_v29 }
 0x2fa   : > { %v4365_v35 = vld [vmem:[#allocation8 + $0x354] sm:$0xf0]  ;;  %v4382_v36 = vld [vmem:[#allocation8 + $0x3e4] sm:$0xf]  ;;  %v4120_v15 = vld [vmem:[#allocation8 + $0x3e8] sm:$0xf0]  ;;  %v4119_v16 = vor.u32 %v4383_v34, %v4118_v25 }
 0x2fb   : > { %2689 = vmatpush.bf16.msra.mxu0 %v3878_v59  ;;  %v4364_v60 = vld [vmem:[#allocation8 + $0x354] sm:$0xf]  ;;  %v4048_v38 = vld [vmem:[#allocation8 + $0x358] sm:$0xf0]  ;;  %v4047_v7 = vor.u32 %v4365_v35, %v4046_v24  ;;  %v4123_v56 = vor.u32 %v4382_v36, %v4120_v15  ;;  %v4038_v40 = vld [vmem:[#allocation8 + $0x340] sm:$0xf] }
 0x2fc   : > { %2703 = vmatpush.bf16.msra.mxu1 %v3942_v10  ;;  %2717 = vmatpush.bf16.msra.mxu2 %v3882_v11  ;;  %v4051_v55 = vor.u32 %v4364_v60, %v4048_v38  ;;  %v4363_v43 = vld [vmem:[#allocation8 + $0x344] sm:$0xf0]  ;;  %v4362_v37 = vld [vmem:[#allocation8 + $0x344] sm:$0xf]  ;;  %v4040_v44 = vld [vmem:[#allocation8 + $0x348] sm:$0xf0] }
 0x2fd   : > { %2731 = vmatpush.bf16.msra.mxu3 %v3946_v13  ;;  %v4039_v51 = vor.u32 %v4363_v43, %v4038_v40  ;;  %v4043_v28 = vor.u32 %v4362_v37, %v4040_v44  ;;  %v4110_v1 = vld [vmem:[#allocation8 + $0x3d0] sm:$0xf]  ;;  %v4381_v31 = vld [vmem:[#allocation8 + $0x3d4] sm:$0xf0]  ;;  %v4380_v46 = vld [vmem:[#allocation8 + $0x3d4] sm:$0xf] }
 0x2fe   : > { %2690 = vmatmul.bf16.vlgmr.msra.gmra.mxu0 %v2480_v21  ;;  %v4111_v48 = vor.u32 %v4381_v31, %v4110_v1  ;;  %v4112_v49 = vld [vmem:[#allocation8 + $0x3d8] sm:$0xf0]  ;;  %v4030_v30 = vld [vmem:[#allocation8 + $0x330] sm:$0xf]  ;;  %v4361_v33 = vld [vmem:[#allocation8 + $0x334] sm:$0xf0] }
 0x2ff   : > { %2944 = vmatpush.bf16.msrb.mxu0 %v4063_v14  ;;  %2704 = vmatmul.bf16.vlgmr.msra.gmra.mxu1 %v2481_v26  ;;  %v4115_v50 = vor.u32 %v4380_v46, %v4112_v49  ;;  %v4360_v47 = vld [vmem:[#allocation8 + $0x334] sm:$0xf]  ;;  %v4031_v58 = vor.u32 %v4361_v33, %v4030_v30  ;;  %v4032_v17 = vld [vmem:[#allocation8 + $0x338] sm:$0xf0]  ;;  %v4102_v8 = vld [vmem:[#allocation8 + $0x3c0] sm:$0xf] }
 0x300   : > { %2972 = vmatpush.bf16.msrb.mxu2 %v4067_v4  ;;  %2732 = vmatmul.bf16.vlgmr.msra.gmra.mxu3 %v2481_v26  ;;  %v4035_v52 = vor.u32 %v4360_v47, %v4032_v17  ;;  %v4379_v0 = vld [vmem:[#allocation8 + $0x3c4] sm:$0xf0]  ;;  %v4378_v39 = vld [vmem:[#allocation8 + $0x3c4] sm:$0xf]  ;;  %v4104_v2 = vld [vmem:[#allocation8 + $0x3c8] sm:$0xf0] }
 0x301   : > { %2718 = vmatmul.bf16.vlgmr.msra.gmra.mxu2 %v2480_v21  ;;  %2958 = vmatpush.bf16.msrb.mxu1 %v4127_v22  ;;  %v4103_v3 = vor.u32 %v4379_v0, %v4102_v8  ;;  %v4107_v53 = vor.u32 %v4378_v39, %v4104_v2  ;;  %v4022_v59 = vld [vmem:[#allocation8 + $0x320] sm:$0xf]  ;;  %v4359_v62 = vld [vmem:[#allocation8 + $0x324] sm:$0xf0]  ;;  %v4358_v63 = vld [vmem:[#allocation8 + $0x324] sm:$0xf] }
 0x302   : > { %2986 = vmatpush.bf16.msrb.mxu3 %v4131_v27  ;;  %v4023_v54 = vor.u32 %v4359_v62, %v4022_v59  ;;  %v4024_v5 = vld [vmem:[#allocation8 + $0x328] sm:$0xf0]  ;;  %v4094_v42 = vld [vmem:[#allocation8 + $0x3b0] sm:$0xf]  ;;  %v4377_v9 = vld [vmem:[#allocation8 + $0x3b4] sm:$0xf0] }
 0x303   : > { %2945 = vmatpush.bf16.msrb.mxu0 %v4055_v23  ;;  %v4027_v20 = vor.u32 %v4358_v63, %v4024_v5  ;;  %v4376_v32 = vld [vmem:[#allocation8 + $0x3b4] sm:$0xf]  ;;  %v4095_v10 = vor.u32 %v4377_v9, %v4094_v42  ;;  %v4096_v11 = vld [vmem:[#allocation8 + $0x3b8] sm:$0xf0]  ;;  %v4014_v13 = vld [vmem:[#allocation8 + $0x310] sm:$0xf] }
 0x304   : > { %2973 = vmatpush.bf16.msrb.mxu2 %v4059_v6  ;;  %v4099_v12 = vor.u32 %v4376_v32, %v4096_v11  ;;  %v4357_v14 = vld [vmem:[#allocation8 + $0x314] sm:$0xf0]  ;;  %v4356_v18 = vld [vmem:[#allocation8 + $0x314] sm:$0xf]  ;;  %v4016_v61 = vld [vmem:[#allocation8 + $0x318] sm:$0xf0] }
 0x305   : > { %2959 = vmatpush.bf16.msrb.mxu1 %v4119_v16  ;;  %v4015_v19 = vor.u32 %v4357_v14, %v4014_v13  ;;  %v4019_v21 = vor.u32 %v4356_v18, %v4016_v61  ;;  %v4086_v4 = vld [vmem:[#allocation8 + $0x3a0] sm:$0xf]  ;;  %v4375_v45 = vld [vmem:[#allocation8 + $0x3a4] sm:$0xf0]  ;;  %v4374_v57 = vld [vmem:[#allocation8 + $0x3a4] sm:$0xf] }
 0x306   : > { %2987 = vmatpush.bf16.msrb.mxu3 %v4123_v56  ;;  %v4087_v26 = vor.u32 %v4375_v45, %v4086_v4  ;;  %v4088_v41 = vld [vmem:[#allocation8 + $0x3a8] sm:$0xf0]  ;;  %v4006_v22 = vld [vmem:[#allocation8 + $0x300] sm:$0xf]  ;;  %v4355_v23 = vld [vmem:[#allocation8 + $0x304] sm:$0xf0] }
 0x307   : > { %2946 = vmatpush.bf16.msrb.mxu0 %v4047_v7  ;;  %v4091_v29 = vor.u32 %v4374_v57, %v4088_v41  ;;  %v4354_v27 = vld [vmem:[#allocation8 + $0x304] sm:$0xf]  ;;  %v4007_v24 = vor.u32 %v4355_v23, %v4006_v22  ;;  %v4008_v25 = vld [vmem:[#allocation8 + $0x308] sm:$0xf0]  ;;  %v4078_v6 = vld [vmem:[#allocation8 + $0x390] sm:$0xf] }
 0x308   : > { %2974 = vmatpush.bf16.msrb.mxu2 %v4051_v55  ;;  %v4011_v34 = vor.u32 %v4354_v27, %v4008_v25  ;;  %v4373_v35 = vld [vmem:[#allocation8 + $0x394] sm:$0xf0]  ;;  %v4372_v36 = vld [vmem:[#allocation8 + $0x394] sm:$0xf]  ;;  %v4080_v60 = vld [vmem:[#allocation8 + $0x398] sm:$0xf0] }
 0x309   : > { %2960 = vmatpush.bf16.msrb.mxu1 %v4111_v48  ;;  %v4079_v15 = vor.u32 %v4373_v35, %v4078_v6  ;;  %v4083_v38 = vor.u32 %v4372_v36, %v4080_v60  ;;  %v4070_v16 = vld [vmem:[#allocation8 + $0x380] sm:$0xf]  ;;  %v4371_v7 = vld [vmem:[#allocation8 + $0x384] sm:$0xf0]  ;;  %v4370_v56 = vld [vmem:[#allocation8 + $0x384] sm:$0xf] }
 0x30a   : > { %2988 = vmatpush.bf16.msrb.mxu3 %v4115_v50  ;;  %v4071_v55 = vor.u32 %v4371_v7, %v4070_v16  ;;  %v4072_v40 = vld [vmem:[#allocation8 + $0x388] sm:$0xf0]  ;;  %v4393_v37 = vld [vmem:[#allocation10 + $0x38] sm:$0xff]  ;;  %v4400_v9 = vld [vmem:[#allocation10 + $0x70] sm:$0xff] }
 0x30b   : > { %2947 = vmatpush.bf16.msrb.mxu0 %v4039_v51  ;;  %v4075_v43 = vor.u32 %v4370_v56, %v4072_v40  ;;  %v4401_v44 = vld [vmem:[#allocation10 + $0x78] sm:$0xff]  ;;  %v4392_v51 = vld [vmem:[#allocation10 + $0x30] sm:$0xff]  ;;  %v4391_v1 = vld [vmem:[#allocation10 + $0x28] sm:$0xff] }
 0x30c   : > { %2975 = vmatpush.bf16.msrb.mxu2 %v4043_v28  ;;  %v3874_v28 = vld [vmem:[%s5676_s5 + $0x6] ss:$8 sm:$0x3]  ;;  %v4389_v11 = vld [vmem:[#allocation10 + $0x18] sm:$0xff]  ;;  %v4388_v13 = vld [vmem:[#allocation10 + $0x10] sm:$0xff] }
 0x30d   : > { %2961 = vmatpush.bf16.msrb.mxu1 %v4103_v3  ;;  %v2518_v46 = vperm.slane %v3874_v28, 0  ;;  %v2519_v30 = vperm.slane %v3874_v28, 1  ;;  %v4390_v32 = vld [vmem:[#allocation10 + $0x20] sm:$0xff]  ;;  %v4397_v14 = vld [vmem:[#allocation10 + $0x58] sm:$0xff]  ;;  %v4387_v18 = vld [vmem:[#allocation10 + $0x8] sm:$0xff] }
 0x30e   : > { %2989 = vmatpush.bf16.msrb.mxu3 %v4107_v53  ;;  %v4386_v61 = vld [vmem:[#allocation10] sm:$0xff]  ;;  %v3038_v28 = vld [vmem:[%s5676_s5 + $0x10] ss:$0 sm:$0xff] }
 0x30f   : > { %2948 = vmatpush.bf16.msrb.mxu0 %v4031_v58  ;;  %v4394_v4 = vld [vmem:[#allocation10 + $0x40] sm:$0xff] }
 0x310   : > { %2976 = vmatpush.bf16.msrb.mxu2 %v4035_v52  ;;  %v4003_v57 = vld [vmem:[%s5676_s5 + $0x7] ss:$8 sm:$0x3] }
 0x311   : > { %2962 = vmatpush.bf16.msrb.mxu1 %v4095_v10  ;;  %v4399_v10 = vld [vmem:[#allocation10 + $0x68] sm:$0xff]  ;;  %v2781_v25 = vperm.slane %v4003_v57, 1 }
 0x312   : > { %2990 = vmatpush.bf16.msrb.mxu3 %v4099_v12  ;;  %v4398_v12 = vld [vmem:[#allocation10 + $0x60] sm:$0xff] }
 0x313   : > { %2949 = vmatpush.bf16.msrb.mxu0 %v4023_v54 }
 0x314   : > { %2977 = vmatpush.bf16.msrb.mxu2 %v4027_v20 }
 0x315   : > { %2963 = vmatpush.bf16.msrb.mxu1 %v4087_v26 }
 0x316   : > { %2991 = vmatpush.bf16.msrb.mxu3 %v4091_v29  ;;  %v2780_v29 = vperm.slane %v4003_v57, 0 }
 0x317   : > { %2950 = vmatpush.bf16.msrb.mxu0 %v4015_v19  ;;  %v4396_v19 = vld [vmem:[#allocation10 + $0x50] sm:$0xff] }
 0x318   : > { %2978 = vmatpush.bf16.msrb.mxu2 %v4019_v21  ;;  %v4395_v21 = vld [vmem:[#allocation10 + $0x48] sm:$0xff] }
 0x319   : > { %2964 = vmatpush.bf16.msrb.mxu1 %v4079_v15 }
 0x31a   : > { %2992 = vmatpush.bf16.msrb.mxu3 %v4083_v38 }
 0x31b   : > { %2951 = vmatpush.bf16.msrb.mxu0 %v4007_v24 }
 0x31c   : > { %2979 = vmatpush.bf16.msrb.mxu2 %v4011_v34 }
 0x31d   : > { %2965 = vmatpush.bf16.msrb.mxu1 %v4071_v55 }
 0x31e   : > { %2993 = vmatpush.bf16.msrb.mxu3 %v4075_v43 }
 0x31f   : > { %3135 = vmatpush.bf16.msra.mxu0 %v4393_v37 }
 0x321   : > { %3149 = vmatpush.bf16.msra.mxu1 %v4401_v44 }
 0x323   : > { %3136 = vmatpush.bf16.msra.mxu0 %v4392_v51 }
 0x325   : > { %3150 = vmatpush.bf16.msra.mxu1 %v4400_v9 }
 0x327   : > { %3137 = vmatpush.bf16.msra.mxu0 %v4391_v1 }
 0x329   : > { %3151 = vmatpush.bf16.msra.mxu1 %v4399_v10 }
 0x32b   : > { %3138 = vmatpush.bf16.msra.mxu0 %v4390_v32 }
 0x32d   : > { %3152 = vmatpush.bf16.msra.mxu1 %v4398_v12 }
 0x32f   : > { %3139 = vmatpush.bf16.msra.mxu0 %v4389_v11 }
 0x331   : > { %3153 = vmatpush.bf16.msra.mxu1 %v4397_v14 }
 0x333   : > { %3140 = vmatpush.bf16.msra.mxu0 %v4388_v13 }
 0x335   : > { %3154 = vmatpush.bf16.msra.mxu1 %v4396_v19 }
 0x337   : > { %3141 = vmatpush.bf16.msra.mxu0 %v4387_v18 }
 0x339   : > { %3155 = vmatpush.bf16.msra.mxu1 %v4395_v21 }
 0x33b   : > { %3142 = vmatpush.bf16.msra.mxu0 %v4386_v61 }
 0x33d   : > { %3156 = vmatpush.bf16.msra.mxu1 %v4394_v4 }
 0x37b   : > { %v2691_v31 = vpop.f32.mrf.mxu0 }
 0x37c   : > { %v2705_v48 = vpop.f32.mrf.mxu1  ;;  %v2692_v49 = vadd.f32 %v2691_v31, %v2518_v46 }
 0x37e   : > { %v2706_v58 = vadd.f32 %v2705_v48, %v2692_v49 }
 0x380   : > { %v2738_v39 = vmax.f32 %v2706_v58, 0.0 }
 0x383   : > { %v2733_v33 = vpop.f32.mrf.mxu3  ;;  %v2693_v47 = vpop.f32.mrf.mxu0 }
 0x384   : > { %v2719_v50 = vpop.f32.mrf.mxu2  ;;  %v2694_v17 = vadd.f32 %v2693_v47, %v2518_v46  ;;  %v2707_v52 = vpop.f32.mrf.mxu1 }
 0x385   : > { %v2720_v0 = vadd.f32 %v2719_v50, %v2519_v30 }
 0x386   : > { %v2708_v8 = vadd.f32 %v2707_v52, %v2694_v17 }
 0x387   : > { %v2734_v59 = vadd.f32 %v2733_v33, %v2720_v0 }
 0x388   : > { %v2740_v3 = vmax.f32 %v2708_v8, 0.0 }
 0x389   : > { %v2739_v5 = vmax.f32 %v2734_v59, 0.0 }
 0x38a   : > { %v2742_v2 = vpack.c.bf16 %v2740_v3, %v2738_v39 }
 0x38b   : > { %v2735_v54 = vpop.f32.mrf.mxu3 }
 0x38c   : > { %v2721_v53 = vpop.f32.mrf.mxu2  ;;  %2952 = vmatmul.bf16.vlgmr.msrb.gmra.mxu0 %v2742_v2  ;;  %2980 = vmatmul.bf16.vlgmr.msrb.gmra.mxu2 %v2742_v2 }
 0x38d   : > { %v2722_v62 = vadd.f32 %v2721_v53, %v2519_v30 }
 0x38f   : > { %v2736_v63 = vadd.f32 %v2735_v54, %v2722_v62 }
 0x391   : > { %v2741_v20 = vmax.f32 %v2736_v63, 0.0 }
 0x393   : > { %v2743_v42 = vpack.c.bf16 %v2741_v20, %v2739_v5 }
 0x395   : > { %2966 = vmatmul.bf16.vlgmr.msrb.gmra.mxu1 %v2743_v42  ;;  %2994 = vmatmul.bf16.vlgmr.msrb.gmra.mxu3 %v2743_v42 }
 0x409   : > { %v2953_v45 = vpop.f32.mrf.mxu0 }
 0x40a   : > { %v2954_v23 = vadd.f32 %v2953_v45, %v2780_v29 }
 0x40f   : > { %v2981_v41 = vpop.f32.mrf.mxu2 }
 0x410   : > { %v2982_v60 = vadd.f32 %v2981_v41, %v2781_v25 }
 0x411   : > { %v2955_v22 = vpop.f32.mrf.mxu0 }
 0x412   : > { %v2967_v26 = vpop.f32.mrf.mxu1  ;;  %v2956_v34 = vadd.f32 %v2955_v22, %v2780_v29 }
 0x413   : > { %v2968_v24 = vadd.f32 %v2967_v26, %v2954_v23 }
 0x415   : > { %v3000_v15 = vmax.f32 %v2968_v24, 0.0 }
 0x417   : > { %v2983_v36 = vpop.f32.mrf.mxu2 }
 0x418   : > { %v2995_v27 = vpop.f32.mrf.mxu3  ;;  %v2984_v56 = vadd.f32 %v2983_v36, %v2781_v25 }
 0x419   : > { %v2996_v16 = vadd.f32 %v2995_v27, %v2982_v60 }
 0x41a   : > { %v2969_v6 = vpop.f32.mrf.mxu1 }
 0x41b   : > { %v2970_v35 = vadd.f32 %v2969_v6, %v2956_v34  ;;  %v3001_v43 = vmax.f32 %v2996_v16, 0.0 }
 0x41d   : > { %v3002_v38 = vmax.f32 %v2970_v35, 0.0 }
 0x41f   : > { %v3004_v7 = vpack.c.bf16 %v3002_v38, %v3000_v15 }
 0x420   : > { %v2997_v55 = vpop.f32.mrf.mxu3 }
 0x421   : > { %v2998_v40 = vadd.f32 %v2997_v55, %v2984_v56  ;;  %3143 = vmatmul.bf16.vlgmr.msra.gmra.mxu0 %v3004_v7 }
 0x423   : > { %v3003_v37 = vmax.f32 %v2998_v40, 0.0 }
 0x425   : > { %v3005_v44 = vpack.c.bf16 %v3003_v37, %v3001_v43 }
 0x427   : > { %3157 = vmatmul.bf16.vlgmr.msra.gmra.mxu1 %v3005_v44 }
 0x49e   : > { %v3144_v51 = vpop.f32.mrf.mxu0 }
 0x49f   : > { %v3145_v1 = vadd.f32 %v3144_v51, %v3038_v28 }
 0x4a4   : > { %v3158_v31 = vpop.f32.mrf.mxu1 }
 0x4a5   : > { %v3159_v46 = vadd.f32 %v3158_v31, %v3145_v1 }
 0x4a6   : > { %v3146_v48 = vpop.f32.mrf.mxu0 }
 0x4a7   : > { %3163 = vst [vmem:[%s5575_s20] sm:$0xff] %v3159_v46  ;;  %v3147_v49 = vadd.f32 %v3146_v48, %v3038_v28 }
 0x4ac   : > { %v3160_v50 = vpop.f32.mrf.mxu1 }
 0x4ad   : > { %v3161_v30 = vadd.f32 %v3160_v50, %v3147_v49 }
 0x4af   : > { %3164 = vst [vmem:[%s5575_s20 + $0x8] sm:$0xff] %v3161_v30 }
 0x4b0 PF: > { %s5724_s6 = sld [smem:[#allocation21_spill]]  ;;  %s3186_s14 = sshll.u32 %s5571_s18, 4  ;;  %s3187_s14 = int_to_ptr.vmem [resolvable:$true] %s3186_s14 }
 0x4b1   : > { %s5725_s7 = sld [smem:[#allocation22_spill]]  ;;  %s3166_s13 = scalar_lea.sflag [#allocation7], %s5122_s24 }
 0x4b2   : > { %s5727_s29 = sld [smem:[#allocation34_spill]] }
 0x4b6   : > { %s4402_s26 = sshll.u32 %s5724_s6, 2  ;;  %s4202_s8 = sshll.u32 %s5724_s6, 1 }
 0x4b7   : > { %s4200_s23 = sshll.u32 %s5725_s7, 3 }
 0x4b8   : > { %s3183_s19 = sadd.s32 %s4402_s26, %s4200_s23  ;;  %s5728_s17 = smov %s5727_s29 }
 0x4b9   : > { %s4201_s21 = sshll.u32 %s3183_s19, 3  ;;  %s4703_s26 = scalar_lea.hbm %s5728_s17, 128 }
 0x4ba   : > { %s3185_s30 = scalar_lea.hbm %s5727_s29, %s4201_s21 }
 0x4bb   : > { %s3188_s27 = sshll.u32 %s3185_s30, 4  ;;  %s3189_s27 = int_to_ptr.hbm [resolvable:$true] %s3188_s27 }
 0x4bc   : > { %s4697_s15 = sshra.s32 %s3189_s27, 4  ;;  %s4698_s15 = int_to_ptr.hbm [resolvable:$true] %s4697_s15 }
 0x4bd   : > { %s4699_s0 = scalar_lea.hbm %s4698_s15, 32  ;;  %p4704_p0 = scmp.lt.s32.totalorder %s4698_s15, %s5728_s17 }
 0x4be   : > { %p4700_p10 = scmp.ne.s32.totalorder %s4698_s15, %s4699_s0  ;;  %p4705_p1 = scmp.lt.s32.totalorder %s4703_s26, %s4699_s0 }
 0x4c0   : > { %p4701_p12 = pnand %p4700_p10, %p4996_p9  ;;  %p4706_p2 = por %p4705_p1, %p4704_p0 }
 0x4c2   : > { %p4702_p13 = pneg %p4701_p12 }
 0x4c4   : > { %p4707_p3 = pnand %p4706_p2, %p4702_p13 }
 0x4c6   : > { %4710 = shalt.err (!%p4707_p3)
}
 0x4c7   : > { %s4862_s6 = smov 256   ;;  %s4863_s21 = smov 16  }
 0x4c8   : > { %4415 = dma.vmem_to_hbm [thread:$0]  (%p4996_p9), %s3187_s14, 512, %s3189_s27, %s3166_s13, %s4862_s6, %s4862_s6, %s4863_s21  }
 0x4c9   : > { %s4203_s22 = sshll.u32 %s5725_s7, 2  ;;  %s3205_s1 = sshll.u32 %s5575_s20, 4  ;;  %s3206_s1 = int_to_ptr.vmem [resolvable:$true] %s3205_s1 }
 0x4ca   : > { %s3202_s16 = sadd.s32 %s4203_s22, %s4202_s8  ;;  %s5729_s0 = sld [smem:[#allocation35_spill]] }
 0x4cb   : > { %s4204_s29 = sshll.u32 %s3202_s16, 3  ;;  %s3171_s23 = scalar_lea.sflag [#allocation13], %s5122_s24 }
 0x4d0   : > { %s3204_s18 = scalar_lea.hbm %s5729_s0, %s4204_s29  ;;  %s4731_s20 = scalar_lea.hbm %s5729_s0, 64 }
 0x4d1   : > { %s3207_s26 = sshll.u32 %s3204_s18, 4  ;;  %s3208_s26 = int_to_ptr.hbm [resolvable:$true] %s3207_s26 }
 0x4d2   : > { %s4725_s19 = sshra.s32 %s3208_s26, 4  ;;  %s4726_s19 = int_to_ptr.hbm [resolvable:$true] %s4725_s19 }
 0x4d3   : > { %s4727_s2 = scalar_lea.hbm %s4726_s19, 16  ;;  %p4732_p4 = scmp.lt.s32.totalorder %s4726_s19, %s5729_s0 }
 0x4d4   : > { %p4728_p5 = scmp.ne.s32.totalorder %s4726_s19, %s4727_s2  ;;  %p4733_p8 = scmp.lt.s32.totalorder %s4731_s20, %s4727_s2 }
 0x4d6   : > { %p4729_p6 = pnand %p4728_p5, %p4996_p9  ;;  %p4734_p10 = por %p4733_p8, %p4732_p4 }
 0x4d8   : > { %p4730_p7 = pneg %p4729_p6 }
 0x4da   : > { %p4735_p12 = pnand %p4734_p10, %p4730_p7 }
 0x4dc   : > { %4738 = shalt.err (!%p4735_p12)
}
 0x4dd   : > { %s4864_s24 = smov 128   ;;  %s4865_s13 = smov 8  }
 0x4de   : > { %4416 = dma.vmem_to_hbm [thread:$0]  (%p4996_p9), %s3206_s1, 256, %s3208_s26, %s3171_s23, %s4864_s24, %s4864_s24, %s4865_s13  }
 0x4df PF: > { %s5730_s6 = sld [smem:[#allocation18_spill]]  ;;  %p4442_p13 = scmp.ge.s32.totalorder %s4849_s12, 2 }
 0x4e1   : > { %p4430_p0 = pnand %p4442_p13, %p5002_p11 }
 0x4e3   : > { %p4431_p1 = pneg %p4430_p0 }
 0x4e5   : > { %s3222_s22 = sand.u32 1, %s5730_s6  }
 0x4e6   : > { %s3223_s16 = scalar_lea.sflag [#allocation7], %s3222_s22 }
 0x4e7   : > { %4796 = dma.done.wait (%p4431_p1), %s3223_s16, 512  }
 0x4e8   : > { %4798 = vsyncadd (%p4431_p1), %s3223_s16, 4294966784  ;;  %s3233_s2 = scalar_lea.sflag [#allocation13], %s3222_s22 }
 0x4e9   : > { %4800 = dma.done.wait (%p4431_p1), %s3233_s2, 256  }
 0x4ea   : > { %4802 = vsyncadd (%p4431_p1), %s3233_s2, 4294967040  ;;  %s26_s12 = sadd.s32 1, %s4849_s12   ;;  %s5732_s3 = sld [smem:[#allocation19_spill]] }
 0x4eb   : > { %p23_p2 = scmp.ge.s32.totalorder %s26_s12, 10   ;;  %s5733_s26 = sld [smem:[#allocation28_spill]] }
 0x4ec   : > { %s5734_s1 = sld [smem:[#allocation29_spill]]  ;;  %s5738_s24 = smov %s4809_s25 }
 0x4ed   : > { %s5735_s15 = sld [smem:[#allocation23_spill]]  ;;  %s5740_s27 = smov %s4821_s28 }
 0x4ee   : > { %s5736_s18 = sld [smem:[#allocation24_spill]]  ;;  %s5742_s29 = smov %s4837_s9 }
 0x4ef   : > { %s5737_s23 = sld [smem:[#allocation26_spill]]  ;;  %s5743_s30 = smov %s4841_s10 }
 0x4f0   : > { %s5739_s25 = smov %s5732_s3  ;;  %s5744_s8 = smov %s4845_s11 }
 0x4f1   :  { %25 = sbr.rel (!%p23_p2) target bundleno = 18 (0x12), region = 216 }
 0x4f2   : > { %s5741_s28 = smov %s5734_s1 }
 0x4f3   : > { %s5745_s9 = smov %s5735_s15 }
 0x4f4   : > { %s5746_s10 = smov %s5736_s18 }
 0x4f5   : > { %s5747_s11 = smov %s5737_s23 }
 0x4f6   :  { %3239 = vsyncpa [#allocation6], 1 }
 0x4f7   :  { %3241 = vsyncpa [#allocation6 + $0x1], 1 }
 0x4f8   :  { %3242 = vsyncpa [#allocation9], 1 }
 0x4f9   :  { %3243 = vsyncpa [#allocation7], 1 }
 0x4fa   :  { %3245 = vsyncpa [#allocation7 + $0x1], 1 }
 0x4fb   :  { %3246 = vsyncpa [#allocation13], 1 }
 0x4fc   :  { %3248 = vsyncpa [#allocation13 + $0x1], 1 }

</bundles_post_ra>
